<compile_context>
chip_gen: v6e
topology: v6e:2x2x1
jax: 0.10.0
libtpu: 0.0.40
codegen_flags: <defaults>
</compile_context>

<pallas_src>
import functools

import jax
import jax.numpy as jnp
from jax.experimental import pallas as pl
from jax.experimental.pallas import tpu as pltpu

NEG_SLOPE = 0.01   # F.leaky_relu default negative_slope
BN_EPS = 1e-5      # nn.BatchNorm2d default eps
BASE_CH = 32       # baseChannels (hard-coded inside DenoisingNet.forward)

# Dilations of conv2..conv14: conv2..conv13 use the signalDilation trick with
# dilation 2, 4, ..., 4096; conv14 is a plain (1,3) conv, i.e. dilation 1.
DILATIONS = tuple(2 ** i for i in range(1, 13)) + (1,)


def _leaky_relu(x):
    return jnp.where(x >= 0.0, x, NEG_SLOPE * x)


# ----------------------------------------------------------------------------
# Fused Pallas kernel (one grid step per batch element)
# ----------------------------------------------------------------------------
def denoising_kernel(xpad_ref, w1_ref, wr_ref, scale_ref, shift_ref,
                     w15_ref, b15_ref, out_ref, pad_ref, *, dilations):
    """Layout: activations are (C, W) slabs — channels on sublanes, width on
    lanes (lane-dense).  pad_ref is (C, 3W); middle third = current
    activation, outer thirds stay zero so dilated neighbours are plain slices.

    xpad_ref : (1, 1, W+2)  zero-padded input row (Cin = 1, H = 1)
    w1_ref   : (3, C, 1)    conv1 weight, one (C, 1) column per tap
    wr_ref   : (13, C, 3C)  conv2..conv14 weights, rows = Cout, cols = (tap, Cin)
    scale_ref: (14, C, 1)   folded BN scale  gamma / sqrt(var + eps)
    shift_ref: (14, C, 1)   folded BN shift  (conv bias pre-folded in)
    w15_ref  : (1, C)       conv15 1x1 weight
    b15_ref  : (1, 1)       conv15 bias
    out_ref  : (1, 1, W+2)  conv15 pads width by 1 on each side
    pad_ref  : VMEM scratch (C, 3W)
    """
    W = out_ref.shape[-1] - 2
    C = pad_ref.shape[0]

    # Zero the halo thirds once; only the middle third is written below.
    zeros = jnp.zeros((C, W), jnp.float32)
    pad_ref[:, :W] = zeros
    pad_ref[:, 2 * W:] = zeros

    # ---- conv1 + BN + leaky_relu (Cin = 1: pure VPU broadcast-multiply) ----
    xp = xpad_ref[0]                                    # (1, W+2)
    acc = (w1_ref[0] * xp[:, 0:W] +                     # x[w-1]
           w1_ref[1] * xp[:, 1:W + 1] +                 # x[w]
           w1_ref[2] * xp[:, 2:W + 2])                  # x[w+1]   -> (C, W)
    acc = acc * scale_ref[0] + shift_ref[0]
    pad_ref[:, W:2 * W] = _leaky_relu(acc)

    # ---- conv2..conv14: dilated (1,3) convs, one K=3C MXU matmul each ----
    for j, d in enumerate(dilations):                   # static unroll (13)
        dc = min(d, W)      # dilation >= W: both neighbour taps are all-zero
        left = pad_ref[:, W - dc:2 * W - dc]            # x[w-d] (zeros OOB)
        center = pad_ref[:, W:2 * W]                    # x[w]
        right = pad_ref[:, W + dc:2 * W + dc]           # x[w+d] (zeros OOB)
        taps = jnp.concatenate([left, center, right], axis=0)   # (3C, W)
        acc = jnp.dot(wr_ref[j], taps,
                      preferred_element_type=jnp.float32)        # (C, W)
        acc = acc * scale_ref[j + 1] + shift_ref[j + 1]
        pad_ref[:, W:2 * W] = _leaky_relu(acc)

    # ---- conv15: 1x1 conv, padding (0,1) -> width W+2, no BN / activation --
    x14 = pad_ref[:, W:2 * W]                           # (C, W)
    y = jnp.dot(w15_ref[...], x14,
                preferred_element_type=jnp.float32)     # (1, W)
    b15 = b15_ref[...]                                  # (1, 1)
    out_ref[0, :, 0:1] = b15                            # left padded column
    out_ref[0, :, 1:W + 1] = y + b15
    out_ref[0, :, W + 1:W + 2] = b15                    # right padded column


# ----------------------------------------------------------------------------
# Wrapper: one pallas_call for the whole network, batch on a parallel grid axis
# ----------------------------------------------------------------------------
def denoising_net_forward(x_nchw, params):
    n, c, h, w = x_nchw.shape
    assert c == 1 and h == 1, "DenoisingNet expects NCHW input (N, 1, 1, W)"
    C = BASE_CH

    # Only input-side glue: drop the unit channel dim and zero-pad W by 1.
    x_pad = jnp.pad(x_nchw[:, 0, :, :], ((0, 0), (0, 0), (1, 1)))  # (N,1,W+2)

    kern = functools.partial(denoising_kernel, dilations=DILATIONS)
    grid_spec = pltpu.PrefetchScalarGridSpec(
        num_scalar_prefetch=0,
        grid=(n,),
        in_specs=[
            pl.BlockSpec((1, 1, w + 2), lambda b: (b, 0, 0)),   # x_pad
            pl.BlockSpec((3, C, 1), lambda b: (0, 0, 0)),       # conv1 weight
            pl.BlockSpec((13, C, 3 * C), lambda b: (0, 0, 0)),  # conv2..14 w
            pl.BlockSpec((14, C, 1), lambda b: (0, 0, 0)),      # BN scale
            pl.BlockSpec((14, C, 1), lambda b: (0, 0, 0)),      # BN shift
            pl.BlockSpec((1, C), lambda b: (0, 0)),             # conv15 weight
            pl.BlockSpec((1, 1), lambda b: (0, 0)),             # conv15 bias
        ],
        out_specs=pl.BlockSpec((1, 1, w + 2), lambda b: (b, 0, 0)),
        scratch_shapes=[pltpu.VMEM((C, 3 * w), jnp.float32)],
    )
    out = pl.pallas_call(
        kern,
        out_shape=jax.ShapeDtypeStruct((n, 1, w + 2), jnp.float32),
        grid_spec=grid_spec,
        compiler_params=pltpu.CompilerParams(
            dimension_semantics=("parallel",)),
    )(x_pad, params["w1"], params["wr"], params["scale"], params["shift"],
      params["w15"], params["b15"])

    return out[:, None, :, :]                 # NCHW: (N, 1, 1, W+2)


# ----------------------------------------------------------------------------
# Deterministic in-script parameters (inference-mode BN, bias folded)
# ----------------------------------------------------------------------------
def init_params(key, C=BASE_CH):
    keys = iter(jax.random.split(key, 40))
    std1 = 1.0 / (1 * 3) ** 0.5
    stdr = 1.0 / (C * 3) ** 0.5

    # conv1: torch layout (Cout=C, Cin=1, kW=3)  ->  (3, C, 1)
    w1_t = jax.random.normal(next(keys), (C, 1, 3), jnp.float32) * std1
    b1 = 0.01 * jax.random.normal(next(keys), (C,), jnp.float32)
    w1 = jnp.transpose(w1_t, (2, 0, 1))                         # (3, C, 1)

    # conv2..conv14: torch (C, C, 3) -> (C, 3C), column index = tap*C + cin
    ws, biases = [], []
    for _ in range(13):
        w_t = jax.random.normal(next(keys), (C, C, 3), jnp.float32) * stdr
        ws.append(jnp.transpose(w_t, (0, 2, 1)).reshape(C, 3 * C))
        biases.append(0.01 * jax.random.normal(next(keys), (C,), jnp.float32))
    wr = jnp.stack(ws)                                          # (13, C, 3C)
    bias_all = jnp.stack([b1] + biases)                         # (14, C)

    # BatchNorm (eval mode: running stats), conv bias folded into the shift.
    gamma = 1.0 + 0.01 * jax.random.normal(next(keys), (14, C), jnp.float32)
    beta = 0.01 * jax.random.normal(next(keys), (14, C), jnp.float32)
    running_mean = jnp.zeros((14, C), jnp.float32)
    running_var = jnp.ones((14, C), jnp.float32)
    scale = gamma / jnp.sqrt(running_var + BN_EPS)
    shift = beta - running_mean * scale + bias_all * scale

    # conv15: 1x1 conv (1, C) + bias
    w15 = jax.random.normal(next(keys), (1, C), jnp.float32) / (C ** 0.5)
    b15 = 0.01 * jax.random.normal(next(keys), (1, 1), jnp.float32)

    return dict(w1=w1, wr=wr,
                scale=scale.reshape(14, C, 1),
                shift=shift.reshape(14, C, 1),
                w15=w15, b15=b15)


# ----------------------------------------------------------------------------
if __name__ == "__main__":
    key = jax.random.PRNGKey(0)
    kp, kx = jax.random.split(key)
    params = init_params(kp)

    # Small input consistent with the module: NCHW with C=1, H=1 (1-D signal).
    N, W = 2, 256
    x = jax.random.normal(kx, (N, 1, 1, W), jnp.float32)

    fwd = jax.jit(lambda xx: denoising_net_forward(xx, params))
    out = fwd(x)
    jax.block_until_ready(out)

    assert out.shape == (N, 1, 1, W + 2)
    assert bool(jnp.all(jnp.isfinite(out)))
    print("KERNEL_OK")
</pallas_src>

<mosaic_0001>
module attributes {stable_mosaic.version = 11 : i64} {
  func.func @denoising_kernel(%arg0: i32, %arg1: memref<1x1x258xf32, #tpu.memory_space<vmem>>, %arg2: memref<3x32x1xf32, #tpu.memory_space<vmem>>, %arg3: memref<13x32x96xf32, #tpu.memory_space<vmem>>, %arg4: memref<14x32x1xf32, #tpu.memory_space<vmem>>, %arg5: memref<14x32x1xf32, #tpu.memory_space<vmem>>, %arg6: memref<1x32xf32, #tpu.memory_space<vmem>>, %arg7: memref<1x1xf32, #tpu.memory_space<vmem>>, %arg8: memref<1x1x258xf32, #tpu.memory_space<vmem>>, %arg9: memref<32x768xf32, #tpu.memory_space<vmem>>) attributes {dimension_semantics = [#tpu.dimension_semantics<parallel>], iteration_bounds = array<i64: 2>, scalar_prefetch = 0 : i64, scratch_operands = 1 : i64, tpu.core_type = #tpu.core_type<tc>, window_params = [{transform_indices = @transform_0, window_bounds = array<i64: 1, 1, 258>}, {pipeline_mode = #tpu.pipeline_mode<synchronous>, transform_indices = @transform_1, window_bounds = array<i64: 3, 32, 1>}, {pipeline_mode = #tpu.pipeline_mode<synchronous>, transform_indices = @transform_2, window_bounds = array<i64: 13, 32, 96>}, {pipeline_mode = #tpu.pipeline_mode<synchronous>, transform_indices = @transform_3, window_bounds = array<i64: 14, 32, 1>}, {pipeline_mode = #tpu.pipeline_mode<synchronous>, transform_indices = @transform_4, window_bounds = array<i64: 14, 32, 1>}, {pipeline_mode = #tpu.pipeline_mode<synchronous>, transform_indices = @transform_5, window_bounds = array<i64: 1, 32>}, {pipeline_mode = #tpu.pipeline_mode<synchronous>, transform_indices = @transform_6, window_bounds = array<i64: 1, 1>}, {transform_indices = @transform_7, window_bounds = array<i64: 1, 1, 258>}]} {
    %cst = arith.constant 0.000000e+00 : f32
    %0 = vector.broadcast %cst : f32 to vector<32x256xf32>
    %c0 = arith.constant 0 : index
    %c0_0 = arith.constant 0 : index
    %1 = vector.load %arg9[%c0, %c0_0] : memref<32x768xf32, #tpu.memory_space<vmem>>, vector<32x256xf32>
    tpu.vector_store %arg9[%c0, %c0_0], %0 {strides = array<i32>} : memref<32x768xf32, #tpu.memory_space<vmem>>, vector<32x256xf32>,
    %c0_1 = arith.constant 0 : index
    %c512 = arith.constant 512 : index
    %2 = vector.load %arg9[%c0_1, %c512] : memref<32x768xf32, #tpu.memory_space<vmem>>, vector<32x256xf32>
    tpu.vector_store %arg9[%c0_1, %c512], %0 {strides = array<i32>} : memref<32x768xf32, #tpu.memory_space<vmem>>, vector<32x256xf32>,
    %c0_2 = arith.constant 0 : index
    %c0_3 = arith.constant 0 : index
    %c0_4 = arith.constant 0 : index
    %3 = vector.load %arg1[%c0_2, %c0_3, %c0_4] : memref<1x1x258xf32, #tpu.memory_space<vmem>>, vector<1x1x258xf32>
    %4 = vector.shape_cast %3 : vector<1x1x258xf32> to vector<1x258xf32>
    %c0_5 = arith.constant 0 : index
    %c0_6 = arith.constant 0 : index
    %c0_7 = arith.constant 0 : index
    %5 = vector.load %arg2[%c0_5, %c0_6, %c0_7] : memref<3x32x1xf32, #tpu.memory_space<vmem>>, vector<1x32x1xf32>
    %6 = vector.shape_cast %5 : vector<1x32x1xf32> to vector<32x1xf32>
    %7 = vector.extract_strided_slice %4 {offsets = [0, 0], sizes = [1, 256], strides = [1, 1]} : vector<1x258xf32> to vector<1x256xf32>
    %8 = vector.broadcast %6 : vector<32x1xf32> to vector<32x256xf32>
    %9 = vector.broadcast %7 : vector<1x256xf32> to vector<32x256xf32>
    %10 = arith.mulf %8, %9 : vector<32x256xf32>
    %c1 = arith.constant 1 : index
    %c0_8 = arith.constant 0 : index
    %c0_9 = arith.constant 0 : index
    %11 = vector.load %arg2[%c1, %c0_8, %c0_9] : memref<3x32x1xf32, #tpu.memory_space<vmem>>, vector<1x32x1xf32>
    %12 = vector.shape_cast %11 : vector<1x32x1xf32> to vector<32x1xf32>
    %13 = vector.extract_strided_slice %4 {offsets = [0, 1], sizes = [1, 256], strides = [1, 1]} : vector<1x258xf32> to vector<1x256xf32>
    %14 = vector.broadcast %12 : vector<32x1xf32> to vector<32x256xf32>
    %15 = vector.broadcast %13 : vector<1x256xf32> to vector<32x256xf32>
    %16 = arith.mulf %14, %15 : vector<32x256xf32>
    %17 = arith.addf %10, %16 : vector<32x256xf32>
    %c2 = arith.constant 2 : index
    %c0_10 = arith.constant 0 : index
    %c0_11 = arith.constant 0 : index
    %18 = vector.load %arg2[%c2, %c0_10, %c0_11] : memref<3x32x1xf32, #tpu.memory_space<vmem>>, vector<1x32x1xf32>
    %19 = vector.shape_cast %18 : vector<1x32x1xf32> to vector<32x1xf32>
    %20 = vector.extract_strided_slice %4 {offsets = [0, 2], sizes = [1, 256], strides = [1, 1]} : vector<1x258xf32> to vector<1x256xf32>
    %21 = vector.broadcast %19 : vector<32x1xf32> to vector<32x256xf32>
    %22 = vector.broadcast %20 : vector<1x256xf32> to vector<32x256xf32>
    %23 = arith.mulf %21, %22 : vector<32x256xf32>
    %24 = arith.addf %17, %23 : vector<32x256xf32>
    %c0_12 = arith.constant 0 : index
    %c0_13 = arith.constant 0 : index
    %c0_14 = arith.constant 0 : index
    %25 = vector.load %arg4[%c0_12, %c0_13, %c0_14] : memref<14x32x1xf32, #tpu.memory_space<vmem>>, vector<1x32x1xf32>
    %26 = vector.shape_cast %25 : vector<1x32x1xf32> to vector<32x1xf32>
    %27 = vector.broadcast %26 : vector<32x1xf32> to vector<32x256xf32>
    %28 = arith.mulf %24, %27 : vector<32x256xf32>
    %c0_15 = arith.constant 0 : index
    %c0_16 = arith.constant 0 : index
    %c0_17 = arith.constant 0 : index
    %29 = vector.load %arg5[%c0_15, %c0_16, %c0_17] : memref<14x32x1xf32, #tpu.memory_space<vmem>>, vector<1x32x1xf32>
    %30 = vector.shape_cast %29 : vector<1x32x1xf32> to vector<32x1xf32>
    %31 = vector.broadcast %30 : vector<32x1xf32> to vector<32x256xf32>
    %32 = arith.addf %28, %31 : vector<32x256xf32>
    %cst_18 = arith.constant 0.000000e+00 : f32
    %33 = vector.broadcast %cst_18 : f32 to vector<32x256xf32>
    %34 = arith.cmpf oge, %32, %33 : vector<32x256xf32>
    %cst_19 = arith.constant 0.00999999977 : f32
    %35 = vector.broadcast %cst_19 : f32 to vector<32x256xf32>
    %36 = arith.mulf %35, %32 : vector<32x256xf32>
    %37 = arith.select %34, %32, %36 : vector<32x256xi1>, vector<32x256xf32>
    %c0_20 = arith.constant 0 : index
    %c256 = arith.constant 256 : index
    %38 = vector.load %arg9[%c0_20, %c256] : memref<32x768xf32, #tpu.memory_space<vmem>>, vector<32x256xf32>
    tpu.vector_store %arg9[%c0_20, %c256], %37 {strides = array<i32>} : memref<32x768xf32, #tpu.memory_space<vmem>>, vector<32x256xf32>,
    %c0_21 = arith.constant 0 : index
    %c254 = arith.constant 254 : index
    %39 = vector.load %arg9[%c0_21, %c254] : memref<32x768xf32, #tpu.memory_space<vmem>>, vector<32x256xf32>
    %c0_22 = arith.constant 0 : index
    %c256_23 = arith.constant 256 : index
    %40 = vector.load %arg9[%c0_22, %c256_23] : memref<32x768xf32, #tpu.memory_space<vmem>>, vector<32x256xf32>
    %c0_24 = arith.constant 0 : index
    %c258 = arith.constant 258 : index
    %41 = vector.load %arg9[%c0_24, %c258] : memref<32x768xf32, #tpu.memory_space<vmem>>, vector<32x256xf32>
    %42 = tpu.concatenate %39, %40, %41 in 0 : vector<32x256xf32>, vector<32x256xf32>, vector<32x256xf32> -> vector<96x256xf32>
    %c0_25 = arith.constant 0 : index
    %c0_26 = arith.constant 0 : index
    %c0_27 = arith.constant 0 : index
    %43 = vector.load %arg3[%c0_25, %c0_26, %c0_27] : memref<13x32x96xf32, #tpu.memory_space<vmem>>, vector<1x32x96xf32>
    %44 = vector.shape_cast %43 : vector<1x32x96xf32> to vector<32x96xf32>
    %cst_28 = arith.constant dense<0.000000e+00> : vector<32x256xf32>
    %45 = tpu.matmul %44, %42, %cst_28 {dimension_numbers = #tpu.dot_dimension_numbers<[1], [0], [0], [1], [0, 0, 1, 1], [], []>} : vector<32x96xf32>, vector<96x256xf32>, vector<32x256xf32> -> vector<32x256xf32>
    %c1_29 = arith.constant 1 : index
    %c0_30 = arith.constant 0 : index
    %c0_31 = arith.constant 0 : index
    %46 = vector.load %arg4[%c1_29, %c0_30, %c0_31] : memref<14x32x1xf32, #tpu.memory_space<vmem>>, vector<1x32x1xf32>
    %47 = vector.shape_cast %46 : vector<1x32x1xf32> to vector<32x1xf32>
    %48 = vector.broadcast %47 : vector<32x1xf32> to vector<32x256xf32>
    %49 = arith.mulf %45, %48 : vector<32x256xf32>
    %c1_32 = arith.constant 1 : index
    %c0_33 = arith.constant 0 : index
    %c0_34 = arith.constant 0 : index
    %50 = vector.load %arg5[%c1_32, %c0_33, %c0_34] : memref<14x32x1xf32, #tpu.memory_space<vmem>>, vector<1x32x1xf32>
    %51 = vector.shape_cast %50 : vector<1x32x1xf32> to vector<32x1xf32>
    %52 = vector.broadcast %51 : vector<32x1xf32> to vector<32x256xf32>
    %53 = arith.addf %49, %52 : vector<32x256xf32>
    %cst_35 = arith.constant 0.000000e+00 : f32
    %54 = vector.broadcast %cst_35 : f32 to vector<32x256xf32>
    %55 = arith.cmpf oge, %53, %54 : vector<32x256xf32>
    %cst_36 = arith.constant 0.00999999977 : f32
    %56 = vector.broadcast %cst_36 : f32 to vector<32x256xf32>
    %57 = arith.mulf %56, %53 : vector<32x256xf32>
    %58 = arith.select %55, %53, %57 : vector<32x256xi1>, vector<32x256xf32>
    %c0_37 = arith.constant 0 : index
    %c256_38 = arith.constant 256 : index
    %59 = vector.load %arg9[%c0_37, %c256_38] : memref<32x768xf32, #tpu.memory_space<vmem>>, vector<32x256xf32>
    tpu.vector_store %arg9[%c0_37, %c256_38], %58 {strides = array<i32>} : memref<32x768xf32, #tpu.memory_space<vmem>>, vector<32x256xf32>,
    %c0_39 = arith.constant 0 : index
    %c252 = arith.constant 252 : index
    %60 = vector.load %arg9[%c0_39, %c252] : memref<32x768xf32, #tpu.memory_space<vmem>>, vector<32x256xf32>
    %c0_40 = arith.constant 0 : index
    %c256_41 = arith.constant 256 : index
    %61 = vector.load %arg9[%c0_40, %c256_41] : memref<32x768xf32, #tpu.memory_space<vmem>>, vector<32x256xf32>
    %c0_42 = arith.constant 0 : index
    %c260 = arith.constant 260 : index
    %62 = vector.load %arg9[%c0_42, %c260] : memref<32x768xf32, #tpu.memory_space<vmem>>, vector<32x256xf32>
    %63 = tpu.concatenate %60, %61, %62 in 0 : vector<32x256xf32>, vector<32x256xf32>, vector<32x256xf32> -> vector<96x256xf32>
    %c1_43 = arith.constant 1 : index
    %c0_44 = arith.constant 0 : index
    %c0_45 = arith.constant 0 : index
    %64 = vector.load %arg3[%c1_43, %c0_44, %c0_45] : memref<13x32x96xf32, #tpu.memory_space<vmem>>, vector<1x32x96xf32>
    %65 = vector.shape_cast %64 : vector<1x32x96xf32> to vector<32x96xf32>
    %cst_46 = arith.constant dense<0.000000e+00> : vector<32x256xf32>
    %66 = tpu.matmul %65, %63, %cst_46 {dimension_numbers = #tpu.dot_dimension_numbers<[1], [0], [0], [1], [0, 0, 1, 1], [], []>} : vector<32x96xf32>, vector<96x256xf32>, vector<32x256xf32> -> vector<32x256xf32>
    %c2_47 = arith.constant 2 : index
    %c0_48 = arith.constant 0 : index
    %c0_49 = arith.constant 0 : index
    %67 = vector.load %arg4[%c2_47, %c0_48, %c0_49] : memref<14x32x1xf32, #tpu.memory_space<vmem>>, vector<1x32x1xf32>
    %68 = vector.shape_cast %67 : vector<1x32x1xf32> to vector<32x1xf32>
    %69 = vector.broadcast %68 : vector<32x1xf32> to vector<32x256xf32>
    %70 = arith.mulf %66, %69 : vector<32x256xf32>
    %c2_50 = arith.constant 2 : index
    %c0_51 = arith.constant 0 : index
    %c0_52 = arith.constant 0 : index
    %71 = vector.load %arg5[%c2_50, %c0_51, %c0_52] : memref<14x32x1xf32, #tpu.memory_space<vmem>>, vector<1x32x1xf32>
    %72 = vector.shape_cast %71 : vector<1x32x1xf32> to vector<32x1xf32>
    %73 = vector.broadcast %72 : vector<32x1xf32> to vector<32x256xf32>
    %74 = arith.addf %70, %73 : vector<32x256xf32>
    %cst_53 = arith.constant 0.000000e+00 : f32
    %75 = vector.broadcast %cst_53 : f32 to vector<32x256xf32>
    %76 = arith.cmpf oge, %74, %75 : vector<32x256xf32>
    %cst_54 = arith.constant 0.00999999977 : f32
    %77 = vector.broadcast %cst_54 : f32 to vector<32x256xf32>
    %78 = arith.mulf %77, %74 : vector<32x256xf32>
    %79 = arith.select %76, %74, %78 : vector<32x256xi1>, vector<32x256xf32>
    %c0_55 = arith.constant 0 : index
    %c256_56 = arith.constant 256 : index
    %80 = vector.load %arg9[%c0_55, %c256_56] : memref<32x768xf32, #tpu.memory_space<vmem>>, vector<32x256xf32>
    tpu.vector_store %arg9[%c0_55, %c256_56], %79 {strides = array<i32>} : memref<32x768xf32, #tpu.memory_space<vmem>>, vector<32x256xf32>,
    %c0_57 = arith.constant 0 : index
    %c248 = arith.constant 248 : index
    %81 = vector.load %arg9[%c0_57, %c248] : memref<32x768xf32, #tpu.memory_space<vmem>>, vector<32x256xf32>
    %c0_58 = arith.constant 0 : index
    %c256_59 = arith.constant 256 : index
    %82 = vector.load %arg9[%c0_58, %c256_59] : memref<32x768xf32, #tpu.memory_space<vmem>>, vector<32x256xf32>
    %c0_60 = arith.constant 0 : index
    %c264 = arith.constant 264 : index
    %83 = vector.load %arg9[%c0_60, %c264] : memref<32x768xf32, #tpu.memory_space<vmem>>, vector<32x256xf32>
    %84 = tpu.concatenate %81, %82, %83 in 0 : vector<32x256xf32>, vector<32x256xf32>, vector<32x256xf32> -> vector<96x256xf32>
    %c2_61 = arith.constant 2 : index
    %c0_62 = arith.constant 0 : index
    %c0_63 = arith.constant 0 : index
    %85 = vector.load %arg3[%c2_61, %c0_62, %c0_63] : memref<13x32x96xf32, #tpu.memory_space<vmem>>, vector<1x32x96xf32>
    %86 = vector.shape_cast %85 : vector<1x32x96xf32> to vector<32x96xf32>
    %cst_64 = arith.constant dense<0.000000e+00> : vector<32x256xf32>
    %87 = tpu.matmul %86, %84, %cst_64 {dimension_numbers = #tpu.dot_dimension_numbers<[1], [0], [0], [1], [0, 0, 1, 1], [], []>} : vector<32x96xf32>, vector<96x256xf32>, vector<32x256xf32> -> vector<32x256xf32>
    %c3 = arith.constant 3 : index
    %c0_65 = arith.constant 0 : index
    %c0_66 = arith.constant 0 : index
    %88 = vector.load %arg4[%c3, %c0_65, %c0_66] : memref<14x32x1xf32, #tpu.memory_space<vmem>>, vector<1x32x1xf32>
    %89 = vector.shape_cast %88 : vector<1x32x1xf32> to vector<32x1xf32>
    %90 = vector.broadcast %89 : vector<32x1xf32> to vector<32x256xf32>
    %91 = arith.mulf %87, %90 : vector<32x256xf32>
    %c3_67 = arith.constant 3 : index
    %c0_68 = arith.constant 0 : index
    %c0_69 = arith.constant 0 : index
    %92 = vector.load %arg5[%c3_67, %c0_68, %c0_69] : memref<14x32x1xf32, #tpu.memory_space<vmem>>, vector<1x32x1xf32>
    %93 = vector.shape_cast %92 : vector<1x32x1xf32> to vector<32x1xf32>
    %94 = vector.broadcast %93 : vector<32x1xf32> to vector<32x256xf32>
    %95 = arith.addf %91, %94 : vector<32x256xf32>
    %cst_70 = arith.constant 0.000000e+00 : f32
    %96 = vector.broadcast %cst_70 : f32 to vector<32x256xf32>
    %97 = arith.cmpf oge, %95, %96 : vector<32x256xf32>
    %cst_71 = arith.constant 0.00999999977 : f32
    %98 = vector.broadcast %cst_71 : f32 to vector<32x256xf32>
    %99 = arith.mulf %98, %95 : vector<32x256xf32>
    %100 = arith.select %97, %95, %99 : vector<32x256xi1>, vector<32x256xf32>
    %c0_72 = arith.constant 0 : index
    %c256_73 = arith.constant 256 : index
    %101 = vector.load %arg9[%c0_72, %c256_73] : memref<32x768xf32, #tpu.memory_space<vmem>>, vector<32x256xf32>
    tpu.vector_store %arg9[%c0_72, %c256_73], %100 {strides = array<i32>} : memref<32x768xf32, #tpu.memory_space<vmem>>, vector<32x256xf32>,
    %c0_74 = arith.constant 0 : index
    %c240 = arith.constant 240 : index
    %102 = vector.load %arg9[%c0_74, %c240] : memref<32x768xf32, #tpu.memory_space<vmem>>, vector<32x256xf32>
    %c0_75 = arith.constant 0 : index
    %c256_76 = arith.constant 256 : index
    %103 = vector.load %arg9[%c0_75, %c256_76] : memref<32x768xf32, #tpu.memory_space<vmem>>, vector<32x256xf32>
    %c0_77 = arith.constant 0 : index
    %c272 = arith.constant 272 : index
    %104 = vector.load %arg9[%c0_77, %c272] : memref<32x768xf32, #tpu.memory_space<vmem>>, vector<32x256xf32>
    %105 = tpu.concatenate %102, %103, %104 in 0 : vector<32x256xf32>, vector<32x256xf32>, vector<32x256xf32> -> vector<96x256xf32>
    %c3_78 = arith.constant 3 : index
    %c0_79 = arith.constant 0 : index
    %c0_80 = arith.constant 0 : index
    %106 = vector.load %arg3[%c3_78, %c0_79, %c0_80] : memref<13x32x96xf32, #tpu.memory_space<vmem>>, vector<1x32x96xf32>
    %107 = vector.shape_cast %106 : vector<1x32x96xf32> to vector<32x96xf32>
    %cst_81 = arith.constant dense<0.000000e+00> : vector<32x256xf32>
    %108 = tpu.matmul %107, %105, %cst_81 {dimension_numbers = #tpu.dot_dimension_numbers<[1], [0], [0], [1], [0, 0, 1, 1], [], []>} : vector<32x96xf32>, vector<96x256xf32>, vector<32x256xf32> -> vector<32x256xf32>
    %c4 = arith.constant 4 : index
    %c0_82 = arith.constant 0 : index
    %c0_83 = arith.constant 0 : index
    %109 = vector.load %arg4[%c4, %c0_82, %c0_83] : memref<14x32x1xf32, #tpu.memory_space<vmem>>, vector<1x32x1xf32>
    %110 = vector.shape_cast %109 : vector<1x32x1xf32> to vector<32x1xf32>
    %111 = vector.broadcast %110 : vector<32x1xf32> to vector<32x256xf32>
    %112 = arith.mulf %108, %111 : vector<32x256xf32>
    %c4_84 = arith.constant 4 : index
    %c0_85 = arith.constant 0 : index
    %c0_86 = arith.constant 0 : index
    %113 = vector.load %arg5[%c4_84, %c0_85, %c0_86] : memref<14x32x1xf32, #tpu.memory_space<vmem>>, vector<1x32x1xf32>
    %114 = vector.shape_cast %113 : vector<1x32x1xf32> to vector<32x1xf32>
    %115 = vector.broadcast %114 : vector<32x1xf32> to vector<32x256xf32>
    %116 = arith.addf %112, %115 : vector<32x256xf32>
    %cst_87 = arith.constant 0.000000e+00 : f32
    %117 = vector.broadcast %cst_87 : f32 to vector<32x256xf32>
    %118 = arith.cmpf oge, %116, %117 : vector<32x256xf32>
    %cst_88 = arith.constant 0.00999999977 : f32
    %119 = vector.broadcast %cst_88 : f32 to vector<32x256xf32>
    %120 = arith.mulf %119, %116 : vector<32x256xf32>
    %121 = arith.select %118, %116, %120 : vector<32x256xi1>, vector<32x256xf32>
    %c0_89 = arith.constant 0 : index
    %c256_90 = arith.constant 256 : index
    %122 = vector.load %arg9[%c0_89, %c256_90] : memref<32x768xf32, #tpu.memory_space<vmem>>, vector<32x256xf32>
    tpu.vector_store %arg9[%c0_89, %c256_90], %121 {strides = array<i32>} : memref<32x768xf32, #tpu.memory_space<vmem>>, vector<32x256xf32>,
    %c0_91 = arith.constant 0 : index
    %c224 = arith.constant 224 : index
    %123 = vector.load %arg9[%c0_91, %c224] : memref<32x768xf32, #tpu.memory_space<vmem>>, vector<32x256xf32>
    %c0_92 = arith.constant 0 : index
    %c256_93 = arith.constant 256 : index
    %124 = vector.load %arg9[%c0_92, %c256_93] : memref<32x768xf32, #tpu.memory_space<vmem>>, vector<32x256xf32>
    %c0_94 = arith.constant 0 : index
    %c288 = arith.constant 288 : index
    %125 = vector.load %arg9[%c0_94, %c288] : memref<32x768xf32, #tpu.memory_space<vmem>>, vector<32x256xf32>
    %126 = tpu.concatenate %123, %124, %125 in 0 : vector<32x256xf32>, vector<32x256xf32>, vector<32x256xf32> -> vector<96x256xf32>
    %c4_95 = arith.constant 4 : index
    %c0_96 = arith.constant 0 : index
    %c0_97 = arith.constant 0 : index
    %127 = vector.load %arg3[%c4_95, %c0_96, %c0_97] : memref<13x32x96xf32, #tpu.memory_space<vmem>>, vector<1x32x96xf32>
    %128 = vector.shape_cast %127 : vector<1x32x96xf32> to vector<32x96xf32>
    %cst_98 = arith.constant dense<0.000000e+00> : vector<32x256xf32>
    %129 = tpu.matmul %128, %126, %cst_98 {dimension_numbers = #tpu.dot_dimension_numbers<[1], [0], [0], [1], [0, 0, 1, 1], [], []>} : vector<32x96xf32>, vector<96x256xf32>, vector<32x256xf32> -> vector<32x256xf32>
    %c5 = arith.constant 5 : index
    %c0_99 = arith.constant 0 : index
    %c0_100 = arith.constant 0 : index
    %130 = vector.load %arg4[%c5, %c0_99, %c0_100] : memref<14x32x1xf32, #tpu.memory_space<vmem>>, vector<1x32x1xf32>
    %131 = vector.shape_cast %130 : vector<1x32x1xf32> to vector<32x1xf32>
    %132 = vector.broadcast %131 : vector<32x1xf32> to vector<32x256xf32>
    %133 = arith.mulf %129, %132 : vector<32x256xf32>
    %c5_101 = arith.constant 5 : index
    %c0_102 = arith.constant 0 : index
    %c0_103 = arith.constant 0 : index
    %134 = vector.load %arg5[%c5_101, %c0_102, %c0_103] : memref<14x32x1xf32, #tpu.memory_space<vmem>>, vector<1x32x1xf32>
    %135 = vector.shape_cast %134 : vector<1x32x1xf32> to vector<32x1xf32>
    %136 = vector.broadcast %135 : vector<32x1xf32> to vector<32x256xf32>
    %137 = arith.addf %133, %136 : vector<32x256xf32>
    %cst_104 = arith.constant 0.000000e+00 : f32
    %138 = vector.broadcast %cst_104 : f32 to vector<32x256xf32>
    %139 = arith.cmpf oge, %137, %138 : vector<32x256xf32>
    %cst_105 = arith.constant 0.00999999977 : f32
    %140 = vector.broadcast %cst_105 : f32 to vector<32x256xf32>
    %141 = arith.mulf %140, %137 : vector<32x256xf32>
    %142 = arith.select %139, %137, %141 : vector<32x256xi1>, vector<32x256xf32>
    %c0_106 = arith.constant 0 : index
    %c256_107 = arith.constant 256 : index
    %143 = vector.load %arg9[%c0_106, %c256_107] : memref<32x768xf32, #tpu.memory_space<vmem>>, vector<32x256xf32>
    tpu.vector_store %arg9[%c0_106, %c256_107], %142 {strides = array<i32>} : memref<32x768xf32, #tpu.memory_space<vmem>>, vector<32x256xf32>,
    %c0_108 = arith.constant 0 : index
    %c192 = arith.constant 192 : index
    %144 = vector.load %arg9[%c0_108, %c192] : memref<32x768xf32, #tpu.memory_space<vmem>>, vector<32x256xf32>
    %c0_109 = arith.constant 0 : index
    %c256_110 = arith.constant 256 : index
    %145 = vector.load %arg9[%c0_109, %c256_110] : memref<32x768xf32, #tpu.memory_space<vmem>>, vector<32x256xf32>
    %c0_111 = arith.constant 0 : index
    %c320 = arith.constant 320 : index
    %146 = vector.load %arg9[%c0_111, %c320] : memref<32x768xf32, #tpu.memory_space<vmem>>, vector<32x256xf32>
    %147 = tpu.concatenate %144, %145, %146 in 0 : vector<32x256xf32>, vector<32x256xf32>, vector<32x256xf32> -> vector<96x256xf32>
    %c5_112 = arith.constant 5 : index
    %c0_113 = arith.constant 0 : index
    %c0_114 = arith.constant 0 : index
    %148 = vector.load %arg3[%c5_112, %c0_113, %c0_114] : memref<13x32x96xf32, #tpu.memory_space<vmem>>, vector<1x32x96xf32>
    %149 = vector.shape_cast %148 : vector<1x32x96xf32> to vector<32x96xf32>
    %cst_115 = arith.constant dense<0.000000e+00> : vector<32x256xf32>
    %150 = tpu.matmul %149, %147, %cst_115 {dimension_numbers = #tpu.dot_dimension_numbers<[1], [0], [0], [1], [0, 0, 1, 1], [], []>} : vector<32x96xf32>, vector<96x256xf32>, vector<32x256xf32> -> vector<32x256xf32>
    %c6 = arith.constant 6 : index
    %c0_116 = arith.constant 0 : index
    %c0_117 = arith.constant 0 : index
    %151 = vector.load %arg4[%c6, %c0_116, %c0_117] : memref<14x32x1xf32, #tpu.memory_space<vmem>>, vector<1x32x1xf32>
    %152 = vector.shape_cast %151 : vector<1x32x1xf32> to vector<32x1xf32>
    %153 = vector.broadcast %152 : vector<32x1xf32> to vector<32x256xf32>
    %154 = arith.mulf %150, %153 : vector<32x256xf32>
    %c6_118 = arith.constant 6 : index
    %c0_119 = arith.constant 0 : index
    %c0_120 = arith.constant 0 : index
    %155 = vector.load %arg5[%c6_118, %c0_119, %c0_120] : memref<14x32x1xf32, #tpu.memory_space<vmem>>, vector<1x32x1xf32>
    %156 = vector.shape_cast %155 : vector<1x32x1xf32> to vector<32x1xf32>
    %157 = vector.broadcast %156 : vector<32x1xf32> to vector<32x256xf32>
    %158 = arith.addf %154, %157 : vector<32x256xf32>
    %cst_121 = arith.constant 0.000000e+00 : f32
    %159 = vector.broadcast %cst_121 : f32 to vector<32x256xf32>
    %160 = arith.cmpf oge, %158, %159 : vector<32x256xf32>
    %cst_122 = arith.constant 0.00999999977 : f32
    %161 = vector.broadcast %cst_122 : f32 to vector<32x256xf32>
    %162 = arith.mulf %161, %158 : vector<32x256xf32>
    %163 = arith.select %160, %158, %162 : vector<32x256xi1>, vector<32x256xf32>
    %c0_123 = arith.constant 0 : index
    %c256_124 = arith.constant 256 : index
    %164 = vector.load %arg9[%c0_123, %c256_124] : memref<32x768xf32, #tpu.memory_space<vmem>>, vector<32x256xf32>
    tpu.vector_store %arg9[%c0_123, %c256_124], %163 {strides = array<i32>} : memref<32x768xf32, #tpu.memory_space<vmem>>, vector<32x256xf32>,
    %c0_125 = arith.constant 0 : index
    %c128 = arith.constant 128 : index
    %165 = vector.load %arg9[%c0_125, %c128] : memref<32x768xf32, #tpu.memory_space<vmem>>, vector<32x256xf32>
    %c0_126 = arith.constant 0 : index
    %c256_127 = arith.constant 256 : index
    %166 = vector.load %arg9[%c0_126, %c256_127] : memref<32x768xf32, #tpu.memory_space<vmem>>, vector<32x256xf32>
    %c0_128 = arith.constant 0 : index
    %c384 = arith.constant 384 : index
    %167 = vector.load %arg9[%c0_128, %c384] : memref<32x768xf32, #tpu.memory_space<vmem>>, vector<32x256xf32>
    %168 = tpu.concatenate %165, %166, %167 in 0 : vector<32x256xf32>, vector<32x256xf32>, vector<32x256xf32> -> vector<96x256xf32>
    %c6_129 = arith.constant 6 : index
    %c0_130 = arith.constant 0 : index
    %c0_131 = arith.constant 0 : index
    %169 = vector.load %arg3[%c6_129, %c0_130, %c0_131] : memref<13x32x96xf32, #tpu.memory_space<vmem>>, vector<1x32x96xf32>
    %170 = vector.shape_cast %169 : vector<1x32x96xf32> to vector<32x96xf32>
    %cst_132 = arith.constant dense<0.000000e+00> : vector<32x256xf32>
    %171 = tpu.matmul %170, %168, %cst_132 {dimension_numbers = #tpu.dot_dimension_numbers<[1], [0], [0], [1], [0, 0, 1, 1], [], []>} : vector<32x96xf32>, vector<96x256xf32>, vector<32x256xf32> -> vector<32x256xf32>
    %c7 = arith.constant 7 : index
    %c0_133 = arith.constant 0 : index
    %c0_134 = arith.constant 0 : index
    %172 = vector.load %arg4[%c7, %c0_133, %c0_134] : memref<14x32x1xf32, #tpu.memory_space<vmem>>, vector<1x32x1xf32>
    %173 = vector.shape_cast %172 : vector<1x32x1xf32> to vector<32x1xf32>
    %174 = vector.broadcast %173 : vector<32x1xf32> to vector<32x256xf32>
    %175 = arith.mulf %171, %174 : vector<32x256xf32>
    %c7_135 = arith.constant 7 : index
    %c0_136 = arith.constant 0 : index
    %c0_137 = arith.constant 0 : index
    %176 = vector.load %arg5[%c7_135, %c0_136, %c0_137] : memref<14x32x1xf32, #tpu.memory_space<vmem>>, vector<1x32x1xf32>
    %177 = vector.shape_cast %176 : vector<1x32x1xf32> to vector<32x1xf32>
    %178 = vector.broadcast %177 : vector<32x1xf32> to vector<32x256xf32>
    %179 = arith.addf %175, %178 : vector<32x256xf32>
    %cst_138 = arith.constant 0.000000e+00 : f32
    %180 = vector.broadcast %cst_138 : f32 to vector<32x256xf32>
    %181 = arith.cmpf oge, %179, %180 : vector<32x256xf32>
    %cst_139 = arith.constant 0.00999999977 : f32
    %182 = vector.broadcast %cst_139 : f32 to vector<32x256xf32>
    %183 = arith.mulf %182, %179 : vector<32x256xf32>
    %184 = arith.select %181, %179, %183 : vector<32x256xi1>, vector<32x256xf32>
    %c0_140 = arith.constant 0 : index
    %c256_141 = arith.constant 256 : index
    %185 = vector.load %arg9[%c0_140, %c256_141] : memref<32x768xf32, #tpu.memory_space<vmem>>, vector<32x256xf32>
    tpu.vector_store %arg9[%c0_140, %c256_141], %184 {strides = array<i32>} : memref<32x768xf32, #tpu.memory_space<vmem>>, vector<32x256xf32>,
    %c0_142 = arith.constant 0 : index
    %c0_143 = arith.constant 0 : index
    %186 = vector.load %arg9[%c0_142, %c0_143] : memref<32x768xf32, #tpu.memory_space<vmem>>, vector<32x256xf32>
    %c0_144 = arith.constant 0 : index
    %c256_145 = arith.constant 256 : index
    %187 = vector.load %arg9[%c0_144, %c256_145] : memref<32x768xf32, #tpu.memory_space<vmem>>, vector<32x256xf32>
    %c0_146 = arith.constant 0 : index
    %c512_147 = arith.constant 512 : index
    %188 = vector.load %arg9[%c0_146, %c512_147] : memref<32x768xf32, #tpu.memory_space<vmem>>, vector<32x256xf32>
    %189 = tpu.concatenate %186, %187, %188 in 0 : vector<32x256xf32>, vector<32x256xf32>, vector<32x256xf32> -> vector<96x256xf32>
    %c7_148 = arith.constant 7 : index
    %c0_149 = arith.constant 0 : index
    %c0_150 = arith.constant 0 : index
    %190 = vector.load %arg3[%c7_148, %c0_149, %c0_150] : memref<13x32x96xf32, #tpu.memory_space<vmem>>, vector<1x32x96xf32>
    %191 = vector.shape_cast %190 : vector<1x32x96xf32> to vector<32x96xf32>
    %cst_151 = arith.constant dense<0.000000e+00> : vector<32x256xf32>
    %192 = tpu.matmul %191, %189, %cst_151 {dimension_numbers = #tpu.dot_dimension_numbers<[1], [0], [0], [1], [0, 0, 1, 1], [], []>} : vector<32x96xf32>, vector<96x256xf32>, vector<32x256xf32> -> vector<32x256xf32>
    %c8 = arith.constant 8 : index
    %c0_152 = arith.constant 0 : index
    %c0_153 = arith.constant 0 : index
    %193 = vector.load %arg4[%c8, %c0_152, %c0_153] : memref<14x32x1xf32, #tpu.memory_space<vmem>>, vector<1x32x1xf32>
    %194 = vector.shape_cast %193 : vector<1x32x1xf32> to vector<32x1xf32>
    %195 = vector.broadcast %194 : vector<32x1xf32> to vector<32x256xf32>
    %196 = arith.mulf %192, %195 : vector<32x256xf32>
    %c8_154 = arith.constant 8 : index
    %c0_155 = arith.constant 0 : index
    %c0_156 = arith.constant 0 : index
    %197 = vector.load %arg5[%c8_154, %c0_155, %c0_156] : memref<14x32x1xf32, #tpu.memory_space<vmem>>, vector<1x32x1xf32>
    %198 = vector.shape_cast %197 : vector<1x32x1xf32> to vector<32x1xf32>
    %199 = vector.broadcast %198 : vector<32x1xf32> to vector<32x256xf32>
    %200 = arith.addf %196, %199 : vector<32x256xf32>
    %cst_157 = arith.constant 0.000000e+00 : f32
    %201 = vector.broadcast %cst_157 : f32 to vector<32x256xf32>
    %202 = arith.cmpf oge, %200, %201 : vector<32x256xf32>
    %cst_158 = arith.constant 0.00999999977 : f32
    %203 = vector.broadcast %cst_158 : f32 to vector<32x256xf32>
    %204 = arith.mulf %203, %200 : vector<32x256xf32>
    %205 = arith.select %202, %200, %204 : vector<32x256xi1>, vector<32x256xf32>
    %c0_159 = arith.constant 0 : index
    %c256_160 = arith.constant 256 : index
    %206 = vector.load %arg9[%c0_159, %c256_160] : memref<32x768xf32, #tpu.memory_space<vmem>>, vector<32x256xf32>
    tpu.vector_store %arg9[%c0_159, %c256_160], %205 {strides = array<i32>} : memref<32x768xf32, #tpu.memory_space<vmem>>, vector<32x256xf32>,
    %c0_161 = arith.constant 0 : index
    %c0_162 = arith.constant 0 : index
    %207 = vector.load %arg9[%c0_161, %c0_162] : memref<32x768xf32, #tpu.memory_space<vmem>>, vector<32x256xf32>
    %c0_163 = arith.constant 0 : index
    %c256_164 = arith.constant 256 : index
    %208 = vector.load %arg9[%c0_163, %c256_164] : memref<32x768xf32, #tpu.memory_space<vmem>>, vector<32x256xf32>
    %c0_165 = arith.constant 0 : index
    %c512_166 = arith.constant 512 : index
    %209 = vector.load %arg9[%c0_165, %c512_166] : memref<32x768xf32, #tpu.memory_space<vmem>>, vector<32x256xf32>
    %210 = tpu.concatenate %207, %208, %209 in 0 : vector<32x256xf32>, vector<32x256xf32>, vector<32x256xf32> -> vector<96x256xf32>
    %c8_167 = arith.constant 8 : index
    %c0_168 = arith.constant 0 : index
    %c0_169 = arith.constant 0 : index
    %211 = vector.load %arg3[%c8_167, %c0_168, %c0_169] : memref<13x32x96xf32, #tpu.memory_space<vmem>>, vector<1x32x96xf32>
    %212 = vector.shape_cast %211 : vector<1x32x96xf32> to vector<32x96xf32>
    %cst_170 = arith.constant dense<0.000000e+00> : vector<32x256xf32>
    %213 = tpu.matmul %212, %210, %cst_170 {dimension_numbers = #tpu.dot_dimension_numbers<[1], [0], [0], [1], [0, 0, 1, 1], [], []>} : vector<32x96xf32>, vector<96x256xf32>, vector<32x256xf32> -> vector<32x256xf32>
    %c9 = arith.constant 9 : index
    %c0_171 = arith.constant 0 : index
    %c0_172 = arith.constant 0 : index
    %214 = vector.load %arg4[%c9, %c0_171, %c0_172] : memref<14x32x1xf32, #tpu.memory_space<vmem>>, vector<1x32x1xf32>
    %215 = vector.shape_cast %214 : vector<1x32x1xf32> to vector<32x1xf32>
    %216 = vector.broadcast %215 : vector<32x1xf32> to vector<32x256xf32>
    %217 = arith.mulf %213, %216 : vector<32x256xf32>
    %c9_173 = arith.constant 9 : index
    %c0_174 = arith.constant 0 : index
    %c0_175 = arith.constant 0 : index
    %218 = vector.load %arg5[%c9_173, %c0_174, %c0_175] : memref<14x32x1xf32, #tpu.memory_space<vmem>>, vector<1x32x1xf32>
    %219 = vector.shape_cast %218 : vector<1x32x1xf32> to vector<32x1xf32>
    %220 = vector.broadcast %219 : vector<32x1xf32> to vector<32x256xf32>
    %221 = arith.addf %217, %220 : vector<32x256xf32>
    %cst_176 = arith.constant 0.000000e+00 : f32
    %222 = vector.broadcast %cst_176 : f32 to vector<32x256xf32>
    %223 = arith.cmpf oge, %221, %222 : vector<32x256xf32>
    %cst_177 = arith.constant 0.00999999977 : f32
    %224 = vector.broadcast %cst_177 : f32 to vector<32x256xf32>
    %225 = arith.mulf %224, %221 : vector<32x256xf32>
    %226 = arith.select %223, %221, %225 : vector<32x256xi1>, vector<32x256xf32>
    %c0_178 = arith.constant 0 : index
    %c256_179 = arith.constant 256 : index
    %227 = vector.load %arg9[%c0_178, %c256_179] : memref<32x768xf32, #tpu.memory_space<vmem>>, vector<32x256xf32>
    tpu.vector_store %arg9[%c0_178, %c256_179], %226 {strides = array<i32>} : memref<32x768xf32, #tpu.memory_space<vmem>>, vector<32x256xf32>,
    %c0_180 = arith.constant 0 : index
    %c0_181 = arith.constant 0 : index
    %228 = vector.load %arg9[%c0_180, %c0_181] : memref<32x768xf32, #tpu.memory_space<vmem>>, vector<32x256xf32>
    %c0_182 = arith.constant 0 : index
    %c256_183 = arith.constant 256 : index
    %229 = vector.load %arg9[%c0_182, %c256_183] : memref<32x768xf32, #tpu.memory_space<vmem>>, vector<32x256xf32>
    %c0_184 = arith.constant 0 : index
    %c512_185 = arith.constant 512 : index
    %230 = vector.load %arg9[%c0_184, %c512_185] : memref<32x768xf32, #tpu.memory_space<vmem>>, vector<32x256xf32>
    %231 = tpu.concatenate %228, %229, %230 in 0 : vector<32x256xf32>, vector<32x256xf32>, vector<32x256xf32> -> vector<96x256xf32>
    %c9_186 = arith.constant 9 : index
    %c0_187 = arith.constant 0 : index
    %c0_188 = arith.constant 0 : index
    %232 = vector.load %arg3[%c9_186, %c0_187, %c0_188] : memref<13x32x96xf32, #tpu.memory_space<vmem>>, vector<1x32x96xf32>
    %233 = vector.shape_cast %232 : vector<1x32x96xf32> to vector<32x96xf32>
    %cst_189 = arith.constant dense<0.000000e+00> : vector<32x256xf32>
    %234 = tpu.matmul %233, %231, %cst_189 {dimension_numbers = #tpu.dot_dimension_numbers<[1], [0], [0], [1], [0, 0, 1, 1], [], []>} : vector<32x96xf32>, vector<96x256xf32>, vector<32x256xf32> -> vector<32x256xf32>
    %c10 = arith.constant 10 : index
    %c0_190 = arith.constant 0 : index
    %c0_191 = arith.constant 0 : index
    %235 = vector.load %arg4[%c10, %c0_190, %c0_191] : memref<14x32x1xf32, #tpu.memory_space<vmem>>, vector<1x32x1xf32>
    %236 = vector.shape_cast %235 : vector<1x32x1xf32> to vector<32x1xf32>
    %237 = vector.broadcast %236 : vector<32x1xf32> to vector<32x256xf32>
    %238 = arith.mulf %234, %237 : vector<32x256xf32>
    %c10_192 = arith.constant 10 : index
    %c0_193 = arith.constant 0 : index
    %c0_194 = arith.constant 0 : index
    %239 = vector.load %arg5[%c10_192, %c0_193, %c0_194] : memref<14x32x1xf32, #tpu.memory_space<vmem>>, vector<1x32x1xf32>
    %240 = vector.shape_cast %239 : vector<1x32x1xf32> to vector<32x1xf32>
    %241 = vector.broadcast %240 : vector<32x1xf32> to vector<32x256xf32>
    %242 = arith.addf %238, %241 : vector<32x256xf32>
    %cst_195 = arith.constant 0.000000e+00 : f32
    %243 = vector.broadcast %cst_195 : f32 to vector<32x256xf32>
    %244 = arith.cmpf oge, %242, %243 : vector<32x256xf32>
    %cst_196 = arith.constant 0.00999999977 : f32
    %245 = vector.broadcast %cst_196 : f32 to vector<32x256xf32>
    %246 = arith.mulf %245, %242 : vector<32x256xf32>
    %247 = arith.select %244, %242, %246 : vector<32x256xi1>, vector<32x256xf32>
    %c0_197 = arith.constant 0 : index
    %c256_198 = arith.constant 256 : index
    %248 = vector.load %arg9[%c0_197, %c256_198] : memref<32x768xf32, #tpu.memory_space<vmem>>, vector<32x256xf32>
    tpu.vector_store %arg9[%c0_197, %c256_198], %247 {strides = array<i32>} : memref<32x768xf32, #tpu.memory_space<vmem>>, vector<32x256xf32>,
    %c0_199 = arith.constant 0 : index
    %c0_200 = arith.constant 0 : index
    %249 = vector.load %arg9[%c0_199, %c0_200] : memref<32x768xf32, #tpu.memory_space<vmem>>, vector<32x256xf32>
    %c0_201 = arith.constant 0 : index
    %c256_202 = arith.constant 256 : index
    %250 = vector.load %arg9[%c0_201, %c256_202] : memref<32x768xf32, #tpu.memory_space<vmem>>, vector<32x256xf32>
    %c0_203 = arith.constant 0 : index
    %c512_204 = arith.constant 512 : index
    %251 = vector.load %arg9[%c0_203, %c512_204] : memref<32x768xf32, #tpu.memory_space<vmem>>, vector<32x256xf32>
    %252 = tpu.concatenate %249, %250, %251 in 0 : vector<32x256xf32>, vector<32x256xf32>, vector<32x256xf32> -> vector<96x256xf32>
    %c10_205 = arith.constant 10 : index
    %c0_206 = arith.constant 0 : index
    %c0_207 = arith.constant 0 : index
    %253 = vector.load %arg3[%c10_205, %c0_206, %c0_207] : memref<13x32x96xf32, #tpu.memory_space<vmem>>, vector<1x32x96xf32>
    %254 = vector.shape_cast %253 : vector<1x32x96xf32> to vector<32x96xf32>
    %cst_208 = arith.constant dense<0.000000e+00> : vector<32x256xf32>
    %255 = tpu.matmul %254, %252, %cst_208 {dimension_numbers = #tpu.dot_dimension_numbers<[1], [0], [0], [1], [0, 0, 1, 1], [], []>} : vector<32x96xf32>, vector<96x256xf32>, vector<32x256xf32> -> vector<32x256xf32>
    %c11 = arith.constant 11 : index
    %c0_209 = arith.constant 0 : index
    %c0_210 = arith.constant 0 : index
    %256 = vector.load %arg4[%c11, %c0_209, %c0_210] : memref<14x32x1xf32, #tpu.memory_space<vmem>>, vector<1x32x1xf32>
    %257 = vector.shape_cast %256 : vector<1x32x1xf32> to vector<32x1xf32>
    %258 = vector.broadcast %257 : vector<32x1xf32> to vector<32x256xf32>
    %259 = arith.mulf %255, %258 : vector<32x256xf32>
    %c11_211 = arith.constant 11 : index
    %c0_212 = arith.constant 0 : index
    %c0_213 = arith.constant 0 : index
    %260 = vector.load %arg5[%c11_211, %c0_212, %c0_213] : memref<14x32x1xf32, #tpu.memory_space<vmem>>, vector<1x32x1xf32>
    %261 = vector.shape_cast %260 : vector<1x32x1xf32> to vector<32x1xf32>
    %262 = vector.broadcast %261 : vector<32x1xf32> to vector<32x256xf32>
    %263 = arith.addf %259, %262 : vector<32x256xf32>
    %cst_214 = arith.constant 0.000000e+00 : f32
    %264 = vector.broadcast %cst_214 : f32 to vector<32x256xf32>
    %265 = arith.cmpf oge, %263, %264 : vector<32x256xf32>
    %cst_215 = arith.constant 0.00999999977 : f32
    %266 = vector.broadcast %cst_215 : f32 to vector<32x256xf32>
    %267 = arith.mulf %266, %263 : vector<32x256xf32>
    %268 = arith.select %265, %263, %267 : vector<32x256xi1>, vector<32x256xf32>
    %c0_216 = arith.constant 0 : index
    %c256_217 = arith.constant 256 : index
    %269 = vector.load %arg9[%c0_216, %c256_217] : memref<32x768xf32, #tpu.memory_space<vmem>>, vector<32x256xf32>
    tpu.vector_store %arg9[%c0_216, %c256_217], %268 {strides = array<i32>} : memref<32x768xf32, #tpu.memory_space<vmem>>, vector<32x256xf32>,
    %c0_218 = arith.constant 0 : index
    %c0_219 = arith.constant 0 : index
    %270 = vector.load %arg9[%c0_218, %c0_219] : memref<32x768xf32, #tpu.memory_space<vmem>>, vector<32x256xf32>
    %c0_220 = arith.constant 0 : index
    %c256_221 = arith.constant 256 : index
    %271 = vector.load %arg9[%c0_220, %c256_221] : memref<32x768xf32, #tpu.memory_space<vmem>>, vector<32x256xf32>
    %c0_222 = arith.constant 0 : index
    %c512_223 = arith.constant 512 : index
    %272 = vector.load %arg9[%c0_222, %c512_223] : memref<32x768xf32, #tpu.memory_space<vmem>>, vector<32x256xf32>
    %273 = tpu.concatenate %270, %271, %272 in 0 : vector<32x256xf32>, vector<32x256xf32>, vector<32x256xf32> -> vector<96x256xf32>
    %c11_224 = arith.constant 11 : index
    %c0_225 = arith.constant 0 : index
    %c0_226 = arith.constant 0 : index
    %274 = vector.load %arg3[%c11_224, %c0_225, %c0_226] : memref<13x32x96xf32, #tpu.memory_space<vmem>>, vector<1x32x96xf32>
    %275 = vector.shape_cast %274 : vector<1x32x96xf32> to vector<32x96xf32>
    %cst_227 = arith.constant dense<0.000000e+00> : vector<32x256xf32>
    %276 = tpu.matmul %275, %273, %cst_227 {dimension_numbers = #tpu.dot_dimension_numbers<[1], [0], [0], [1], [0, 0, 1, 1], [], []>} : vector<32x96xf32>, vector<96x256xf32>, vector<32x256xf32> -> vector<32x256xf32>
    %c12 = arith.constant 12 : index
    %c0_228 = arith.constant 0 : index
    %c0_229 = arith.constant 0 : index
    %277 = vector.load %arg4[%c12, %c0_228, %c0_229] : memref<14x32x1xf32, #tpu.memory_space<vmem>>, vector<1x32x1xf32>
    %278 = vector.shape_cast %277 : vector<1x32x1xf32> to vector<32x1xf32>
    %279 = vector.broadcast %278 : vector<32x1xf32> to vector<32x256xf32>
    %280 = arith.mulf %276, %279 : vector<32x256xf32>
    %c12_230 = arith.constant 12 : index
    %c0_231 = arith.constant 0 : index
    %c0_232 = arith.constant 0 : index
    %281 = vector.load %arg5[%c12_230, %c0_231, %c0_232] : memref<14x32x1xf32, #tpu.memory_space<vmem>>, vector<1x32x1xf32>
    %282 = vector.shape_cast %281 : vector<1x32x1xf32> to vector<32x1xf32>
    %283 = vector.broadcast %282 : vector<32x1xf32> to vector<32x256xf32>
    %284 = arith.addf %280, %283 : vector<32x256xf32>
    %cst_233 = arith.constant 0.000000e+00 : f32
    %285 = vector.broadcast %cst_233 : f32 to vector<32x256xf32>
    %286 = arith.cmpf oge, %284, %285 : vector<32x256xf32>
    %cst_234 = arith.constant 0.00999999977 : f32
    %287 = vector.broadcast %cst_234 : f32 to vector<32x256xf32>
    %288 = arith.mulf %287, %284 : vector<32x256xf32>
    %289 = arith.select %286, %284, %288 : vector<32x256xi1>, vector<32x256xf32>
    %c0_235 = arith.constant 0 : index
    %c256_236 = arith.constant 256 : index
    %290 = vector.load %arg9[%c0_235, %c256_236] : memref<32x768xf32, #tpu.memory_space<vmem>>, vector<32x256xf32>
    tpu.vector_store %arg9[%c0_235, %c256_236], %289 {strides = array<i32>} : memref<32x768xf32, #tpu.memory_space<vmem>>, vector<32x256xf32>,
    %c0_237 = arith.constant 0 : index
    %c255 = arith.constant 255 : index
    %291 = vector.load %arg9[%c0_237, %c255] : memref<32x768xf32, #tpu.memory_space<vmem>>, vector<32x256xf32>
    %c0_238 = arith.constant 0 : index
    %c256_239 = arith.constant 256 : index
    %292 = vector.load %arg9[%c0_238, %c256_239] : memref<32x768xf32, #tpu.memory_space<vmem>>, vector<32x256xf32>
    %c0_240 = arith.constant 0 : index
    %c257 = arith.constant 257 : index
    %293 = vector.load %arg9[%c0_240, %c257] : memref<32x768xf32, #tpu.memory_space<vmem>>, vector<32x256xf32>
    %294 = tpu.concatenate %291, %292, %293 in 0 : vector<32x256xf32>, vector<32x256xf32>, vector<32x256xf32> -> vector<96x256xf32>
    %c12_241 = arith.constant 12 : index
    %c0_242 = arith.constant 0 : index
    %c0_243 = arith.constant 0 : index
    %295 = vector.load %arg3[%c12_241, %c0_242, %c0_243] : memref<13x32x96xf32, #tpu.memory_space<vmem>>, vector<1x32x96xf32>
    %296 = vector.shape_cast %295 : vector<1x32x96xf32> to vector<32x96xf32>
    %cst_244 = arith.constant dense<0.000000e+00> : vector<32x256xf32>
    %297 = tpu.matmul %296, %294, %cst_244 {dimension_numbers = #tpu.dot_dimension_numbers<[1], [0], [0], [1], [0, 0, 1, 1], [], []>} : vector<32x96xf32>, vector<96x256xf32>, vector<32x256xf32> -> vector<32x256xf32>
    %c13 = arith.constant 13 : index
    %c0_245 = arith.constant 0 : index
    %c0_246 = arith.constant 0 : index
    %298 = vector.load %arg4[%c13, %c0_245, %c0_246] : memref<14x32x1xf32, #tpu.memory_space<vmem>>, vector<1x32x1xf32>
    %299 = vector.shape_cast %298 : vector<1x32x1xf32> to vector<32x1xf32>
    %300 = vector.broadcast %299 : vector<32x1xf32> to vector<32x256xf32>
    %301 = arith.mulf %297, %300 : vector<32x256xf32>
    %c13_247 = arith.constant 13 : index
    %c0_248 = arith.constant 0 : index
    %c0_249 = arith.constant 0 : index
    %302 = vector.load %arg5[%c13_247, %c0_248, %c0_249] : memref<14x32x1xf32, #tpu.memory_space<vmem>>, vector<1x32x1xf32>
    %303 = vector.shape_cast %302 : vector<1x32x1xf32> to vector<32x1xf32>
    %304 = vector.broadcast %303 : vector<32x1xf32> to vector<32x256xf32>
    %305 = arith.addf %301, %304 : vector<32x256xf32>
    %cst_250 = arith.constant 0.000000e+00 : f32
    %306 = vector.broadcast %cst_250 : f32 to vector<32x256xf32>
    %307 = arith.cmpf oge, %305, %306 : vector<32x256xf32>
    %cst_251 = arith.constant 0.00999999977 : f32
    %308 = vector.broadcast %cst_251 : f32 to vector<32x256xf32>
    %309 = arith.mulf %308, %305 : vector<32x256xf32>
    %310 = arith.select %307, %305, %309 : vector<32x256xi1>, vector<32x256xf32>
    %c0_252 = arith.constant 0 : index
    %c256_253 = arith.constant 256 : index
    %311 = vector.load %arg9[%c0_252, %c256_253] : memref<32x768xf32, #tpu.memory_space<vmem>>, vector<32x256xf32>
    tpu.vector_store %arg9[%c0_252, %c256_253], %310 {strides = array<i32>} : memref<32x768xf32, #tpu.memory_space<vmem>>, vector<32x256xf32>,
    %c0_254 = arith.constant 0 : index
    %c256_255 = arith.constant 256 : index
    %312 = vector.load %arg9[%c0_254, %c256_255] : memref<32x768xf32, #tpu.memory_space<vmem>>, vector<32x256xf32>
    %c0_256 = arith.constant 0 : index
    %c0_257 = arith.constant 0 : index
    %313 = vector.load %arg6[%c0_256, %c0_257] : memref<1x32xf32, #tpu.memory_space<vmem>>, vector<1x32xf32>
    %cst_258 = arith.constant dense<0.000000e+00> : vector<1x256xf32>
    %314 = tpu.matmul %313, %312, %cst_258 {dimension_numbers = #tpu.dot_dimension_numbers<[1], [0], [0], [1], [0, 0, 1, 1], [], []>} : vector<1x32xf32>, vector<32x256xf32>, vector<1x256xf32> -> vector<1x256xf32>
    %c0_259 = arith.constant 0 : index
    %c0_260 = arith.constant 0 : index
    %315 = vector.load %arg7[%c0_259, %c0_260] : memref<1x1xf32, #tpu.memory_space<vmem>>, vector<1x1xf32>
    %c0_261 = arith.constant 0 : index
    %c0_262 = arith.constant 0 : index
    %c0_263 = arith.constant 0 : index
    %316 = vector.load %arg8[%c0_261, %c0_262, %c0_263] : memref<1x1x258xf32, #tpu.memory_space<vmem>>, vector<1x1x1xf32>
    %317 = vector.shape_cast %316 : vector<1x1x1xf32> to vector<1x1xf32>
    %318 = vector.shape_cast %315 : vector<1x1xf32> to vector<1x1x1xf32>
    tpu.vector_store %arg8[%c0_261, %c0_262, %c0_263], %318 {strides = array<i32>} : memref<1x1x258xf32, #tpu.memory_space<vmem>>, vector<1x1x1xf32>,
    %319 = vector.broadcast %315 : vector<1x1xf32> to vector<1x256xf32>
    %320 = arith.addf %314, %319 : vector<1x256xf32>
    %c0_264 = arith.constant 0 : index
    %c0_265 = arith.constant 0 : index
    %c1_266 = arith.constant 1 : index
    %321 = vector.load %arg8[%c0_264, %c0_265, %c1_266] : memref<1x1x258xf32, #tpu.memory_space<vmem>>, vector<1x1x256xf32>
    %322 = vector.shape_cast %321 : vector<1x1x256xf32> to vector<1x256xf32>
    %323 = vector.shape_cast %320 : vector<1x256xf32> to vector<1x1x256xf32>
    tpu.vector_store %arg8[%c0_264, %c0_265, %c1_266], %323 {strides = array<i32>} : memref<1x1x258xf32, #tpu.memory_space<vmem>>, vector<1x1x256xf32>,
    %c0_267 = arith.constant 0 : index
    %c0_268 = arith.constant 0 : index
    %c257_269 = arith.constant 257 : index
    %324 = vector.load %arg8[%c0_267, %c0_268, %c257_269] : memref<1x1x258xf32, #tpu.memory_space<vmem>>, vector<1x1x1xf32>
    %325 = vector.shape_cast %324 : vector<1x1x1xf32> to vector<1x1xf32>
    %326 = vector.shape_cast %315 : vector<1x1xf32> to vector<1x1x1xf32>
    tpu.vector_store %arg8[%c0_267, %c0_268, %c257_269], %326 {strides = array<i32>} : memref<1x1x258xf32, #tpu.memory_space<vmem>>, vector<1x1x1xf32>,
    return
  }
  func.func @transform_0(%arg0: i32) -> (i32, i32, i32) {
    %c0_i32 = arith.constant 0 : i32
    %c0_i32_0 = arith.constant 0 : i32
    %c0_i32_1 = arith.constant 0 : i32
    return %arg0, %c0_i32, %c0_i32_0 : i32, i32, i32
  }
  func.func @transform_1(%arg0: i32) -> (i32, i32, i32) {
    %c0_i32 = arith.constant 0 : i32
    %c0_i32_0 = arith.constant 0 : i32
    %c0_i32_1 = arith.constant 0 : i32
    %c0_i32_2 = arith.constant 0 : i32
    return %c0_i32, %c0_i32_0, %c0_i32_1 : i32, i32, i32
  }
  func.func @transform_2(%arg0: i32) -> (i32, i32, i32) {
    %c0_i32 = arith.constant 0 : i32
    %c0_i32_0 = arith.constant 0 : i32
    %c0_i32_1 = arith.constant 0 : i32
    %c0_i32_2 = arith.constant 0 : i32
    return %c0_i32, %c0_i32_0, %c0_i32_1 : i32, i32, i32
  }
  func.func @transform_3(%arg0: i32) -> (i32, i32, i32) {
    %c0_i32 = arith.constant 0 : i32
    %c0_i32_0 = arith.constant 0 : i32
    %c0_i32_1 = arith.constant 0 : i32
    %c0_i32_2 = arith.constant 0 : i32
    return %c0_i32, %c0_i32_0, %c0_i32_1 : i32, i32, i32
  }
  func.func @transform_4(%arg0: i32) -> (i32, i32, i32) {
    %c0_i32 = arith.constant 0 : i32
    %c0_i32_0 = arith.constant 0 : i32
    %c0_i32_1 = arith.constant 0 : i32
    %c0_i32_2 = arith.constant 0 : i32
    return %c0_i32, %c0_i32_0, %c0_i32_1 : i32, i32, i32
  }
  func.func @transform_5(%arg0: i32) -> (i32, i32) {
    %c0_i32 = arith.constant 0 : i32
    %c0_i32_0 = arith.constant 0 : i32
    %c0_i32_1 = arith.constant 0 : i32
    return %c0_i32, %c0_i32_0 : i32, i32
  }
  func.func @transform_6(%arg0: i32) -> (i32, i32) {
    %c0_i32 = arith.constant 0 : i32
    %c0_i32_0 = arith.constant 0 : i32
    %c0_i32_1 = arith.constant 0 : i32
    return %c0_i32, %c0_i32_0 : i32, i32
  }
  func.func @transform_7(%arg0: i32) -> (i32, i32, i32) {
    %c0_i32 = arith.constant 0 : i32
    %c0_i32_0 = arith.constant 0 : i32
    %c0_i32_1 = arith.constant 0 : i32
    return %arg0, %c0_i32, %c0_i32_0 : i32, i32, i32
  }
}

</mosaic_0001>

<bundles_post_ra>
// kernel: _lambda_.1
= control target key start
LH: loop header
LB: loop body
LE: loop exit
PB: predicated region body
PF: predicated region fallthrough
CT: control target
= control target key end

     0   :  { %s6953_s0 = inlined_call_operand.vmem [shape: f32[2,1,258], index: 0, kind: input, shape index: {}]   ;;  %s6954_s1 = inlined_call_operand.hbm [shape: f32[3,32,1], index: 1, kind: input, shape index: {}]   ;;  %s6955_s2 = inlined_call_operand.hbm [shape: f32[13,32,96], index: 2, kind: input, shape index: {}]   ;;  %s6956_s3 = inlined_call_operand.hbm [shape: f32[14,32,1], index: 3, kind: input, shape index: {}]   ;;  %s6957_s4 = inlined_call_operand.hbm [shape: f32[14,32,1], index: 4, kind: input, shape index: {}]   ;;  %s6958_s5 = inlined_call_operand.vmem [shape: f32[1,32], index: 5, kind: input, shape index: {}]   ;;  %s6959_s6 = inlined_call_operand.<no memory space> [shape: f32[1,1], index: 6, kind: input, shape index: {}]   ;;  %s6960_s7 = inlined_call_operand.hbm [shape: f32[2,1,258], index: 7, kind: output, shape index: {}]  }
   0x1   :  { %v12_v0 = vstv %s6959_s6 }
   0x2   :  { %13 = vst [vmem:[#allocation3] sm:$0x1] %v12_v0 }
   0x3   :  { %14 = vsyncpa [#allocation5], 0 }
   0x4   :  { %15 = vsyncpa [#allocation8], 0 }
   0x5   :  { %16 = vsyncpa [#allocation11], 0 }
   0x6   :  { %17 = vsyncpa [#allocation6], 0 }
   0x7   :  { %19 = vsyncpa [#allocation6 + $0x1], 0  ;;  %s5602_s26 = smov 0   ;;  %s5604_s27 = smov 0  }
   0x8   :  { %s5606_s28 = smov 0   ;;  %s5608_s29 = smov 0  }
   0x9 LB: > { %s5623_s6 = sadd.s32 4294967295, %s5534_s29   ;;  %s5087_s30 = sadd.s32 4294967294, %s5534_s29   ;;  %s5534_s29 = sphi %s5608_s29, %s6968_s29   ;;  %s5530_s28 = sphi %s5606_s28, %s6967_s28   ;;  %s5526_s27 = sphi %s5604_s27, %s6966_s27   ;;  %s5522_s26 = sphi %s5602_s26, %s6965_s26  }
   0xa   : > { %s5627_s8 = sadd.s32 1, %s5534_s29   ;;  %s184_s9 = sadd.s32 1, %s5530_s28 }
   0xb   : > { %s181_s10 = ssub.s32 %s5534_s29, %s5627_s8  ;;  %p194_p0 = scmp.ne.s32.totalorder %s5530_s28, %s5526_s27 }
   0xc   : > { %p182_p1 = scmp.eq.s32.totalorder %s181_s10, 0  ;;  %p195_p2 = scmp.eq.s32.totalorder %s5623_s6, 1 }
   0xd   : > { %p200_p3 = scmp.ne.s32.totalorder %s5526_s27, %s5522_s26  ;;  %p201_p4 = scmp.eq.s32.totalorder %s5087_s30, 1 }
   0xe   : > { %s5638_s11 = scalar_select %p182_p1, %s5530_s28, %s184_s9  }
   0xf   : > { %p5640_p5 = por %p195_p2, %p194_p0  ;;  %p5644_p6 = por %p201_p4, %p200_p3 }
  0x10   : > { %p5088_p7 = scmp.ge.s32.totalorder %s5534_s29, 1  ;;  %p208_p8 = scmp.lt.s32.totalorder %s5534_s29, 3 }
  0x11   : > { %p5193_p9 = scmp.eq.s32.totalorder %s5623_s6, 0  ;;  %s5536_s15 = smov [#allocation7]  }
  0x12   : > { %p5651_p10 = pnand %p5088_p7, %p208_p8  ;;  %s233_s16 = sshll.u32 %s5536_s15, 4  ;;  %s234_s16 = int_to_ptr.vmem [resolvable:$true] %s233_s16 }
  0x13   : > { %s5537_s18 = smov [#allocation4]   ;;  %s5538_s20 = smov [#allocation9]  }
  0x14   : > { %p5176_p11 = pneg %p5651_p10  ;;  %s220_s19 = sshll.u32 %s5537_s18, 4  ;;  %s221_s19 = int_to_ptr.vmem [resolvable:$true] %s220_s19 }
  0x15   : > { %s246_s21 = sshll.u32 %s5538_s20, 4  ;;  %s5369_s22 = scalar_lea.vmem %s234_s16, 6656  ;;  %s247_s21 = int_to_ptr.vmem [resolvable:$true] %s246_s21 }
  0x16   : > { %p5659_p12 = pnand %p5193_p9, %p5176_p11  ;;  %p5370_p0 = scmp.ne.s32.totalorder %s234_s16, %s5369_s22 }
  0x17   : > { %p5377_p3 = scmp.lt.s32.totalorder %s234_s16, %s234_s16  ;;  %p5378_p4 = scmp.lt.s32.totalorder %s5369_s22, %s5369_s22 }
  0x18   : > { %p5360_p13 = pneg %p5659_p12 }
  0x19   : > { %p5379_p7 = por %p5378_p4, %p5377_p3 }
  0x1a   : > { %p5372_p1 = pnand %p5370_p0, %p5360_p13 }
  0x1c   : > { %p5373_p2 = pneg %p5372_p1 }
  0x1e   : > { %p5380_p8 = pnand %p5379_p7, %p5373_p2 }
  0x20   : > { %5383 = shalt.err (!%p5380_p8)
}
  0x21   : > { %s5539_s23 = smov 128   ;;  %s5540_s24 = smov 8  }
  0x22   : > { %5182 = dma.hbm_to_vmem [thread:$0]  (!%p5659_p12), %s6955_s2, 6656, %s234_s16, [#allocation8], %s5539_s23, %s5539_s23, %s5540_s24  }
  0x23   : > { %s5395_s9 = scalar_lea.vmem %s221_s19, 1536  ;;  %p5403_p2 = scmp.lt.s32.totalorder %s221_s19, %s221_s19 }
  0x24   : > { %p5396_p11 = scmp.ne.s32.totalorder %s221_s19, %s5395_s9  ;;  %p5404_p3 = scmp.lt.s32.totalorder %s5395_s9, %s5395_s9 }
  0x26   : > { %p5398_p0 = pnand %p5396_p11, %p5360_p13  ;;  %p5405_p4 = por %p5404_p3, %p5403_p2 }
  0x28   : > { %p5399_p1 = pneg %p5398_p0 }
  0x2a   : > { %p5406_p7 = pnand %p5405_p4, %p5399_p1 }
  0x2c   : > { %5409 = shalt.err (!%p5406_p7)
}
  0x2d   : > { %5179 = dma.hbm_to_vmem [thread:$0]  (!%p5659_p12), %s6954_s1, 1536, %s221_s19, [#allocation5], %s5539_s23, %s5539_s23, %s5540_s24  }
  0x2e   : > { %s5421_s16 = scalar_lea.vmem %s247_s21, 7168  ;;  %p5429_p2 = scmp.lt.s32.totalorder %s247_s21, %s247_s21 }
  0x2f   : > { %p5422_p8 = scmp.ne.s32.totalorder %s247_s21, %s5421_s16  ;;  %p5430_p1 = scmp.lt.s32.totalorder %s5421_s16, %s5421_s16 }
  0x31   : > { %p5424_p11 = pnand %p5422_p8, %p5360_p13  ;;  %p5431_p3 = por %p5430_p1, %p5429_p2 }
  0x33   : > { %p5425_p0 = pneg %p5424_p11 }
  0x35   : > { %p5432_p4 = pnand %p5431_p3, %p5425_p0 }
  0x37   : > { %5435 = shalt.err (!%p5432_p4)
}
  0x38   : > { %5185 = dma.hbm_to_vmem [thread:$0]  (!%p5659_p12), %s6956_s3, 7168, %s247_s21, [#allocation8], %s5539_s23, %s5539_s23, %s5540_s24  }
  0x39   : > { %s5541_s19 = smov [#allocation10]  }
  0x3a   : > { %s259_s22 = sshll.u32 %s5541_s19, 4  ;;  %s260_s22 = int_to_ptr.vmem [resolvable:$true] %s259_s22 }
  0x3b   : > { %s5447_s25 = scalar_lea.vmem %s260_s22, 7168  ;;  %p5455_p0 = scmp.lt.s32.totalorder %s260_s22, %s260_s22 }
  0x3c   : > { %p5448_p7 = scmp.ne.s32.totalorder %s260_s22, %s5447_s25  ;;  %p5456_p2 = scmp.lt.s32.totalorder %s5447_s25, %s5447_s25 }
  0x3e   : > { %p5450_p8 = pnand %p5448_p7, %p5360_p13  ;;  %p5457_p1 = por %p5456_p2, %p5455_p0 }
  0x40   : > { %p5451_p11 = pneg %p5450_p8 }
  0x42   : > { %p5458_p3 = pnand %p5457_p1, %p5451_p11 }
  0x44   : > { %5461 = shalt.err (!%p5458_p3)
}
  0x45   : > { %5188 = dma.hbm_to_vmem [thread:$0]  (!%p5659_p12), %s6957_s4, 7168, %s260_s22, [#allocation11], %s5539_s23, %s5539_s23, %s5540_s24  }
  0x46   : > { %288 = sbr.rel (%p5651_p10) target bundleno = 5740 (0x166c), region = 48 }
  0x4b   : > { %5505 = dma.done.wait (%p5193_p9), [#allocation5], 1536  }
  0x4c   : > { %5507 = vsyncadd (%p5193_p9), [#allocation5], 4294965760 }
  0x4d   : > { %5509 = dma.done.wait (%p5193_p9), [#allocation8], 13824  }
  0x4e   : > { %5511 = vsyncadd (%p5193_p9), [#allocation8], 4294953472 }
  0x4f   : > { %5513 = dma.done.wait (%p5193_p9), [#allocation11], 7168  }
  0x50   : > { %5515 = vsyncadd (%p5193_p9), [#allocation11], 4294960128  ;;  %v5542_v1 = vmov 0   ;;  %v502_v2 = vld [vmem:[#allocation4 + $0x58] sm:$0xff]  ;;  %v398_v4 = vld [vmem:[#allocation4 + $0x30] sm:$0xff]  ;;  %p331_p9 = scmp.lt.s32.totalorder %s5623_s6, 1  ;;  %v377_v21 = vlaneseq }
  0x51   : > { %5257 = vset.pattern.permute.xlu1 %v5542_v1  ;;  %5256 = vset.pattern.permute.xlu0 %v5542_v1  ;;  %v399_v3 = vld [vmem:[#allocation4 + $0x38] sm:$0xff]  ;;  %v397_v5 = vld [vmem:[#allocation4 + $0x28] sm:$0xff]  ;;  %v501_v6 = vld [vmem:[#allocation4 + $0x50] sm:$0xff]  ;;  %s5543_s10 = smov 127   ;;  %v5544_v38 = vmov 0.0   ;;  %s5545_s15 = smov 126  }
  0x52   : > { %520 = vperm.xlu1 %5257, %v502_v2   ;;  %417 = vperm.xlu0 %5256, %v399_v3   ;;  %v396_v7 = vld [vmem:[#allocation4 + $0x20] sm:$0xff]  ;;  %v500_v8 = vld [vmem:[#allocation4 + $0x48] sm:$0xff]  ;;  %v355_v10 = vld [vmem:[#allocation4 + $0x18] sm:$0xff]  ;;  %s332_s14 = scalar_select %p331_p9, %s5623_s6, 1  ;;  %v5726_v22 = vshrl.u32 %v377_v21, 7  ;;  %vm473_vm0 = vcmask 1039360  }
  0x53   : > { %v499_v9 = vld [vmem:[#allocation4 + $0x40] sm:$0xff]  ;;  %v354_v11 = vld [vmem:[#allocation4 + $0x10] sm:$0xff]  ;;  %v353_v12 = vld [vmem:[#allocation4 + $0x8] sm:$0xff]  ;;  %979 = vmatprep.mubr.f32.mxu0 %v5544_v38  ;;  %1389 = vmatprep.mubr.f32.mxu1 %v5544_v38  ;;  %s5546_s16 = smov 124   ;;  %s5547_s18 = smov 2   ;;  %vm571_vm1 = vcmask 1031168  }
  0x54   : > { %v352_v13 = vld [vmem:[#allocation4] sm:$0xff]  ;;  %v598_v14 = vld [vmem:[#allocation9 + $0x10] sm:$0xff]  ;;  %v599_v15 = vld [vmem:[#allocation9 + $0x18] sm:$0xff]  ;;  %s5156_s17 = smul.u32 3, %s332_s14  ;;  %v383_v23 = vsub.s32 1, %v5726_v22  ;;  %v379_v24 = vsub.s32 0, %v5726_v22 }
  0x55   : > { %v597_v16 = vld [vmem:[#allocation9 + $0x8] sm:$0xff]  ;;  %v631_v17 = vld [vmem:[#allocation10 + $0x18] sm:$0xff]  ;;  %v596_v18 = vld [vmem:[#allocation9] sm:$0xff]  ;;  %v422_v28 = vsub.s32 2, %v5726_v22  ;;  %vm764_vm10 = vcmask 1014784   ;;  %vm853_vm11 = vcmask 15360  }
  0x56   : > { %412 = vperm.xlu0 %5256, %v398_v4   ;;  %407 = vperm.xlu1 %5257, %v397_v5   ;;  %v630_v19 = vld [vmem:[#allocation10 + $0x10] sm:$0xff]  ;;  %v629_v20 = vld [vmem:[#allocation10 + $0x8] sm:$0xff]  ;;  %s334_s9 = scalar_lea.vmem %s6953_s0, %s5156_s17  ;;  %v628_v61 = vld [vmem:[#allocation10] sm:$0xff]  ;;  %vm902_vm12 = vcmask 785408   ;;  %s5548_s20 = smov 120  }
  0x57   : > { %v351_v25 = vld [vmem:[%s334_s9] sm:$0x7]  ;;  %s5549_s19 = smov 4   ;;  %s5550_s22 = smov 112  }
  0x58   : > { %v5733_v26 = vrot.slane %v351_v25, %v383_v23  ;;  %v5737_v27 = vrot.slane %v351_v25, %v379_v24  ;;  %v423_v32 = vrot.slane %v351_v25, %v422_v28  ;;  %s5551_s25 = smov 8   ;;  %s5552_s21 = smov 96  }
  0x59   : > { %s5553_s30 = smov 16   ;;  %s5554_s14 = smov 64  }
  0x5a   : > { %515 = vperm.xlu0 %5256, %v501_v6   ;;  %402 = vperm.xlu1 %5257, %v396_v7   ;;  %s5555_s17 = smov 32   ;;  %s328_s23 = sand.u32 1, %s5526_s27  }
  0x5b   : > { %s5155_s24 = smul.u32 3, %s328_s23 }
  0x5d   : > { %s6801_s9 = scalar_lea.vmem [#allocation12], %s5155_s24 }
  0x5e   : > { %510 = vperm.xlu0 %5256, %v500_v8   ;;  %505 = vperm.xlu1 %5257, %v499_v9  }
  0x62   : > { %373 = vperm.xlu0 %5256, %v355_v10   ;;  %368 = vperm.xlu1 %5257, %v354_v11  }
  0x66   : > { %363 = vperm.xlu0 %5256, %v353_v12   ;;  %358 = vperm.xlu1 %5257, %v352_v13  }
  0x6a   : > { %612 = vperm.xlu0 %5256, %v598_v14   ;;  %617 = vperm.xlu1 %5257, %v599_v15  }
  0x6e   : > { %607 = vperm.xlu0 %5256, %v597_v16   ;;  %649 = vperm.xlu1 %5257, %v631_v17  }
  0x72   : > { %602 = vperm.xlu0 %5256, %v596_v18   ;;  %644 = vperm.xlu1 %5257, %v630_v19  }
  0x76   : > { %639 = vperm.xlu1 %5257, %v629_v20  }
  0xcd   : > { %v418_v29 = vpop.permute.xlu0 %417  ;;  %v521_v36 = vpop.permute.xlu1 %520 }
  0xce   : > { %v435_v30 = vmul.f32 %v418_v29, %v5733_v26  ;;  %v434_v31 = vmul.f32 %v418_v29, %v5737_v27  ;;  %v436_v35 = vmul.f32 %v423_v32, %v418_v29  ;;  %v532_v37 = vmul.f32 %v521_v36, %v5737_v27 }
  0xcf   : > { %v534_v40 = vmul.f32 %v521_v36, %v423_v32  ;;  %v533_v44 = vmul.f32 %v521_v36, %v5733_v26 }
  0xd0   : > { %469 = vrot.lane.b32.xlu1 %v435_v30, %s5543_s10  ;;  %467 = vrot.lane.b32.xlu0 %v434_v31, %s5543_s10 }
  0xd1   : > { %v413_v33 = vpop.permute.xlu0 %412  ;;  %v408_v42 = vpop.permute.xlu1 %407 }
  0xd2   : > { %v432_v34 = vmul.f32 %v413_v33, %v5733_v26  ;;  %v431_v39 = vmul.f32 %v413_v33, %v5737_v27  ;;  %v433_v41 = vmul.f32 %v423_v32, %v413_v33  ;;  %v429_v43 = vmul.f32 %v408_v42, %v5733_v26 }
  0xd3   : > { %v428_v47 = vmul.f32 %v408_v42, %v5737_v27  ;;  %v430_v49 = vmul.f32 %v423_v32, %v408_v42 }
  0xd4   : > { %463 = vrot.lane.b32.xlu1 %v432_v34, %s5543_s10  ;;  %471 = vrot.lane.b32.xlu0 %v436_v35, %s5543_s10 }
  0xd5   : > { %v516_v45 = vpop.permute.xlu0 %515  ;;  %v403_v50 = vpop.permute.xlu1 %402 }
  0xd6   : > { %v529_v46 = vmul.f32 %v516_v45, %v5737_v27  ;;  %v531_v48 = vmul.f32 %v516_v45, %v423_v32  ;;  %v426_v51 = vmul.f32 %v403_v50, %v5733_v26  ;;  %v530_v52 = vmul.f32 %v516_v45, %v5733_v26 }
  0xd7   : > { %v425_v55 = vmul.f32 %v403_v50, %v5737_v27  ;;  %v427_v57 = vmul.f32 %v423_v32, %v403_v50 }
  0xd8   : > { %565 = vrot.lane.b32.xlu1 %v532_v37, %s5545_s15  ;;  %461 = vrot.lane.b32.xlu0 %v431_v39, %s5543_s10 }
  0xd9   : > { %v511_v53 = vpop.permute.xlu0 %510  ;;  %v506_v58 = vpop.permute.xlu1 %505 }
  0xda   : > { %v526_v54 = vmul.f32 %v511_v53, %v5737_v27  ;;  %v528_v56 = vmul.f32 %v511_v53, %v423_v32  ;;  %v524_v59 = vmul.f32 %v506_v58, %v5733_v26  ;;  %v527_v60 = vmul.f32 %v511_v53, %v5733_v26 }
  0xdb   : > { %v523_v62 = vmul.f32 %v506_v58, %v5737_v27  ;;  %v525_v63 = vmul.f32 %v506_v58, %v423_v32 }
  0xdc   : > { %569 = vrot.lane.b32.xlu1 %v534_v40, %s5545_s15  ;;  %465 = vrot.lane.b32.xlu0 %v433_v41, %s5543_s10 }
  0xdd   : > { %v369_v0 = vpop.permute.xlu1 %368  ;;  %v374_v1 = vpop.permute.xlu0 %373 }
  0xde   : > { %v393_v23 = vmul.f32 %v5737_v27, %v374_v1  ;;  %v394_v25 = vmul.f32 %v5733_v26, %v374_v1  ;;  %v392_v50 = vmul.f32 %v5733_v26, %v369_v0 }
  0xe0   : > { %457 = vrot.lane.b32.xlu1 %v429_v43, %s5543_s10  ;;  %567 = vrot.lane.b32.xlu0 %v533_v44, %s5545_s15 }
  0xe1   : > { %v5788_v2 = vpop.permute.xlu1 %358  ;;  %v5790_v3 = vpop.permute.xlu0 %363 }
  0xe4   : > { %559 = vrot.lane.b32.xlu1 %v529_v46, %s5545_s15  ;;  %455 = vrot.lane.b32.xlu0 %v428_v47, %s5543_s10 }
  0xe5   : > { %v618_v4 = vpop.permute.xlu1 %617  ;;  %v613_v5 = vpop.permute.xlu0 %612 }
  0xe8   : > { %563 = vrot.lane.b32.xlu1 %v531_v48, %s5545_s15  ;;  %459 = vrot.lane.b32.xlu0 %v430_v49, %s5543_s10  ;;  %v391_v49 = vmul.f32 %v5737_v27, %v369_v0 }
  0xe9   : > { %v650_v6 = vpop.permute.xlu1 %649  ;;  %v5792_v7 = vpop.permute.xlu0 %607 }
  0xec   : > { %451 = vrot.lane.b32.xlu1 %v426_v51, %s5543_s10  ;;  %561 = vrot.lane.b32.xlu0 %v530_v52, %s5545_s15 }
  0xed   : > { %v645_v8 = vpop.permute.xlu1 %644  ;;  %v5794_v9 = vpop.permute.xlu0 %602 }
  0xf0   : > { %553 = vrot.lane.b32.xlu1 %v526_v54, %s5545_s15  ;;  %449 = vrot.lane.b32.xlu0 %v425_v55, %s5543_s10 }
  0xf1   : > { %v5796_v10 = vpop.permute.xlu1 %639 }
  0xf4   : > { %557 = vrot.lane.b32.xlu1 %v528_v56, %s5545_s15  ;;  %453 = vrot.lane.b32.xlu0 %v427_v57, %s5543_s10 }
  0xf8   : > { %549 = vrot.lane.b32.xlu1 %v524_v59, %s5545_s15  ;;  %555 = vrot.lane.b32.xlu0 %v527_v60, %s5545_s15 }
  0xfc   : > { %634 = vperm.xlu1 %5257, %v628_v61   ;;  %547 = vrot.lane.b32.xlu0 %v523_v62, %s5545_s15 }
 0x100   : > { %551 = vrot.lane.b32.xlu0 %v525_v63, %s5545_s15  ;;  %5264 = vrot.lane.b32.xlu1 %v5544_v38, %s5546_s16 }
 0x104   : > { %5259 = vrot.lane.b32.xlu0 %v5544_v38, %s5546_s16 }
 0x108   : > { %5269 = vrot.lane.b32.xlu0 %v5544_v38, %s5547_s18 }
 0x142   : > { %v470_v11 = vpop.permute.xlu1 %469  ;;  %v468_v12 = vpop.permute.xlu0 %467 }
 0x143   : > { %v480_v19 = vsel %vm473_vm0, %v468_v12, %v470_v11 }
 0x144   : > { %v496_v28 = vadd.f32 %v480_v19, %v393_v23 }
 0x146   : > { %v464_v13 = vpop.permute.xlu1 %463  ;;  %v472_v14 = vpop.permute.xlu0 %471 }
 0x147   : > { %v481_v20 = vsel %vm473_vm0, %v470_v11, %v472_v14 }
 0x148   : > { %v497_v29 = vadd.f32 %v481_v20, %v394_v25 }
 0x14a   : > { %v566_v15 = vpop.permute.xlu1 %565  ;;  %v462_v16 = vpop.permute.xlu0 %461 }
 0x14b   : > { %v478_v47 = vsel %vm473_vm0, %v462_v16, %v464_v13  ;;  %v390_v16 = vmul.f32 %v5733_v26, %v5790_v3 }
 0x14c   : > { %v494_v53 = vadd.f32 %v478_v47, %v391_v49 }
 0x14e   : > { %v570_v17 = vpop.permute.xlu1 %569  ;;  %v466_v18 = vpop.permute.xlu0 %465 }
 0x14f   : > { %v479_v48 = vsel %vm473_vm0, %v464_v13, %v466_v18 }
 0x150   : > { %v495_v54 = vadd.f32 %v479_v48, %v392_v50 }
 0x152   : > { %v458_v30 = vpop.permute.xlu1 %457  ;;  %v568_v31 = vpop.permute.xlu0 %567 }
 0x153   : > { %v578_v32 = vsel %vm571_vm1, %v566_v15, %v568_v31  ;;  %v579_v33 = vsel %vm571_vm1, %v568_v31, %v570_v17  ;;  %v389_v15 = vmul.f32 %v5737_v27, %v5790_v3  ;;  %v387_v3 = vmul.f32 %v5737_v27, %v5788_v2 }
 0x154   : > { %v594_v34 = vadd.f32 %v578_v32, %v496_v28  ;;  %v595_v35 = vadd.f32 %v579_v33, %v497_v29 }
 0x156   : > { %v626_v36 = vmul.f32 %v618_v4, %v594_v34  ;;  %v627_v37 = vmul.f32 %v618_v4, %v595_v35  ;;  %v560_v39 = vpop.permute.xlu1 %559  ;;  %v456_v40 = vpop.permute.xlu0 %455 }
 0x157   : > { %v476_v13 = vsel %vm473_vm0, %v456_v40, %v458_v30 }
 0x158   : > { %v659_v41 = vadd.f32 %v650_v6, %v627_v37  ;;  %v658_v42 = vadd.f32 %v650_v6, %v626_v36  ;;  %v388_v36 = vmul.f32 %v5733_v26, %v5788_v2 }
 0x15a   : > { %v564_v43 = vpop.permute.xlu1 %563  ;;  %v460_v44 = vpop.permute.xlu0 %459  ;;  %vm667_vm2 = vcmp.ge.f32.partialorder %v659_v41, 0.0  ;;  %v675_v45 = vmul.f32 0.01, %v659_v41  ;;  %vm666_vm3 = vcmp.ge.f32.partialorder %v658_v42, 0.0  ;;  %v674_v46 = vmul.f32 0.01, %v658_v42 }
 0x15b   : > { %v477_v14 = vsel %vm473_vm0, %v458_v30, %v460_v44 }
 0x15c   : > { %v5808_v51 = vsel %vm667_vm2, %v659_v41, %v675_v45  ;;  %v5810_v52 = vsel %vm666_vm3, %v658_v42, %v674_v46  ;;  %v493_v19 = vadd.f32 %v477_v14, %v390_v16 }
 0x15d   : > { %760 = vrot.lane.b32.xlu1 %v5808_v51, %s5546_s16  ;;  %758 = vrot.lane.b32.xlu0 %v5810_v52, %s5546_s16 }
 0x15e   : > { %v452_v55 = vpop.permute.xlu1 %451  ;;  %v562_v56 = vpop.permute.xlu0 %561 }
 0x15f   : > { %v576_v57 = vsel %vm571_vm1, %v560_v39, %v562_v56  ;;  %v577_v58 = vsel %vm571_vm1, %v562_v56, %v564_v43 }
 0x160   : > { %v592_v59 = vadd.f32 %v576_v57, %v494_v53  ;;  %v593_v60 = vadd.f32 %v577_v58, %v495_v54 }
 0x162   : > { %v624_v61 = vmul.f32 %v613_v5, %v592_v59  ;;  %v625_v62 = vmul.f32 %v613_v5, %v593_v60  ;;  %v554_v63 = vpop.permute.xlu1 %553  ;;  %v450_v0 = vpop.permute.xlu0 %449 }
 0x163   : > { %v474_v30 = vsel %vm473_vm0, %v450_v0, %v452_v55 }
 0x164   : > { %v657_v1 = vadd.f32 %v645_v8, %v625_v62  ;;  %v656_v4 = vadd.f32 %v645_v8, %v624_v61  ;;  %v492_v8 = vadd.f32 %v476_v13, %v389_v15  ;;  %v490_v39 = vadd.f32 %v474_v30, %v387_v3 }
 0x166   : > { %v454_v6 = vpop.permute.xlu0 %453  ;;  %vm665_vm4 = vcmp.ge.f32.partialorder %v657_v1, 0.0  ;;  %v673_v11 = vmul.f32 0.01, %v657_v1  ;;  %vm664_vm5 = vcmp.ge.f32.partialorder %v656_v4, 0.0  ;;  %v672_v12 = vmul.f32 0.01, %v656_v4  ;;  %v558_v5 = vpop.permute.xlu1 %557 }
 0x167   : > { %v475_v31 = vsel %vm473_vm0, %v452_v55, %v454_v6 }
 0x168   : > { %v681_v17 = vsel %vm665_vm4, %v657_v1, %v673_v11  ;;  %v680_v18 = vsel %vm664_vm5, %v656_v4, %v672_v12  ;;  %v491_v42 = vadd.f32 %v475_v31, %v388_v36  ;;  %v1041_v36 = vld [vmem:[#allocation10 + $0x38] sm:$0xff] }
 0x169   : > { %754 = vrot.lane.b32.xlu0 %v681_v17, %s5546_s16  ;;  %752 = vrot.lane.b32.xlu1 %v680_v18, %s5546_s16 }
 0x16a   : > { %v556_v20 = vpop.permute.xlu0 %555  ;;  %v550_v32 = vpop.permute.xlu1 %549 }
 0x16b   : > { %v574_v23 = vsel %vm571_vm1, %v554_v63, %v556_v20  ;;  %v575_v25 = vsel %vm571_vm1, %v556_v20, %v558_v5 }
 0x16c   : > { %v590_v28 = vadd.f32 %v574_v23, %v492_v8  ;;  %v591_v29 = vadd.f32 %v575_v25, %v493_v19 }
 0x16e   : > { %v622_v33 = vmul.f32 %v5792_v7, %v590_v28  ;;  %v623_v34 = vmul.f32 %v5792_v7, %v591_v29  ;;  %v548_v35 = vpop.permute.xlu0 %547 }
 0x16f   : > { %v572_v37 = vsel %vm571_vm1, %v548_v35, %v550_v32  ;;  %v1007_v35 = vld [vmem:[#allocation9 + $0x30] sm:$0xff] }
 0x170   : > { %v655_v40 = vadd.f32 %v5796_v10, %v623_v34  ;;  %v654_v41 = vadd.f32 %v5796_v10, %v622_v33  ;;  %v588_v27 = vadd.f32 %v572_v37, %v490_v39  ;;  %v1008_v34 = vld [vmem:[#allocation9 + $0x38] sm:$0xff]  ;;  %v1006_v37 = vld [vmem:[#allocation9 + $0x28] sm:$0xff]  ;;  %v1040_v39 = vld [vmem:[#allocation10 + $0x30] sm:$0xff] }
 0x172   : > { %v552_v43 = vpop.permute.xlu0 %551  ;;  %vm663_vm6 = vcmp.ge.f32.partialorder %v655_v40, 0.0  ;;  %v671_v44 = vmul.f32 0.01, %v655_v40  ;;  %vm662_vm7 = vcmp.ge.f32.partialorder %v654_v41, 0.0  ;;  %v670_v7 = vmul.f32 0.01, %v654_v41 }
 0x173   : > { %v573_v45 = vsel %vm571_vm1, %v550_v32, %v552_v43  ;;  %v620_v2 = vmul.f32 %v5794_v9, %v588_v27 }
 0x174   : > { %v589_v46 = vadd.f32 %v573_v45, %v491_v42  ;;  %v5840_v47 = vsel %vm663_vm6, %v655_v40, %v671_v44  ;;  %v678_v26 = vsel %vm662_vm7, %v654_v41, %v670_v7  ;;  %v1005_v40 = vld [vmem:[#allocation9 + $0x20] sm:$0xff]  ;;  %v1039_v41 = vld [vmem:[#allocation10 + $0x28] sm:$0xff]  ;;  %vm1174_vm7 = vcmask 982016  }
 0x175   : > { %748 = vrot.lane.b32.xlu0 %v5840_v47, %s5546_s16  ;;  %746 = vrot.lane.b32.xlu1 %v678_v26, %s5546_s16  ;;  %v1038_v42 = vld [vmem:[#allocation10 + $0x20] sm:$0xff] }
 0x176   : > { %v621_v10 = vmul.f32 %v5794_v9, %v589_v46  ;;  %v5260_v9 = vpop.permute.xlu0 %5259 }
 0x177   : > { %v635_v48 = vpop.permute.xlu1 %634  ;;  %v5261_v14 = vunpack.i.l.bf16 %v5260_v9  ;;  %v5262_v5 = vunpack.i.h.bf16 %v5260_v9 }
 0x178   : > { %v652_v49 = vadd.f32 %v635_v48, %v620_v2  ;;  %v653_v50 = vadd.f32 %v635_v48, %v621_v10 }
 0x17a   : > { %vm661_vm8 = vcmp.ge.f32.partialorder %v653_v50, 0.0  ;;  %v669_v53 = vmul.f32 0.01, %v653_v50  ;;  %vm660_vm9 = vcmp.ge.f32.partialorder %v652_v49, 0.0  ;;  %v668_v54 = vmul.f32 0.01, %v652_v49  ;;  %v5875_v57 = vpop.permute.xlu0 %5269 }
 0x17b   : > { %v5265_v59 = vpop.permute.xlu1 %5264 }
 0x17c   : > { %v5847_v55 = vsel %vm661_vm8, %v653_v50, %v669_v53  ;;  %v5849_v56 = vsel %vm660_vm9, %v652_v49, %v668_v54  ;;  %v5266_v20 = vunpack.i.l.bf16 %v5265_v59  ;;  %v5267_v28 = vunpack.i.h.bf16 %v5265_v59 }
 0x17d   : > { %742 = vrot.lane.b32.xlu1 %v5847_v55, %s5546_s16  ;;  %740 = vrot.lane.b32.xlu0 %v5849_v56, %s5546_s16  ;;  %vm1264_vm8 = vcmask 31744  }
 0x181   : > { %730 = vrot.lane.b32.xlu1 %v5808_v51, %s5545_s15  ;;  %728 = vrot.lane.b32.xlu0 %v5810_v52, %s5545_s15 }
 0x185   : > { %726 = vrot.lane.b32.xlu1 %v681_v17, %s5545_s15  ;;  %724 = vrot.lane.b32.xlu0 %v680_v18, %s5545_s15 }
 0x189   : > { %722 = vrot.lane.b32.xlu1 %v5840_v47, %s5545_s15  ;;  %720 = vrot.lane.b32.xlu0 %v678_v26, %s5545_s15 }
 0x18d   : > { %718 = vrot.lane.b32.xlu1 %v5847_v55, %s5545_s15  ;;  %716 = vrot.lane.b32.xlu0 %v5849_v56, %s5545_s15 }
 0x191   : > { %803 = vrot.lane.b32.xlu1 %v5808_v51, %s5547_s18  ;;  %801 = vrot.lane.b32.xlu0 %v5810_v52, %s5547_s18 }
 0x195   : > { %795 = vrot.lane.b32.xlu1 %v680_v18, %s5547_s18  ;;  %797 = vrot.lane.b32.xlu0 %v681_v17, %s5547_s18 }
 0x199   : > { %789 = vrot.lane.b32.xlu1 %v678_v26, %s5547_s18 }
 0x1cf   : > { %v759_v58 = vpop.permute.xlu0 %758  ;;  %v761_v60 = vpop.permute.xlu1 %760 }
 0x1d0   : > { %847 = vrot.lane.b32.xlu0 %v759_v58, %s5547_s18  ;;  %v771_v17 = vsel %vm764_vm10, %v759_v58, %v761_v60  ;;  %v772_v18 = vsel %vm764_vm10, %v761_v60, %v5261_v14 }
 0x1db   : > { %v753_v61 = vpop.permute.xlu1 %752  ;;  %v755_v51 = vpop.permute.xlu0 %754 }
 0x1dc   : > { %841 = vrot.lane.b32.xlu1 %v753_v61, %s5547_s18  ;;  %v770_v8 = vsel %vm764_vm10, %v755_v51, %v5262_v5  ;;  %v769_v19 = vsel %vm764_vm10, %v753_v61, %v755_v51 }
 0x1e7   : > { %v747_v62 = vpop.permute.xlu1 %746  ;;  %v749_v52 = vpop.permute.xlu0 %748 }
 0x1e8   : > { %835 = vrot.lane.b32.xlu0 %v747_v62, %s5547_s18  ;;  %v767_v23 = vsel %vm764_vm10, %v747_v62, %v749_v52  ;;  %v768_v25 = vsel %vm764_vm10, %v749_v52, %v5266_v20 }
 0x1ef   : > { %v743_v63 = vpop.permute.xlu1 %742  ;;  %v741_v0 = vpop.permute.xlu0 %740 }
 0x1f0   : > { %829 = vrot.lane.b32.xlu1 %v741_v0, %s5547_s18  ;;  %v766_v29 = vsel %vm764_vm10, %v743_v63, %v5267_v28  ;;  %v765_v30 = vsel %vm764_vm10, %v741_v0, %v743_v63  ;;  %v5271_v28 = vunpack.i.l.bf16 %v5875_v57 }
 0x1f3   : > { %v731_v1 = vpop.permute.xlu1 %730  ;;  %v729_v4 = vpop.permute.xlu0 %728 }
 0x1f4   : > { %827 = vrot.lane.b32.xlu1 %v731_v1, %s5547_s18  ;;  %823 = vrot.lane.b32.xlu0 %v729_v4, %s5547_s18  ;;  %v735_v3 = vsel %vm571_vm1, %v729_v4, %v731_v1 }
 0x1f7   : > { %v727_v6 = vpop.permute.xlu1 %726  ;;  %v725_v11 = vpop.permute.xlu0 %724 }
 0x1f8   : > { %821 = vrot.lane.b32.xlu0 %v727_v6, %s5547_s18  ;;  %817 = vrot.lane.b32.xlu1 %v725_v11, %s5547_s18  ;;  %v734_v31 = vsel %vm571_vm1, %v725_v11, %v727_v6 }
 0x1fb   : > { %v723_v12 = vpop.permute.xlu1 %722  ;;  %v721_v13 = vpop.permute.xlu0 %720 }
 0x1fc   : > { %815 = vrot.lane.b32.xlu1 %v723_v12, %s5547_s18  ;;  %811 = vrot.lane.b32.xlu0 %v721_v13, %s5547_s18  ;;  %v733_v32 = vsel %vm571_vm1, %v721_v13, %v723_v12 }
 0x1ff   : > { %v719_v15 = vpop.permute.xlu1 %718  ;;  %v717_v16 = vpop.permute.xlu0 %716 }
 0x200   : > { %809 = vrot.lane.b32.xlu0 %v719_v15, %s5547_s18  ;;  %805 = vrot.lane.b32.xlu1 %v717_v16, %s5547_s18  ;;  %v732_v33 = vsel %vm571_vm1, %v717_v16, %v719_v15 }
 0x203   : > { %v5923_v27 = vpop.permute.xlu1 %803  ;;  %v5925_v43 = vpop.permute.xlu0 %801 }
 0x204   : > { %849 = vrot.lane.b32.xlu0 %v771_v17, %s5547_s18  ;;  %851 = vrot.lane.b32.xlu1 %v772_v18, %s5547_s18 }
 0x207   : > { %v5927_v44 = vpop.permute.xlu1 %795  ;;  %v5929_v45 = vpop.permute.xlu0 %797 }
 0x208   : > { %845 = vrot.lane.b32.xlu0 %v770_v8, %s5547_s18  ;;  %843 = vrot.lane.b32.xlu1 %v769_v19, %s5547_s18 }
 0x20b   : > { %v5931_v7 = vpop.permute.xlu1 %789 }
 0x20c   : > { %837 = vrot.lane.b32.xlu0 %v767_v23, %s5547_s18  ;;  %839 = vrot.lane.b32.xlu1 %v768_v25, %s5547_s18 }
 0x210   : > { %833 = vrot.lane.b32.xlu0 %v766_v29, %s5547_s18  ;;  %831 = vrot.lane.b32.xlu1 %v765_v30, %s5547_s18 }
 0x214   : > { %825 = vrot.lane.b32.xlu0 %v735_v3, %s5547_s18  ;;  %819 = vrot.lane.b32.xlu1 %v734_v31, %s5547_s18  ;;  %v861_v31 = vsel %vm853_vm11, %v5925_v43, %v5923_v27 }
 0x218   : > { %813 = vrot.lane.b32.xlu0 %v733_v32, %s5547_s18  ;;  %807 = vrot.lane.b32.xlu1 %v732_v33, %s5547_s18  ;;  %v5272_v32 = vunpack.i.h.bf16 %v5875_v57  ;;  %v860_v33 = vsel %vm853_vm11, %v5271_v28, %v5925_v43  ;;  %v774_v43 = vld [vmem:[#allocation7 + $0x8] sm:$0xff] }
 0x21c   : > { %791 = vrot.lane.b32.xlu0 %v5840_v47, %s5547_s18  ;;  %787 = vrot.lane.b32.xlu1 %v5544_v38, %s5547_s18 }
 0x220   : > { %783 = vrot.lane.b32.xlu0 %v5849_v56, %s5547_s18  ;;  %785 = vrot.lane.b32.xlu1 %v5847_v55, %s5547_s18 }
 0x224   : > { %781 = vrot.lane.b32.xlu0 %v5544_v38, %s5547_s18  ;;  %1026 = vperm.xlu1 %5257, %v1008_v34   ;;  %v859_v34 = vsel %vm853_vm11, %v5927_v44, %v5929_v45  ;;  %v776_v45 = vld [vmem:[#allocation7 + $0x18] sm:$0xff]  ;;  %s5157_s18 = smul.u32 48, %s5623_s6  ;;  %s5558_s6 = smov [#allocation12]  }
 0x228   : > { %1021 = vperm.xlu0 %5256, %v1007_v35   ;;  %1059 = vperm.xlu1 %5257, %v1041_v36  }
 0x22c   : > { %1016 = vperm.xlu0 %5256, %v1006_v37   ;;  %1054 = vperm.xlu1 %5257, %v1040_v39   ;;  %v858_v37 = vsel %vm853_vm11, %v5272_v32, %v5927_v44  ;;  %v775_v44 = vld [vmem:[#allocation7 + $0x10] sm:$0xff] }
 0x230   : > { %1011 = vperm.xlu0 %5256, %v1005_v40   ;;  %1049 = vperm.xlu1 %5257, %v1039_v41  }
 0x234   : > { %1044 = vperm.xlu0 %5256, %v1038_v42   ;;  %v773_v42 = vld [vmem:[#allocation7] sm:$0xff]  ;;  %5274 = vrot.lane.b32.xlu1 %v5544_v38, %s5548_s20 }
 0x238   : > { %5279 = vrot.lane.b32.xlu0 %v5544_v38, %s5548_s20 }
 0x242   : > { %v848_v46 = vpop.permute.xlu0 %847 }
 0x24e   : > { %v842_v47 = vpop.permute.xlu1 %841 }
 0x25a   : > { %v836_v26 = vpop.permute.xlu0 %835 }
 0x262   : > { %v830_v2 = vpop.permute.xlu1 %829 }
 0x266   : > { %v828_v10 = vpop.permute.xlu1 %827  ;;  %v824_v48 = vpop.permute.xlu0 %823 }
 0x26a   : > { %v818_v49 = vpop.permute.xlu1 %817  ;;  %v822_v50 = vpop.permute.xlu0 %821 }
 0x26e   : > { %v816_v53 = vpop.permute.xlu1 %815  ;;  %v812_v54 = vpop.permute.xlu0 %811 }
 0x272   : > { %v806_v55 = vpop.permute.xlu1 %805  ;;  %v810_v56 = vpop.permute.xlu0 %809 }
 0x276   : > { %v852_v9 = vpop.permute.xlu1 %851  ;;  %v850_v58 = vpop.permute.xlu0 %849 }
 0x277   : > { %v877_v59 = vsel %vm853_vm11, %v850_v58, %v852_v9  ;;  %v876_v60 = vsel %vm853_vm11, %v848_v46, %v850_v58 }
 0x278   : > { %923 = vmatprep.subr.mxu0 %v877_v59 }
 0x279   : > { %924 = vmatpush1.msra.mxu0 %v876_v60 }
 0x27a   : > { %v844_v61 = vpop.permute.xlu1 %843  ;;  %v846_v51 = vpop.permute.xlu0 %845 }
 0x27b   : > { %v875_v62 = vsel %vm853_vm11, %v844_v61, %v846_v51  ;;  %v874_v52 = vsel %vm853_vm11, %v842_v47, %v844_v61 }
 0x27c   : > { %925 = vmatprep.subr.mxu0 %v875_v62 }
 0x27d   : > { %926 = vmatpush1.msra.mxu0 %v874_v52 }
 0x27e   : > { %v840_v63 = vpop.permute.xlu1 %839  ;;  %v838_v0 = vpop.permute.xlu0 %837 }
 0x27f   : > { %v873_v1 = vsel %vm853_vm11, %v838_v0, %v840_v63  ;;  %v872_v4 = vsel %vm853_vm11, %v836_v26, %v838_v0 }
 0x280   : > { %927 = vmatprep.subr.mxu0 %v873_v1 }
 0x281   : > { %928 = vmatpush1.msra.mxu0 %v872_v4 }
 0x282   : > { %v832_v6 = vpop.permute.xlu1 %831  ;;  %v834_v11 = vpop.permute.xlu0 %833 }
 0x283   : > { %v871_v12 = vsel %vm853_vm11, %v832_v6, %v834_v11  ;;  %v870_v13 = vsel %vm853_vm11, %v830_v2, %v832_v6 }
 0x284   : > { %929 = vmatprep.subr.mxu0 %v871_v12 }
 0x285   : > { %930 = vmatpush1.msra.mxu0 %v870_v13 }
 0x286   : > { %v820_v14 = vpop.permute.xlu1 %819  ;;  %v826_v15 = vpop.permute.xlu0 %825 }
 0x287   : > { %v869_v16 = vsel %vm853_vm11, %v826_v15, %v828_v10  ;;  %v868_v5 = vsel %vm853_vm11, %v824_v48, %v826_v15  ;;  %v867_v17 = vsel %vm853_vm11, %v820_v14, %v822_v50  ;;  %v866_v19 = vsel %vm853_vm11, %v818_v49, %v820_v14 }
 0x288   : > { %931 = vmatprep.subr.mxu0 %v869_v16 }
 0x289   : > { %932 = vmatpush1.msra.mxu0 %v868_v5 }
 0x28a   : > { %v808_v18 = vpop.permute.xlu1 %807  ;;  %933 = vmatprep.subr.mxu0 %v867_v17  ;;  %v814_v8 = vpop.permute.xlu0 %813 }
 0x28b   : > { %934 = vmatpush1.msra.mxu0 %v866_v19  ;;  %v865_v20 = vsel %vm853_vm11, %v814_v8, %v816_v53  ;;  %v864_v23 = vsel %vm853_vm11, %v812_v54, %v814_v8  ;;  %v863_v25 = vsel %vm853_vm11, %v808_v18, %v810_v56  ;;  %v862_v3 = vsel %vm853_vm11, %v806_v55, %v808_v18 }
 0x28c   : > { %935 = vmatprep.subr.mxu0 %v865_v20 }
 0x28d   : > { %936 = vmatpush1.msra.mxu0 %v864_v23 }
 0x28e   : > { %v788_v29 = vpop.permute.xlu1 %787  ;;  %937 = vmatprep.subr.mxu0 %v863_v25  ;;  %v792_v30 = vpop.permute.xlu0 %791 }
 0x28f   : > { %938 = vmatpush1.msra.mxu0 %v862_v3  ;;  %v857_v39 = vsel %vm853_vm11, %v5931_v7, %v792_v30  ;;  %v856_v57 = vsel %vm853_vm11, %v788_v29, %v5931_v7 }
 0x290   : > { %939 = vmatprep.subr.mxu0 %v861_v31 }
 0x291   : > { %940 = vmatpush1.msra.mxu0 %v860_v33 }
 0x292   : > { %v786_v35 = vpop.permute.xlu1 %785  ;;  %941 = vmatprep.subr.mxu0 %v859_v34  ;;  %v784_v36 = vpop.permute.xlu0 %783 }
 0x293   : > { %942 = vmatpush1.msra.mxu0 %v858_v37  ;;  %v855_v40 = vsel %vm853_vm11, %v784_v36, %v786_v35 }
 0x294   : > { %943 = vmatprep.subr.mxu0 %v857_v39 }
 0x295   : > { %944 = vmatpush1.msra.mxu0 %v856_v57 }
 0x296   : > { %945 = vmatprep.subr.mxu0 %v855_v40  ;;  %v782_v41 = vpop.permute.xlu0 %781 }
 0x297   : > { %v854_v27 = vsel %vm853_vm11, %v782_v41, %v784_v36 }
 0x298   : > { %946 = vmatpush1.msra.mxu0 %v854_v27 }
 0x299   : > { %5099 = vmatmul.mubr.msk.f32.vlgmr.msra.gmra.mxu0 %vm902_vm12, %v773_v42 }
 0x29a   : > { %985 = vmatprep.mubr.f32.mxu0 %v5544_v38 }
 0x29d   : > { %5100 = vmatmul.mubr.msk.f32.gmra.mxu0 %vm902_vm12, %v774_v43 }
 0x29e   : > { %991 = vmatprep.mubr.f32.mxu0 %v5544_v38 }
 0x29f   : > { %v1027_v46 = vpop.permute.xlu1 %1026 }
 0x2a1   : > { %5101 = vmatmul.mubr.msk.f32.gmra.mxu0 %vm902_vm12, %v775_v44 }
 0x2a2   : > { %997 = vmatprep.mubr.f32.mxu0 %v5544_v38 }
 0x2a3   : > { %v1022_v7 = vpop.permute.xlu0 %1021  ;;  %v1060_v26 = vpop.permute.xlu1 %1059 }
 0x2a5   : > { %5102 = vmatmul.mubr.msk.f32.gmra.mxu0 %vm902_vm12, %v776_v45 }
 0x2a6   : > { %1799 = vmatprep.mubr.f32.mxu0 %v5544_v38 }
 0x2a7   : > { %v1017_v47 = vpop.permute.xlu0 %1016  ;;  %v1055_v10 = vpop.permute.xlu1 %1054 }
 0x2ab   : > { %v1012_v2 = vpop.permute.xlu0 %1011  ;;  %v1050_v60 = vpop.permute.xlu1 %1049 }
 0x2af   : > { %v1045_v50 = vpop.permute.xlu0 %1044  ;;  %v5275_v35 = vpop.permute.xlu1 %5274 }
 0x2b3   : > { %v5280_v36 = vpop.permute.xlu0 %5279 }
 0x359   : > { %v981_v48 = vpop.f32.mrf.mxu0 }
 0x35a   : > { %v1029_v49 = vmul.f32 %v1012_v2, %v981_v48 }
 0x35b   : > { %v983_v53 = vpop.f32.mrf.mxu0 }
 0x35c   : > { %v1062_v54 = vadd.f32 %v1045_v50, %v1029_v49  ;;  %v1030_v55 = vmul.f32 %v1012_v2, %v983_v53 }
 0x35d   : > { %v987_v56 = vpop.f32.mrf.mxu0 }
 0x35e   : > { %v1078_v9 = vmul.f32 0.01, %v1062_v54  ;;  %v1063_v58 = vadd.f32 %v1045_v50, %v1030_v55  ;;  %v1031_v59 = vmul.f32 %v1017_v47, %v987_v56  ;;  %vm1070_vm13 = vcmp.ge.f32.partialorder %v1062_v54, 0.0 }
 0x35f   : > { %v989_v61 = vpop.f32.mrf.mxu0  ;;  %v5282_v50 = vunpack.i.h.bf16 %v5280_v36 }
 0x360   : > { %v1079_v51 = vmul.f32 0.01, %v1063_v58  ;;  %v1064_v62 = vadd.f32 %v1050_v60, %v1031_v59  ;;  %v1032_v52 = vmul.f32 %v1017_v47, %v989_v61  ;;  %v5979_v63 = vsel %vm1070_vm13, %v1062_v54, %v1078_v9 }
 0x361   : > { %v993_v0 = vpop.f32.mrf.mxu0  ;;  %1150 = vrot.lane.b32.xlu1 %v5979_v63, %s5548_s20  ;;  %vm1071_vm14 = vcmp.ge.f32.partialorder %v1063_v58, 0.0  ;;  %v5281_v54 = vunpack.i.l.bf16 %v5280_v36 }
 0x362   : > { %v1080_v1 = vmul.f32 0.01, %v1064_v62  ;;  %v1065_v4 = vadd.f32 %v1050_v60, %v1032_v52  ;;  %v1033_v6 = vmul.f32 %v1022_v7, %v993_v0  ;;  %v5983_v11 = vsel %vm1071_vm14, %v1063_v58, %v1079_v51 }
 0x363   : > { %v995_v12 = vpop.f32.mrf.mxu0  ;;  %1152 = vrot.lane.b32.xlu0 %v5983_v11, %s5548_s20  ;;  %vm1072_vm15 = vcmp.ge.f32.partialorder %v1064_v62, 0.0  ;;  %v5277_v60 = vunpack.i.h.bf16 %v5275_v35  ;;  %v5276_v51 = vunpack.i.l.bf16 %v5275_v35 }
 0x364   : > { %v1081_v13 = vmul.f32 0.01, %v1065_v4  ;;  %v1066_v14 = vadd.f32 %v1055_v10, %v1033_v6  ;;  %v1034_v15 = vmul.f32 %v1022_v7, %v995_v12  ;;  %v5987_v5 = vsel %vm1072_vm15, %v1064_v62, %v1080_v1  ;;  %v1418_v1 = vld [vmem:[#allocation9 + $0x58] sm:$0xff]  ;;  %v1450_v6 = vld [vmem:[#allocation10 + $0x50] sm:$0xff] }
 0x365   : > { %v999_v16 = vpop.f32.mrf.mxu0  ;;  %vm1073_vm2 = vcmp.ge.f32.partialorder %v1065_v4, 0.0  ;;  %v1417_v12 = vld [vmem:[#allocation9 + $0x50] sm:$0xff] }
 0x366   : > { %v1082_v17 = vmul.f32 0.01, %v1066_v14  ;;  %v1067_v18 = vadd.f32 %v1055_v10, %v1034_v15  ;;  %v1035_v8 = vmul.f32 %v1027_v46, %v999_v16  ;;  %v5989_v19 = vsel %vm1073_vm2, %v1065_v4, %v1081_v13  ;;  %v1451_v4 = vld [vmem:[#allocation10 + $0x58] sm:$0xff]  ;;  %v1449_v13 = vld [vmem:[#allocation10 + $0x48] sm:$0xff]  ;;  %v1448_v15 = vld [vmem:[#allocation10 + $0x40] sm:$0xff] }
 0x367   : > { %v1001_v20 = vpop.f32.mrf.mxu0  ;;  %1156 = vrot.lane.b32.xlu0 %v5987_v5, %s5548_s20  ;;  %1158 = vrot.lane.b32.xlu1 %v5989_v19, %s5548_s20  ;;  %vm1074_vm3 = vcmp.ge.f32.partialorder %v1066_v14, 0.0 }
 0x368   : > { %v1036_v23 = vmul.f32 %v1027_v46, %v1001_v20  ;;  %v1083_v25 = vmul.f32 0.01, %v1067_v18  ;;  %v1068_v28 = vadd.f32 %v1060_v26, %v1035_v8  ;;  %v5995_v30 = vsel %vm1074_vm3, %v1066_v14, %v1082_v17  ;;  %v1415_v14 = vld [vmem:[#allocation9 + $0x40] sm:$0xff] }
 0x369   : > { %vm1075_vm4 = vcmp.ge.f32.partialorder %v1067_v18, 0.0 }
 0x36a   : > { %v1069_v29 = vadd.f32 %v1060_v26, %v1036_v23  ;;  %v1084_v31 = vmul.f32 0.01, %v1068_v28  ;;  %v6003_v33 = vsel %vm1075_vm4, %v1067_v18, %v1083_v25  ;;  %vm1076_vm6 = vcmp.ge.f32.partialorder %v1068_v28, 0.0 }
 0x36b   : > { %1162 = vrot.lane.b32.xlu0 %v5995_v30, %s5548_s20  ;;  %1134 = vrot.lane.b32.xlu1 %v5995_v30, %s5546_s16  ;;  %vm1584_vm4 = vcmask 916480  }
 0x36c   : > { %v1085_v3 = vmul.f32 0.01, %v1069_v29  ;;  %vm1077_vm5 = vcmp.ge.f32.partialorder %v1069_v29, 0.0  ;;  %v6009_v34 = vsel %vm1076_vm6, %v1068_v28, %v1084_v31 }
 0x36e   : > { %v6001_v32 = vsel %vm1077_vm5, %v1069_v29, %v1085_v3  ;;  %vm1674_vm5 = vcmask 64512  }
 0x36f   : > { %1170 = vrot.lane.b32.xlu0 %v6001_v32, %s5548_s20  ;;  %1164 = vrot.lane.b32.xlu1 %v6003_v33, %s5548_s20 }
 0x373   : > { %1136 = vrot.lane.b32.xlu0 %v6003_v33, %s5546_s16  ;;  %1168 = vrot.lane.b32.xlu1 %v6009_v34, %s5548_s20 }
 0x377   : > { %1140 = vrot.lane.b32.xlu0 %v6001_v32, %s5546_s16  ;;  %1138 = vrot.lane.b32.xlu1 %v6009_v34, %s5546_s16 }
 0x37b   : > { %1132 = vrot.lane.b32.xlu0 %v5989_v19, %s5546_s16  ;;  %1130 = vrot.lane.b32.xlu1 %v5987_v5, %s5546_s16 }
 0x37f   : > { %1128 = vrot.lane.b32.xlu0 %v5983_v11, %s5546_s16  ;;  %1126 = vrot.lane.b32.xlu1 %v5979_v63, %s5546_s16 }
 0x3d3   : > { %v1151_v37 = vpop.permute.xlu1 %1150 }
 0x3d4   : > { %1240 = vrot.lane.b32.xlu0 %v1151_v37, %s5549_s19 }
 0x3d5   : > { %v1153_v39 = vpop.permute.xlu0 %1152 }
 0x3d6   : > { %v1175_v57 = vsel %vm1174_vm7, %v1151_v37, %v1153_v39  ;;  %v1176_v53 = vsel %vm1174_vm7, %v1153_v39, %v5282_v50 }
 0x3d8   : > { %1242 = vrot.lane.b32.xlu0 %v1175_v57, %s5549_s19 }
 0x3d9   : > { %v1159_v40 = vpop.permute.xlu1 %1158  ;;  %v1157_v41 = vpop.permute.xlu0 %1156 }
 0x3da   : > { %v1178_v55 = vsel %vm1174_vm7, %v1159_v40, %v5281_v54  ;;  %v1177_v56 = vsel %vm1174_vm7, %v1157_v41, %v1159_v40 }
 0x3dd   : > { %v1135_v42 = vpop.permute.xlu1 %1134  ;;  %v1163_v27 = vpop.permute.xlu0 %1162 }
 0x3e1   : > { %v1165_v43 = vpop.permute.xlu1 %1164  ;;  %v1171_v44 = vpop.permute.xlu0 %1170 }
 0x3e2   : > { %v1179_v58 = vsel %vm1174_vm7, %v1163_v27, %v1165_v43  ;;  %v1180_v61 = vsel %vm1174_vm7, %v1165_v43, %v5277_v60  ;;  %v1182_v62 = vsel %vm1174_vm7, %v1171_v44, %v5276_v51 }
 0x3e5   : > { %v1169_v45 = vpop.permute.xlu1 %1168  ;;  %v1137_v7 = vpop.permute.xlu0 %1136 }
 0x3e6   : > { %v1144_v59 = vsel %vm764_vm10, %v1135_v42, %v1137_v7  ;;  %v1181_v52 = vsel %vm1174_vm7, %v1169_v45, %v1171_v44 }
 0x3e9   : > { %v1139_v46 = vpop.permute.xlu1 %1138  ;;  %v1141_v47 = vpop.permute.xlu0 %1140 }
 0x3ea   : > { %v1145_v0 = vsel %vm764_vm10, %v1139_v46, %v1141_v47 }
 0x3ed   : > { %v1131_v26 = vpop.permute.xlu1 %1130  ;;  %v1133_v2 = vpop.permute.xlu0 %1132 }
 0x3ee   : > { %v1143_v9 = vsel %vm764_vm10, %v1131_v26, %v1133_v2 }
 0x3f1   : > { %v1127_v10 = vpop.permute.xlu1 %1126  ;;  %v1129_v48 = vpop.permute.xlu0 %1128 }
 0x3f2   : > { %1220 = vrot.lane.b32.xlu1 %v1129_v48, %s5549_s19  ;;  %v1142_v49 = vsel %vm764_vm10, %v1127_v10, %v1129_v48 }
 0x3f3   : > { %1218 = vrot.lane.b32.xlu0 %v1142_v49, %s5549_s19 }
 0x3f6   : > { %1244 = vrot.lane.b32.xlu1 %v1176_v53, %s5549_s19 }
 0x3f7   : > { %1226 = vrot.lane.b32.xlu0 %v1133_v2, %s5549_s19 }
 0x3fa   : > { %1246 = vrot.lane.b32.xlu1 %v1157_v41, %s5549_s19 }
 0x3fb   : > { %1250 = vrot.lane.b32.xlu0 %v1178_v55, %s5549_s19 }
 0x3fe   : > { %1222 = vrot.lane.b32.xlu1 %v1131_v26, %s5549_s19 }
 0x3ff   : > { %1252 = vrot.lane.b32.xlu0 %v1163_v27, %s5549_s19 }
 0x402   : > { %1248 = vrot.lane.b32.xlu1 %v1177_v56, %s5549_s19 }
 0x403   : > { %1228 = vrot.lane.b32.xlu0 %v1135_v42, %s5549_s19 }
 0x406   : > { %1224 = vrot.lane.b32.xlu1 %v1143_v9, %s5549_s19 }
 0x407   : > { %1254 = vrot.lane.b32.xlu0 %v1179_v58, %s5549_s19 }
 0x40a   : > { %1232 = vrot.lane.b32.xlu1 %v1137_v7, %s5549_s19 }
 0x40b   : > { %1230 = vrot.lane.b32.xlu0 %v1144_v59, %s5549_s19 }
 0x40e   : > { %1256 = vrot.lane.b32.xlu1 %v1180_v61, %s5549_s19 }
 0x40f   : > { %1238 = vrot.lane.b32.xlu0 %v1141_v47, %s5549_s19 }
 0x412   : > { %1258 = vrot.lane.b32.xlu1 %v1169_v45, %s5549_s19 }
 0x413   : > { %1262 = vrot.lane.b32.xlu0 %v1182_v62, %s5549_s19 }
 0x416   : > { %1234 = vrot.lane.b32.xlu1 %v1139_v46, %s5549_s19 }
 0x417   : > { %1216 = vrot.lane.b32.xlu0 %v1127_v10, %s5549_s19 }
 0x41a   : > { %1260 = vrot.lane.b32.xlu1 %v1181_v52, %s5549_s19 }
 0x41b   : > { %1214 = vrot.lane.b32.xlu0 %v6001_v32, %s5549_s19 }
 0x41e   : > { %1212 = vrot.lane.b32.xlu1 %v6009_v34, %s5549_s19 }
 0x41f   : > { %1206 = vrot.lane.b32.xlu0 %v5995_v30, %s5549_s19 }
 0x422   : > { %5284 = vrot.lane.b32.xlu1 %v5544_v38, %s5549_s19 }
 0x423   : > { %1200 = vrot.lane.b32.xlu0 %v5987_v5, %s5549_s19 }
 0x426   : > { %1236 = vrot.lane.b32.xlu1 %v1145_v0, %s5549_s19 }
 0x427   : > { %1198 = vrot.lane.b32.xlu0 %v5544_v38, %s5549_s19 }
 0x42a   : > { %1208 = vrot.lane.b32.xlu1 %v6003_v33, %s5549_s19 }
 0x42b   : > { %1196 = vrot.lane.b32.xlu0 %v5983_v11, %s5549_s19  ;;  %v1416_v11 = vld [vmem:[#allocation9 + $0x48] sm:$0xff] }
 0x42e   : > { %1202 = vrot.lane.b32.xlu1 %v5989_v19, %s5549_s19 }
 0x42f   : > { %1436 = vperm.xlu0 %5256, %v1418_v1  }
 0x432   : > { %1194 = vrot.lane.b32.xlu1 %v5979_v63, %s5549_s19 }
 0x433   : > { %1469 = vperm.xlu0 %5256, %v1451_v4  }
 0x436   : > { %1192 = vrot.lane.b32.xlu1 %v5544_v38, %s5549_s19 }
 0x437   : > { %1464 = vperm.xlu0 %5256, %v1450_v6  }
 0x43a   : > { %1431 = vperm.xlu1 %5257, %v1417_v12  }
 0x43b   : > { %1459 = vperm.xlu0 %5256, %v1449_v13  }
 0x43e   : > { %1426 = vperm.xlu1 %5257, %v1416_v11  }
 0x43f   : > { %5289 = vrot.lane.b32.xlu0 %v5544_v38, %s5550_s22 }
 0x442   : > { %1421 = vperm.xlu1 %5257, %v1415_v14  }
 0x446   : > { %1454 = vperm.xlu1 %5257, %v1448_v15   ;;  %v1241_v16 = vpop.permute.xlu0 %1240 }
 0x44a   : > { %v1243_v5 = vpop.permute.xlu0 %1242  ;;  %5294 = vrot.lane.b32.xlu1 %v5544_v38, %s5550_s22 }
 0x44b   : > { %v1281_v2 = vsel %vm1264_vm8, %v1241_v16, %v1243_v5  ;;  %v1184_v16 = vld [vmem:[#allocation7 + $0x20] sm:$0xff] }
 0x464   : > { %v1221_v17 = vpop.permute.xlu1 %1220 }
 0x465   : > { %v6085_v63 = vpop.permute.xlu0 %1218 }
 0x466   : > { %v1274_v59 = vsel %vm1264_vm8, %v6085_v63, %v1221_v17  ;;  %v1185_v17 = vld [vmem:[#allocation7 + $0x28] sm:$0xff] }
 0x468   : > { %v1245_v18 = vpop.permute.xlu1 %1244 }
 0x469   : > { %v1227_v8 = vpop.permute.xlu0 %1226  ;;  %v1282_v46 = vsel %vm1264_vm8, %v1243_v5, %v1245_v18  ;;  %v1187_v18 = vld [vmem:[#allocation7 + $0x38] sm:$0xff] }
 0x46c   : > { %v1247_v19 = vpop.permute.xlu1 %1246 }
 0x46d   : > { %v1251_v20 = vpop.permute.xlu0 %1250 }
 0x470   : > { %v1223_v23 = vpop.permute.xlu1 %1222 }
 0x471   : > { %v1253_v25 = vpop.permute.xlu0 %1252 }
 0x474   : > { %v1249_v28 = vpop.permute.xlu1 %1248 }
 0x475   : > { %v1229_v29 = vpop.permute.xlu0 %1228  ;;  %v1284_v45 = vsel %vm1264_vm8, %v1249_v28, %v1251_v20  ;;  %v1283_v7 = vsel %vm1264_vm8, %v1247_v19, %v1249_v28 }
 0x478   : > { %v1225_v30 = vpop.permute.xlu1 %1224 }
 0x479   : > { %v1255_v3 = vpop.permute.xlu0 %1254  ;;  %v1276_v56 = vsel %vm1264_vm8, %v1225_v30, %v1227_v8  ;;  %v1275_v58 = vsel %vm1264_vm8, %v1223_v23, %v1225_v30 }
 0x47a   : > { %v1285_v44 = vsel %vm1264_vm8, %v1253_v25, %v1255_v3 }
 0x47c   : > { %v1233_v31 = vpop.permute.xlu1 %1232 }
 0x47d   : > { %v1231_v32 = vpop.permute.xlu0 %1230 }
 0x47e   : > { %v1278_v53 = vsel %vm1264_vm8, %v1231_v32, %v1233_v31  ;;  %v1277_v55 = vsel %vm1264_vm8, %v1229_v29, %v1231_v32 }
 0x480   : > { %v1257_v33 = vpop.permute.xlu1 %1256 }
 0x481   : > { %v1239_v34 = vpop.permute.xlu0 %1238  ;;  %v1286_v27 = vsel %vm1264_vm8, %v1255_v3, %v1257_v33 }
 0x484   : > { %v1259_v35 = vpop.permute.xlu1 %1258 }
 0x485   : > { %v1263_v36 = vpop.permute.xlu0 %1262 }
 0x488   : > { %v1235_v37 = vpop.permute.xlu1 %1234 }
 0x489   : > { %v1217_v39 = vpop.permute.xlu0 %1216 }
 0x48a   : > { %v1273_v62 = vsel %vm1264_vm8, %v1217_v39, %v6085_v63  ;;  %v1186_v63 = vld [vmem:[#allocation7 + $0x30] sm:$0xff] }
 0x48c   : > { %v1261_v57 = vpop.permute.xlu1 %1260 }
 0x48d   : > { %v1288_v40 = vsel %vm1264_vm8, %v1261_v57, %v1263_v36  ;;  %v1287_v41 = vsel %vm1264_vm8, %v1259_v35, %v1261_v57  ;;  %v1215_v42 = vpop.permute.xlu0 %1214 }
 0x48e   : > { %1333 = vmatprep.subr.mxu1 %v1288_v40 }
 0x48f   : > { %1334 = vmatpush1.msra.mxu1 %v1287_v41 }
 0x490   : > { %v1213_v43 = vpop.permute.xlu1 %1212  ;;  %1335 = vmatprep.subr.mxu1 %v1286_v27 }
 0x491   : > { %1336 = vmatpush1.msra.mxu1 %v1285_v44  ;;  %v1207_v47 = vpop.permute.xlu0 %1206  ;;  %v1272_v52 = vsel %vm1264_vm8, %v1213_v43, %v1215_v42 }
 0x492   : > { %1337 = vmatprep.subr.mxu1 %v1284_v45 }
 0x493   : > { %1338 = vmatpush1.msra.mxu1 %v1283_v7 }
 0x494   : > { %v5285_v26 = vpop.permute.xlu1 %5284  ;;  %1339 = vmatprep.subr.mxu1 %v1282_v46 }
 0x495   : > { %1340 = vmatpush1.msra.mxu1 %v1281_v2  ;;  %v1201_v50 = vpop.permute.xlu0 %1200  ;;  %v5286_v9 = vunpack.i.l.bf16 %v5285_v26  ;;  %v5287_v60 = vunpack.i.h.bf16 %v5285_v26 }
 0x497   : > { %v1271_v0 = vsel %vm1264_vm8, %v5286_v9, %v1213_v43  ;;  %v1269_v6 = vsel %vm1264_vm8, %v5287_v60, %v1207_v47 }
 0x498   : > { %v1237_v10 = vpop.permute.xlu1 %1236 }
 0x499   : > { %v1280_v48 = vsel %vm1264_vm8, %v1237_v10, %v1239_v34  ;;  %v1279_v49 = vsel %vm1264_vm8, %v1235_v37, %v1237_v10  ;;  %v1199_v61 = vpop.permute.xlu0 %1198 }
 0x49a   : > { %1341 = vmatprep.subr.mxu1 %v1280_v48  ;;  %v1267_v11 = vsel %vm1264_vm8, %v1199_v61, %v1201_v50 }
 0x49b   : > { %1342 = vmatpush1.msra.mxu1 %v1279_v49 }
 0x49c   : > { %v1209_v54 = vpop.permute.xlu1 %1208  ;;  %1343 = vmatprep.subr.mxu1 %v1278_v53 }
 0x49d   : > { %1344 = vmatpush1.msra.mxu1 %v1277_v55  ;;  %v1270_v1 = vsel %vm1264_vm8, %v1207_v47, %v1209_v54  ;;  %v1197_v13 = vpop.permute.xlu0 %1196 }
 0x49e   : > { %1345 = vmatprep.subr.mxu1 %v1276_v56 }
 0x49f   : > { %1346 = vmatpush1.msra.mxu1 %v1275_v58 }
 0x4a0   : > { %v1203_v51 = vpop.permute.xlu1 %1202  ;;  %1347 = vmatprep.subr.mxu1 %v1274_v59 }
 0x4a1   : > { %1348 = vmatpush1.msra.mxu1 %v1273_v62  ;;  %v1268_v12 = vsel %vm1264_vm8, %v1201_v50, %v1203_v51 }
 0x4a2   : > { %1349 = vmatprep.subr.mxu1 %v1272_v52 }
 0x4a3   : > { %1350 = vmatpush1.msra.mxu1 %v1271_v0 }
 0x4a4   : > { %v1195_v4 = vpop.permute.xlu1 %1194  ;;  %1351 = vmatprep.subr.mxu1 %v1270_v1 }
 0x4a5   : > { %1352 = vmatpush1.msra.mxu1 %v1269_v6  ;;  %v1266_v14 = vsel %vm1264_vm8, %v1195_v4, %v1197_v13 }
 0x4a6   : > { %1353 = vmatprep.subr.mxu1 %v1268_v12 }
 0x4a7   : > { %1354 = vmatpush1.msra.mxu1 %v1267_v11 }
 0x4a8   : > { %v1193_v15 = vpop.permute.xlu1 %1192  ;;  %1355 = vmatprep.subr.mxu1 %v1266_v14 }
 0x4a9   : > { %v1265_v5 = vsel %vm1264_vm8, %v1193_v15, %v1195_v4 }
 0x4aa   : > { %1356 = vmatpush1.msra.mxu1 %v1265_v5  ;;  %v1437_v19 = vpop.permute.xlu0 %1436 }
 0x4ab   : > { %5103 = vmatmul.mubr.msk.f32.vlgmr.msra.gmra.mxu1 %vm902_vm12, %v1184_v16 }
 0x4ac   : > { %1395 = vmatprep.mubr.f32.mxu1 %v5544_v38 }
 0x4ae   : > { %v1470_v23 = vpop.permute.xlu0 %1469 }
 0x4af   : > { %5104 = vmatmul.mubr.msk.f32.gmra.mxu1 %vm902_vm12, %v1185_v17 }
 0x4b0   : > { %1401 = vmatprep.mubr.f32.mxu1 %v5544_v38 }
 0x4b2   : > { %v1465_v28 = vpop.permute.xlu0 %1464 }
 0x4b3   : > { %5105 = vmatmul.mubr.msk.f32.gmra.mxu1 %vm902_vm12, %v1186_v63 }
 0x4b4   : > { %1407 = vmatprep.mubr.f32.mxu1 %v5544_v38 }
 0x4b5   : > { %v1432_v8 = vpop.permute.xlu1 %1431 }
 0x4b6   : > { %v1460_v39 = vpop.permute.xlu0 %1459 }
 0x4b7   : > { %5106 = vmatmul.mubr.msk.f32.gmra.mxu1 %vm902_vm12, %v1187_v18 }
 0x4b8   : > { %2208 = vmatprep.mubr.f32.mxu1 %v5544_v38 }
 0x4b9   : > { %v1427_v20 = vpop.permute.xlu1 %1426 }
 0x4ba   : > { %v5290_v4 = vpop.permute.xlu0 %5289 }
 0x4bd   : > { %v1422_v25 = vpop.permute.xlu1 %1421 }
 0x4c1   : > { %v1455_v3 = vpop.permute.xlu1 %1454 }
 0x4c5   : > { %v5295_v6 = vpop.permute.xlu1 %5294 }
 0x56b   : > { %v1391_v29 = vpop.f32.mrf.mxu1 }
 0x56c   : > { %v1439_v30 = vmul.f32 %v1422_v25, %v1391_v29 }
 0x56d   : > { %v1393_v31 = vpop.f32.mrf.mxu1 }
 0x56e   : > { %v1472_v32 = vadd.f32 %v1455_v3, %v1439_v30  ;;  %v1440_v33 = vmul.f32 %v1422_v25, %v1393_v31 }
 0x56f   : > { %v1397_v34 = vpop.f32.mrf.mxu1 }
 0x570   : > { %v1488_v35 = vmul.f32 0.01, %v1472_v32  ;;  %v1473_v36 = vadd.f32 %v1455_v3, %v1440_v33  ;;  %v1441_v37 = vmul.f32 %v1427_v20, %v1397_v34  ;;  %vm1480_vm9 = vcmp.ge.f32.partialorder %v1472_v32, 0.0 }
 0x571   : > { %v1399_v57 = vpop.f32.mrf.mxu1  ;;  %v5297_v3 = vunpack.i.h.bf16 %v5295_v6 }
 0x572   : > { %v1489_v40 = vmul.f32 0.01, %v1473_v36  ;;  %v1474_v41 = vadd.f32 %v1460_v39, %v1441_v37  ;;  %v1442_v42 = vmul.f32 %v1427_v20, %v1399_v57  ;;  %v6125_v27 = vsel %vm1480_vm9, %v1472_v32, %v1488_v35 }
 0x573   : > { %1560 = vrot.lane.b32.xlu0 %v6125_v27, %s5550_s22  ;;  %v1403_v43 = vpop.f32.mrf.mxu1  ;;  %vm1481_vm10 = vcmp.ge.f32.partialorder %v1473_v36, 0.0  ;;  %v5296_v32 = vunpack.i.l.bf16 %v5295_v6 }
 0x574   : > { %v1490_v44 = vmul.f32 0.01, %v1474_v41  ;;  %v1475_v45 = vadd.f32 %v1460_v39, %v1442_v42  ;;  %v1443_v7 = vmul.f32 %v1432_v8, %v1403_v43  ;;  %v6129_v46 = vsel %vm1481_vm10, %v1473_v36, %v1489_v40 }
 0x575   : > { %1562 = vrot.lane.b32.xlu1 %v6129_v46, %s5550_s22  ;;  %v1405_v47 = vpop.f32.mrf.mxu1  ;;  %vm1482_vm11 = vcmp.ge.f32.partialorder %v1474_v41, 0.0  ;;  %v5292_v39 = vunpack.i.h.bf16 %v5290_v4  ;;  %v5291_v40 = vunpack.i.l.bf16 %v5290_v4 }
 0x576   : > { %v1491_v26 = vmul.f32 0.01, %v1475_v45  ;;  %v1476_v2 = vadd.f32 %v1465_v28, %v1443_v7  ;;  %v1444_v10 = vmul.f32 %v1432_v8, %v1405_v47  ;;  %vm1483_vm13 = vcmp.ge.f32.partialorder %v1475_v45, 0.0  ;;  %v1860_v7 = vld [vmem:[#allocation10 + $0x70] sm:$0xff] }
 0x577   : > { %v1409_v48 = vpop.f32.mrf.mxu1  ;;  %v6133_v49 = vsel %vm1482_vm11, %v1474_v41, %v1490_v44  ;;  %v1828_v44 = vld [vmem:[#allocation9 + $0x78] sm:$0xff]  ;;  %v1827_v47 = vld [vmem:[#allocation9 + $0x70] sm:$0xff] }
 0x578   : > { %v1492_v50 = vmul.f32 0.01, %v1476_v2  ;;  %v1477_v53 = vadd.f32 %v1465_v28, %v1444_v10  ;;  %v1445_v54 = vmul.f32 %v1437_v19, %v1409_v48  ;;  %v6135_v55 = vsel %vm1483_vm13, %v1475_v45, %v1491_v26  ;;  %v1861_v45 = vld [vmem:[#allocation10 + $0x78] sm:$0xff]  ;;  %v1859_v26 = vld [vmem:[#allocation10 + $0x68] sm:$0xff]  ;;  %v1858_v10 = vld [vmem:[#allocation10 + $0x60] sm:$0xff] }
 0x579   : > { %v1411_v56 = vpop.f32.mrf.mxu1  ;;  %1568 = vrot.lane.b32.xlu0 %v6135_v55, %s5550_s22  ;;  %1566 = vrot.lane.b32.xlu1 %v6133_v49, %s5550_s22  ;;  %vm1484_vm14 = vcmp.ge.f32.partialorder %v1476_v2, 0.0 }
 0x57a   : > { %v1446_v9 = vmul.f32 %v1437_v19, %v1411_v56  ;;  %v1493_v58 = vmul.f32 0.01, %v1477_v53  ;;  %v1478_v59 = vadd.f32 %v1470_v23, %v1445_v54  ;;  %v6141_v61 = vsel %vm1484_vm14, %v1476_v2, %v1492_v50  ;;  %v1825_v2 = vld [vmem:[#allocation9 + $0x60] sm:$0xff] }
 0x57b   : > { %vm1485_vm15 = vcmp.ge.f32.partialorder %v1477_v53, 0.0 }
 0x57c   : > { %v1479_v60 = vadd.f32 %v1470_v23, %v1446_v9  ;;  %v1494_v62 = vmul.f32 0.01, %v1478_v59  ;;  %v6147_v52 = vsel %vm1485_vm15, %v1477_v53, %v1493_v58  ;;  %vm1486_vm3 = vcmp.ge.f32.partialorder %v1478_v59, 0.0 }
 0x57d   : > { %1544 = vrot.lane.b32.xlu0 %v6141_v61, %s5548_s20  ;;  %1572 = vrot.lane.b32.xlu1 %v6141_v61, %s5550_s22  ;;  %vm2083_vm15 = vcmask 130048  }
 0x57e   : > { %v1495_v51 = vmul.f32 0.01, %v1479_v60  ;;  %vm1487_vm2 = vcmp.ge.f32.partialorder %v1479_v60, 0.0  ;;  %v6155_v1 = vsel %vm1486_vm3, %v1478_v59, %v1494_v62 }
 0x580   : > { %v6149_v0 = vsel %vm1487_vm2, %v1479_v60, %v1495_v51 }
 0x581   : > { %1574 = vrot.lane.b32.xlu0 %v6147_v52, %s5550_s22  ;;  %1580 = vrot.lane.b32.xlu1 %v6149_v0, %s5550_s22 }
 0x585   : > { %1578 = vrot.lane.b32.xlu0 %v6155_v1, %s5550_s22  ;;  %1546 = vrot.lane.b32.xlu1 %v6147_v52, %s5548_s20 }
 0x589   : > { %1548 = vrot.lane.b32.xlu0 %v6155_v1, %s5548_s20  ;;  %1550 = vrot.lane.b32.xlu1 %v6149_v0, %s5548_s20 }
 0x58d   : > { %1540 = vrot.lane.b32.xlu0 %v6133_v49, %s5548_s20  ;;  %1542 = vrot.lane.b32.xlu1 %v6135_v55, %s5548_s20 }
 0x591   : > { %1536 = vrot.lane.b32.xlu0 %v6125_v27, %s5548_s20  ;;  %1538 = vrot.lane.b32.xlu1 %v6129_v46, %s5548_s20  ;;  %s4987_s20 = sshll.u32 %s6801_s9, 4  ;;  %s4988_s20 = int_to_ptr.vmem [resolvable:$true] %s4987_s20 }
 0x5e5   : > { %v1561_v12 = vpop.permute.xlu0 %1560 }
 0x5e6   : > { %1650 = vrot.lane.b32.xlu1 %v1561_v12, %s5551_s25 }
 0x5e7   : > { %v1563_v13 = vpop.permute.xlu1 %1562 }
 0x5e8   : > { %v1585_v11 = vsel %vm1584_vm4, %v1561_v12, %v1563_v13  ;;  %v1586_v31 = vsel %vm1584_vm4, %v1563_v13, %v5297_v3 }
 0x5ea   : > { %1652 = vrot.lane.b32.xlu1 %v1585_v11, %s5551_s25 }
 0x5eb   : > { %v1567_v14 = vpop.permute.xlu1 %1566  ;;  %v1569_v15 = vpop.permute.xlu0 %1568 }
 0x5ec   : > { %v1588_v33 = vsel %vm1584_vm4, %v1569_v15, %v5296_v32  ;;  %v1587_v34 = vsel %vm1584_vm4, %v1567_v14, %v1569_v15 }
 0x5ef   : > { %v1573_v16 = vpop.permute.xlu1 %1572  ;;  %v1545_v5 = vpop.permute.xlu0 %1544 }
 0x5f3   : > { %v1581_v17 = vpop.permute.xlu1 %1580  ;;  %v1575_v63 = vpop.permute.xlu0 %1574 }
 0x5f4   : > { %v1589_v36 = vsel %vm1584_vm4, %v1573_v16, %v1575_v63  ;;  %v1590_v57 = vsel %vm1584_vm4, %v1575_v63, %v5292_v39  ;;  %v1592_v41 = vsel %vm1584_vm4, %v1581_v17, %v5291_v40 }
 0x5f7   : > { %v1547_v18 = vpop.permute.xlu1 %1546  ;;  %v1579_v8 = vpop.permute.xlu0 %1578 }
 0x5f8   : > { %v1554_v37 = vsel %vm1174_vm7, %v1545_v5, %v1547_v18  ;;  %v1591_v42 = vsel %vm1584_vm4, %v1579_v8, %v1581_v17 }
 0x5fb   : > { %v1551_v19 = vpop.permute.xlu1 %1550  ;;  %v1549_v20 = vpop.permute.xlu0 %1548 }
 0x5fc   : > { %v1555_v43 = vsel %vm1174_vm7, %v1549_v20, %v1551_v19 }
 0x5ff   : > { %v1543_v23 = vpop.permute.xlu1 %1542  ;;  %v1541_v25 = vpop.permute.xlu0 %1540 }
 0x600   : > { %v1553_v35 = vsel %vm1174_vm7, %v1541_v25, %v1543_v23 }
 0x603   : > { %v1539_v28 = vpop.permute.xlu1 %1538  ;;  %v1537_v29 = vpop.permute.xlu0 %1536 }
 0x604   : > { %1630 = vrot.lane.b32.xlu0 %v1539_v28, %s5551_s25  ;;  %v1552_v30 = vsel %vm1174_vm7, %v1537_v29, %v1539_v28 }
 0x605   : > { %1628 = vrot.lane.b32.xlu1 %v1552_v30, %s5551_s25 }
 0x608   : > { %1654 = vrot.lane.b32.xlu0 %v1586_v31, %s5551_s25 }
 0x609   : > { %1636 = vrot.lane.b32.xlu1 %v1543_v23, %s5551_s25 }
 0x60c   : > { %1656 = vrot.lane.b32.xlu0 %v1567_v14, %s5551_s25 }
 0x60d   : > { %1660 = vrot.lane.b32.xlu1 %v1588_v33, %s5551_s25 }
 0x610   : > { %1632 = vrot.lane.b32.xlu0 %v1541_v25, %s5551_s25 }
 0x611   : > { %1662 = vrot.lane.b32.xlu1 %v1573_v16, %s5551_s25 }
 0x614   : > { %1658 = vrot.lane.b32.xlu0 %v1587_v34, %s5551_s25 }
 0x615   : > { %1638 = vrot.lane.b32.xlu1 %v1545_v5, %s5551_s25 }
 0x618   : > { %1634 = vrot.lane.b32.xlu0 %v1553_v35, %s5551_s25 }
 0x619   : > { %1664 = vrot.lane.b32.xlu1 %v1589_v36, %s5551_s25 }
 0x61c   : > { %1642 = vrot.lane.b32.xlu0 %v1547_v18, %s5551_s25 }
 0x61d   : > { %1640 = vrot.lane.b32.xlu1 %v1554_v37, %s5551_s25 }
 0x620   : > { %1666 = vrot.lane.b32.xlu0 %v1590_v57, %s5551_s25 }
 0x621   : > { %1648 = vrot.lane.b32.xlu1 %v1551_v19, %s5551_s25 }
 0x624   : > { %1668 = vrot.lane.b32.xlu0 %v1579_v8, %s5551_s25 }
 0x625   : > { %1672 = vrot.lane.b32.xlu1 %v1592_v41, %s5551_s25 }
 0x628   : > { %1644 = vrot.lane.b32.xlu0 %v1549_v20, %s5551_s25 }
 0x629   : > { %1626 = vrot.lane.b32.xlu1 %v1537_v29, %s5551_s25 }
 0x62c   : > { %1670 = vrot.lane.b32.xlu0 %v1591_v42, %s5551_s25 }
 0x62d   : > { %1624 = vrot.lane.b32.xlu1 %v6149_v0, %s5551_s25 }
 0x630   : > { %1622 = vrot.lane.b32.xlu0 %v6155_v1, %s5551_s25 }
 0x631   : > { %1616 = vrot.lane.b32.xlu1 %v6141_v61, %s5551_s25 }
 0x634   : > { %5299 = vrot.lane.b32.xlu0 %v5544_v38, %s5551_s25 }
 0x635   : > { %1610 = vrot.lane.b32.xlu1 %v6133_v49, %s5551_s25 }
 0x638   : > { %1646 = vrot.lane.b32.xlu0 %v1555_v43, %s5551_s25 }
 0x639   : > { %1608 = vrot.lane.b32.xlu1 %v5544_v38, %s5551_s25 }
 0x63c   : > { %1618 = vrot.lane.b32.xlu0 %v6147_v52, %s5551_s25 }
 0x63d   : > { %1606 = vrot.lane.b32.xlu1 %v6129_v46, %s5551_s25  ;;  %v1826_v46 = vld [vmem:[#allocation9 + $0x68] sm:$0xff] }
 0x640   : > { %1612 = vrot.lane.b32.xlu0 %v6135_v55, %s5551_s25 }
 0x641   : > { %1846 = vperm.xlu1 %5257, %v1828_v44  }
 0x644   : > { %1604 = vrot.lane.b32.xlu0 %v6125_v27, %s5551_s25 }
 0x645   : > { %1879 = vperm.xlu1 %5257, %v1861_v45  }
 0x648   : > { %1602 = vrot.lane.b32.xlu0 %v5544_v38, %s5551_s25  ;;  %s6914_s25 = scalar_lea.hbm %s6960_s7, %s5157_s18 }
 0x649   : > { %1874 = vperm.xlu1 %5257, %v1860_v7  }
 0x64c   : > { %1841 = vperm.xlu0 %5256, %v1827_v47  }
 0x64d   : > { %1869 = vperm.xlu1 %5257, %v1859_v26  }
 0x650   : > { %1836 = vperm.xlu0 %5256, %v1826_v46  }
 0x651   : > { %5304 = vrot.lane.b32.xlu1 %v5544_v38, %s5552_s21 }
 0x654   : > { %1831 = vperm.xlu0 %5256, %v1825_v2  }
 0x658   : > { %1864 = vperm.xlu0 %5256, %v1858_v10   ;;  %v1651_v48 = vpop.permute.xlu1 %1650 }
 0x65c   : > { %v1653_v49 = vpop.permute.xlu1 %1652  ;;  %5309 = vrot.lane.b32.xlu0 %v5544_v38, %s5552_s21 }
 0x65d   : > { %v1691_v25 = vsel %vm1674_vm5, %v1651_v48, %v1653_v49  ;;  %v1594_v48 = vld [vmem:[#allocation7 + $0x40] sm:$0xff] }
 0x676   : > { %v1631_v50 = vpop.permute.xlu0 %1630 }
 0x677   : > { %v1629_v27 = vpop.permute.xlu1 %1628 }
 0x678   : > { %v1684_v37 = vsel %vm1674_vm5, %v1629_v27, %v1631_v50  ;;  %v1595_v50 = vld [vmem:[#allocation7 + $0x48] sm:$0xff] }
 0x67a   : > { %v1655_v53 = vpop.permute.xlu0 %1654 }
 0x67b   : > { %v1637_v54 = vpop.permute.xlu1 %1636  ;;  %v1692_v19 = vsel %vm1674_vm5, %v1653_v49, %v1655_v53  ;;  %v1597_v53 = vld [vmem:[#allocation7 + $0x58] sm:$0xff] }
 0x67e   : > { %v1657_v55 = vpop.permute.xlu0 %1656 }
 0x67f   : > { %v1661_v56 = vpop.permute.xlu1 %1660 }
 0x682   : > { %v1633_v9 = vpop.permute.xlu0 %1632 }
 0x683   : > { %v1663_v58 = vpop.permute.xlu1 %1662 }
 0x686   : > { %v1659_v59 = vpop.permute.xlu0 %1658 }
 0x687   : > { %v1639_v60 = vpop.permute.xlu1 %1638  ;;  %v1694_v18 = vsel %vm1674_vm5, %v1659_v59, %v1661_v56  ;;  %v1693_v8 = vsel %vm1674_vm5, %v1657_v55, %v1659_v59 }
 0x68a   : > { %v1635_v61 = vpop.permute.xlu0 %1634 }
 0x68b   : > { %v1665_v51 = vpop.permute.xlu1 %1664  ;;  %v1686_v34 = vsel %vm1674_vm5, %v1635_v61, %v1637_v54  ;;  %v1685_v36 = vsel %vm1674_vm5, %v1633_v9, %v1635_v61 }
 0x68c   : > { %v1695_v63 = vsel %vm1674_vm5, %v1663_v58, %v1665_v51 }
 0x68e   : > { %v1643_v62 = vpop.permute.xlu0 %1642 }
 0x68f   : > { %v1641_v52 = vpop.permute.xlu1 %1640 }
 0x690   : > { %v1688_v31 = vsel %vm1674_vm5, %v1641_v52, %v1643_v62  ;;  %v1687_v33 = vsel %vm1674_vm5, %v1639_v60, %v1641_v52 }
 0x692   : > { %v1667_v0 = vpop.permute.xlu0 %1666 }
 0x693   : > { %v1649_v1 = vpop.permute.xlu1 %1648  ;;  %v1696_v5 = vsel %vm1674_vm5, %v1665_v51, %v1667_v0 }
 0x696   : > { %v1669_v4 = vpop.permute.xlu0 %1668 }
 0x697   : > { %v1673_v6 = vpop.permute.xlu1 %1672 }
 0x69a   : > { %v1645_v12 = vpop.permute.xlu0 %1644 }
 0x69b   : > { %v1627_v13 = vpop.permute.xlu1 %1626 }
 0x69c   : > { %v1683_v39 = vsel %vm1674_vm5, %v1627_v13, %v1629_v27  ;;  %v1596_v27 = vld [vmem:[#allocation7 + $0x50] sm:$0xff] }
 0x69e   : > { %v1671_v11 = vpop.permute.xlu0 %1670 }
 0x69f   : > { %v1698_v14 = vsel %vm1674_vm5, %v1671_v11, %v1673_v6  ;;  %v1697_v15 = vsel %vm1674_vm5, %v1669_v4, %v1671_v11  ;;  %v1625_v16 = vpop.permute.xlu1 %1624 }
 0x6a0   : > { %1743 = vmatprep.subr.mxu0 %v1698_v14 }
 0x6a1   : > { %1744 = vmatpush1.msra.mxu0 %v1697_v15 }
 0x6a2   : > { %v1623_v17 = vpop.permute.xlu0 %1622  ;;  %1745 = vmatprep.subr.mxu0 %v1696_v5 }
 0x6a3   : > { %1746 = vmatpush1.msra.mxu0 %v1695_v63  ;;  %v1617_v20 = vpop.permute.xlu1 %1616  ;;  %v1682_v42 = vsel %vm1674_vm5, %v1623_v17, %v1625_v16 }
 0x6a4   : > { %1747 = vmatprep.subr.mxu0 %v1694_v18 }
 0x6a5   : > { %1748 = vmatpush1.msra.mxu0 %v1693_v8 }
 0x6a6   : > { %v5300_v23 = vpop.permute.xlu0 %5299  ;;  %1749 = vmatprep.subr.mxu0 %v1692_v19 }
 0x6a7   : > { %1750 = vmatpush1.msra.mxu0 %v1691_v25  ;;  %v1611_v3 = vpop.permute.xlu1 %1610  ;;  %v5301_v35 = vunpack.i.l.bf16 %v5300_v23  ;;  %v5302_v57 = vunpack.i.h.bf16 %v5300_v23 }
 0x6a9   : > { %v1681_v43 = vsel %vm1674_vm5, %v5301_v35, %v1623_v17  ;;  %v1679_v7 = vsel %vm1674_vm5, %v5302_v57, %v1617_v20 }
 0x6aa   : > { %v1647_v28 = vpop.permute.xlu0 %1646 }
 0x6ab   : > { %v1690_v29 = vsel %vm1674_vm5, %v1647_v28, %v1649_v1  ;;  %v1689_v30 = vsel %vm1674_vm5, %v1645_v12, %v1647_v28  ;;  %v1609_v40 = vpop.permute.xlu1 %1608 }
 0x6ac   : > { %1751 = vmatprep.subr.mxu0 %v1690_v29  ;;  %v1677_v26 = vsel %vm1674_vm5, %v1609_v40, %v1611_v3 }
 0x6ad   : > { %1752 = vmatpush1.msra.mxu0 %v1689_v30 }
 0x6ae   : > { %v1619_v32 = vpop.permute.xlu0 %1618  ;;  %1753 = vmatprep.subr.mxu0 %v1688_v31 }
 0x6af   : > { %1754 = vmatpush1.msra.mxu0 %v1687_v33  ;;  %v1680_v44 = vsel %vm1674_vm5, %v1617_v20, %v1619_v32  ;;  %v1607_v46 = vpop.permute.xlu1 %1606 }
 0x6b0   : > { %1755 = vmatprep.subr.mxu0 %v1686_v34 }
 0x6b1   : > { %1756 = vmatpush1.msra.mxu0 %v1685_v36 }
 0x6b2   : > { %v1613_v41 = vpop.permute.xlu0 %1612  ;;  %1757 = vmatprep.subr.mxu0 %v1684_v37 }
 0x6b3   : > { %1758 = vmatpush1.msra.mxu0 %v1683_v39  ;;  %v1678_v47 = vsel %vm1674_vm5, %v1611_v3, %v1613_v41 }
 0x6b4   : > { %1759 = vmatprep.subr.mxu0 %v1682_v42 }
 0x6b5   : > { %1760 = vmatpush1.msra.mxu0 %v1681_v43 }
 0x6b6   : > { %v1605_v45 = vpop.permute.xlu0 %1604  ;;  %1761 = vmatprep.subr.mxu0 %v1680_v44 }
 0x6b7   : > { %1762 = vmatpush1.msra.mxu0 %v1679_v7  ;;  %v1676_v2 = vsel %vm1674_vm5, %v1605_v45, %v1607_v46 }
 0x6b8   : > { %1763 = vmatprep.subr.mxu0 %v1678_v47 }
 0x6b9   : > { %1764 = vmatpush1.msra.mxu0 %v1677_v26 }
 0x6ba   : > { %v1603_v10 = vpop.permute.xlu0 %1602  ;;  %1765 = vmatprep.subr.mxu0 %v1676_v2 }
 0x6bb   : > { %v1675_v49 = vsel %vm1674_vm5, %v1603_v10, %v1605_v45 }
 0x6bc   : > { %1766 = vmatpush1.msra.mxu0 %v1675_v49  ;;  %v1847_v55 = vpop.permute.xlu1 %1846 }
 0x6bd   : > { %5107 = vmatmul.mubr.msk.f32.vlgmr.msra.gmra.mxu0 %vm902_vm12, %v1594_v48 }
 0x6be   : > { %1805 = vmatprep.mubr.f32.mxu0 %v5544_v38 }
 0x6c0   : > { %v1880_v9 = vpop.permute.xlu1 %1879 }
 0x6c1   : > { %5108 = vmatmul.mubr.msk.f32.gmra.mxu0 %vm902_vm12, %v1595_v50 }
 0x6c2   : > { %1811 = vmatprep.mubr.f32.mxu0 %v5544_v38 }
 0x6c4   : > { %v1875_v59 = vpop.permute.xlu1 %1874 }
 0x6c5   : > { %5109 = vmatmul.mubr.msk.f32.gmra.mxu0 %vm902_vm12, %v1596_v27 }
 0x6c6   : > { %1817 = vmatprep.mubr.f32.mxu0 %v5544_v38 }
 0x6c7   : > { %v1842_v54 = vpop.permute.xlu0 %1841 }
 0x6c8   : > { %v1870_v13 = vpop.permute.xlu1 %1869 }
 0x6c9   : > { %5110 = vmatmul.mubr.msk.f32.gmra.mxu0 %vm902_vm12, %v1597_v53 }
 0x6ca   : > { %2618 = vmatprep.mubr.f32.mxu0 %v5544_v38 }
 0x6cb   : > { %v1837_v56 = vpop.permute.xlu0 %1836 }
 0x6cc   : > { %v5305_v45 = vpop.permute.xlu1 %5304 }
 0x6cf   : > { %v1832_v58 = vpop.permute.xlu0 %1831 }
 0x6d3   : > { %v1865_v51 = vpop.permute.xlu0 %1864 }
 0x6d7   : > { %v5310_v7 = vpop.permute.xlu0 %5309 }
 0x77d   : > { %v1801_v60 = vpop.f32.mrf.mxu0 }
 0x77e   : > { %v1849_v61 = vmul.f32 %v1832_v58, %v1801_v60 }
 0x77f   : > { %v1803_v62 = vpop.f32.mrf.mxu0 }
 0x780   : > { %v1882_v52 = vadd.f32 %v1865_v51, %v1849_v61  ;;  %v1850_v0 = vmul.f32 %v1832_v58, %v1803_v62 }
 0x781   : > { %v1807_v1 = vpop.f32.mrf.mxu0 }
 0x782   : > { %v1898_v4 = vmul.f32 0.01, %v1882_v52  ;;  %v1883_v6 = vadd.f32 %v1865_v51, %v1850_v0  ;;  %v1851_v12 = vmul.f32 %v1837_v56, %v1807_v1  ;;  %vm1890_vm6 = vcmp.ge.f32.partialorder %v1882_v52, 0.0 }
 0x783   : > { %v1809_v11 = vpop.f32.mrf.mxu0  ;;  %v5312_v51 = vunpack.i.h.bf16 %v5310_v7 }
 0x784   : > { %v1899_v14 = vmul.f32 0.01, %v1883_v6  ;;  %v1884_v15 = vadd.f32 %v1870_v13, %v1851_v12  ;;  %v1852_v16 = vmul.f32 %v1837_v56, %v1809_v11  ;;  %v6267_v5 = vsel %vm1890_vm6, %v1882_v52, %v1898_v4 }
 0x785   : > { %1970 = vrot.lane.b32.xlu1 %v6267_v5, %s5552_s21  ;;  %v1813_v17 = vpop.f32.mrf.mxu0  ;;  %vm1891_vm7 = vcmp.ge.f32.partialorder %v1883_v6, 0.0  ;;  %v5311_v52 = vunpack.i.l.bf16 %v5310_v7 }
 0x786   : > { %v1900_v63 = vmul.f32 0.01, %v1884_v15  ;;  %v1885_v18 = vadd.f32 %v1870_v13, %v1852_v16  ;;  %v1853_v8 = vmul.f32 %v1842_v54, %v1813_v17  ;;  %v6271_v19 = vsel %vm1891_vm7, %v1883_v6, %v1899_v14 }
 0x787   : > { %1972 = vrot.lane.b32.xlu0 %v6271_v19, %s5552_s21  ;;  %v1815_v20 = vpop.f32.mrf.mxu0  ;;  %vm1892_vm8 = vcmp.ge.f32.partialorder %v1884_v15, 0.0  ;;  %v5307_v13 = vunpack.i.h.bf16 %v5305_v45  ;;  %v5306_v14 = vunpack.i.l.bf16 %v5305_v45 }
 0x788   : > { %v1901_v23 = vmul.f32 0.01, %v1885_v18  ;;  %v1886_v25 = vadd.f32 %v1875_v59, %v1853_v8  ;;  %v1854_v28 = vmul.f32 %v1842_v54, %v1815_v20  ;;  %vm1893_vm9 = vcmp.ge.f32.partialorder %v1885_v18, 0.0  ;;  %v2269_v8 = vld [vmem:[#allocation10 + $0x90] sm:$0xff] }
 0x789   : > { %v1819_v29 = vpop.f32.mrf.mxu0  ;;  %v6275_v30 = vsel %vm1892_vm8, %v1884_v15, %v1900_v63  ;;  %v2237_v63 = vld [vmem:[#allocation9 + $0x98] sm:$0xff]  ;;  %v2236_v20 = vld [vmem:[#allocation9 + $0x90] sm:$0xff] }
 0x78a   : > { %v1902_v3 = vmul.f32 0.01, %v1886_v25  ;;  %v1887_v31 = vadd.f32 %v1875_v59, %v1854_v28  ;;  %v1855_v32 = vmul.f32 %v1847_v55, %v1819_v29  ;;  %v6277_v33 = vsel %vm1893_vm9, %v1885_v18, %v1901_v23  ;;  %v2270_v18 = vld [vmem:[#allocation10 + $0x98] sm:$0xff]  ;;  %v2268_v23 = vld [vmem:[#allocation10 + $0x88] sm:$0xff]  ;;  %v2267_v28 = vld [vmem:[#allocation10 + $0x80] sm:$0xff] }
 0x78b   : > { %v1821_v34 = vpop.f32.mrf.mxu0  ;;  %1978 = vrot.lane.b32.xlu1 %v6277_v33, %s5552_s21  ;;  %1976 = vrot.lane.b32.xlu0 %v6275_v30, %s5552_s21  ;;  %vm1894_vm10 = vcmp.ge.f32.partialorder %v1886_v25, 0.0 }
 0x78c   : > { %v1856_v35 = vmul.f32 %v1847_v55, %v1821_v34  ;;  %v1903_v36 = vmul.f32 0.01, %v1887_v31  ;;  %v1888_v37 = vadd.f32 %v1880_v9, %v1855_v32  ;;  %v6283_v57 = vsel %vm1894_vm10, %v1886_v25, %v1902_v3  ;;  %v2234_v25 = vld [vmem:[#allocation9 + $0x80] sm:$0xff] }
 0x78d   : > { %vm1895_vm11 = vcmp.ge.f32.partialorder %v1887_v31, 0.0  ;;  %vm2403_vm10 = vcmask 523264  }
 0x78e   : > { %v1889_v39 = vadd.f32 %v1880_v9, %v1856_v35  ;;  %v1904_v41 = vmul.f32 0.01, %v1888_v37  ;;  %v6289_v42 = vsel %vm1895_vm11, %v1887_v31, %v1903_v36  ;;  %vm1896_vm14 = vcmp.ge.f32.partialorder %v1888_v37, 0.0 }
 0x78f   : > { %1954 = vrot.lane.b32.xlu1 %v6283_v57, %s5550_s22  ;;  %1982 = vrot.lane.b32.xlu0 %v6283_v57, %s5552_s21  ;;  %vm2493_vm11 = vcmask 261120  }
 0x790   : > { %v1905_v40 = vmul.f32 0.01, %v1889_v39  ;;  %vm1897_vm13 = vcmp.ge.f32.partialorder %v1889_v39, 0.0  ;;  %v6297_v44 = vsel %vm1896_vm14, %v1888_v37, %v1904_v41 }
 0x792   : > { %v6291_v43 = vsel %vm1897_vm13, %v1889_v39, %v1905_v40 }
 0x793   : > { %1984 = vrot.lane.b32.xlu1 %v6289_v42, %s5552_s21  ;;  %1990 = vrot.lane.b32.xlu0 %v6291_v43, %s5552_s21 }
 0x797   : > { %1988 = vrot.lane.b32.xlu1 %v6297_v44, %s5552_s21  ;;  %1956 = vrot.lane.b32.xlu0 %v6289_v42, %s5550_s22 }
 0x79b   : > { %1958 = vrot.lane.b32.xlu1 %v6297_v44, %s5550_s22  ;;  %1960 = vrot.lane.b32.xlu0 %v6291_v43, %s5550_s22 }
 0x79f   : > { %1950 = vrot.lane.b32.xlu1 %v6275_v30, %s5550_s22  ;;  %1952 = vrot.lane.b32.xlu0 %v6277_v33, %s5550_s22 }
 0x7a3   : > { %1946 = vrot.lane.b32.xlu1 %v6267_v5, %s5550_s22  ;;  %1948 = vrot.lane.b32.xlu0 %v6271_v19, %s5550_s22 }
 0x7f7   : > { %v1971_v47 = vpop.permute.xlu1 %1970 }
 0x7f8   : > { %2059 = vrot.lane.b32.xlu0 %v1971_v47, %s5553_s30 }
 0x7f9   : > { %v1973_v26 = vpop.permute.xlu0 %1972 }
 0x7fa   : > { %v1994_v46 = vsel %vm902_vm12, %v1971_v47, %v1973_v26  ;;  %v1995_v62 = vsel %vm902_vm12, %v1973_v26, %v5312_v51 }
 0x7fc   : > { %2061 = vrot.lane.b32.xlu0 %v1994_v46, %s5553_s30 }
 0x7fd   : > { %v1977_v2 = vpop.permute.xlu0 %1976  ;;  %v1979_v10 = vpop.permute.xlu1 %1978 }
 0x7fe   : > { %v1997_v0 = vsel %vm902_vm12, %v1979_v10, %v5311_v52  ;;  %v1996_v1 = vsel %vm902_vm12, %v1977_v2, %v1979_v10 }
 0x801   : > { %v1983_v48 = vpop.permute.xlu0 %1982  ;;  %v1955_v49 = vpop.permute.xlu1 %1954 }
 0x805   : > { %v1991_v50 = vpop.permute.xlu0 %1990  ;;  %v1985_v27 = vpop.permute.xlu1 %1984 }
 0x806   : > { %v1998_v6 = vsel %vm902_vm12, %v1983_v48, %v1985_v27  ;;  %v1999_v11 = vsel %vm902_vm12, %v1985_v27, %v5307_v13  ;;  %v2001_v15 = vsel %vm902_vm12, %v1991_v50, %v5306_v14 }
 0x809   : > { %v1957_v53 = vpop.permute.xlu0 %1956  ;;  %v1989_v54 = vpop.permute.xlu1 %1988 }
 0x80a   : > { %v1964_v12 = vsel %vm1584_vm4, %v1955_v49, %v1957_v53  ;;  %v2000_v16 = vsel %vm902_vm12, %v1989_v54, %v1991_v50 }
 0x80d   : > { %v1961_v55 = vpop.permute.xlu0 %1960  ;;  %v1959_v56 = vpop.permute.xlu1 %1958 }
 0x80e   : > { %v1965_v17 = vsel %vm1584_vm4, %v1959_v56, %v1961_v55 }
 0x811   : > { %v1953_v9 = vpop.permute.xlu0 %1952  ;;  %v1951_v58 = vpop.permute.xlu1 %1950 }
 0x812   : > { %v1963_v4 = vsel %vm1584_vm4, %v1951_v58, %v1953_v9 }
 0x815   : > { %v1949_v59 = vpop.permute.xlu0 %1948  ;;  %v1947_v60 = vpop.permute.xlu1 %1946 }
 0x816   : > { %2039 = vrot.lane.b32.xlu1 %v1949_v59, %s5553_s30  ;;  %v1962_v61 = vsel %vm1584_vm4, %v1947_v60, %v1949_v59 }
 0x817   : > { %2037 = vrot.lane.b32.xlu0 %v1962_v61, %s5553_s30 }
 0x81a   : > { %2063 = vrot.lane.b32.xlu1 %v1995_v62, %s5553_s30 }
 0x81b   : > { %2045 = vrot.lane.b32.xlu0 %v1953_v9, %s5553_s30 }
 0x81e   : > { %2065 = vrot.lane.b32.xlu1 %v1977_v2, %s5553_s30 }
 0x81f   : > { %2069 = vrot.lane.b32.xlu0 %v1997_v0, %s5553_s30 }
 0x822   : > { %2041 = vrot.lane.b32.xlu1 %v1951_v58, %s5553_s30 }
 0x823   : > { %2071 = vrot.lane.b32.xlu0 %v1983_v48, %s5553_s30 }
 0x826   : > { %2067 = vrot.lane.b32.xlu1 %v1996_v1, %s5553_s30 }
 0x827   : > { %2047 = vrot.lane.b32.xlu0 %v1955_v49, %s5553_s30 }
 0x82a   : > { %2043 = vrot.lane.b32.xlu1 %v1963_v4, %s5553_s30 }
 0x82b   : > { %2073 = vrot.lane.b32.xlu0 %v1998_v6, %s5553_s30 }
 0x82e   : > { %2051 = vrot.lane.b32.xlu1 %v1957_v53, %s5553_s30 }
 0x82f   : > { %2049 = vrot.lane.b32.xlu0 %v1964_v12, %s5553_s30 }
 0x832   : > { %2075 = vrot.lane.b32.xlu1 %v1999_v11, %s5553_s30 }
 0x833   : > { %2057 = vrot.lane.b32.xlu0 %v1961_v55, %s5553_s30 }
 0x836   : > { %2077 = vrot.lane.b32.xlu1 %v1989_v54, %s5553_s30 }
 0x837   : > { %2081 = vrot.lane.b32.xlu0 %v2001_v15, %s5553_s30 }
 0x83a   : > { %2053 = vrot.lane.b32.xlu1 %v1959_v56, %s5553_s30 }
 0x83b   : > { %2035 = vrot.lane.b32.xlu0 %v1947_v60, %s5553_s30 }
 0x83e   : > { %2079 = vrot.lane.b32.xlu1 %v2000_v16, %s5553_s30 }
 0x83f   : > { %2033 = vrot.lane.b32.xlu0 %v6291_v43, %s5553_s30 }
 0x842   : > { %2031 = vrot.lane.b32.xlu1 %v6297_v44, %s5553_s30 }
 0x843   : > { %2025 = vrot.lane.b32.xlu0 %v6283_v57, %s5553_s30 }
 0x846   : > { %5314 = vrot.lane.b32.xlu1 %v5544_v38, %s5553_s30 }
 0x847   : > { %2019 = vrot.lane.b32.xlu0 %v6275_v30, %s5553_s30 }
 0x84a   : > { %2055 = vrot.lane.b32.xlu1 %v1965_v17, %s5553_s30 }
 0x84b   : > { %2017 = vrot.lane.b32.xlu0 %v5544_v38, %s5553_s30 }
 0x84e   : > { %2027 = vrot.lane.b32.xlu1 %v6289_v42, %s5553_s30 }
 0x84f   : > { %2015 = vrot.lane.b32.xlu0 %v6271_v19, %s5553_s30  ;;  %v2235_v19 = vld [vmem:[#allocation9 + $0x88] sm:$0xff] }
 0x852   : > { %2021 = vrot.lane.b32.xlu1 %v6277_v33, %s5553_s30 }
 0x853   : > { %2255 = vperm.xlu0 %5256, %v2237_v63  }
 0x856   : > { %2013 = vrot.lane.b32.xlu1 %v6267_v5, %s5553_s30 }
 0x857   : > { %2288 = vperm.xlu0 %5256, %v2270_v18  }
 0x85a   : > { %2011 = vrot.lane.b32.xlu1 %v5544_v38, %s5553_s30  ;;  %s5462_s30 = scalar_lea.vmem %s4988_s20, 48 }
 0x85b   : > { %2283 = vperm.xlu0 %5256, %v2269_v8   ;;  %p5463_p10 = scmp.ne.s32.totalorder %s4988_s20, %s5462_s30 }
 0x85d   : > { %p5464_p12 = pnand %p5463_p10, %p5640_p5 }
 0x85e   : > { %2250 = vperm.xlu1 %5257, %v2236_v20  }
 0x85f   : > { %2278 = vperm.xlu0 %5256, %v2268_v23   ;;  %p5465_p13 = pneg %p5464_p12 }
 0x862   : > { %2245 = vperm.xlu1 %5257, %v2235_v19  }
 0x863   : > { %5319 = vrot.lane.b32.xlu0 %v5544_v38, %s5554_s14 }
 0x866   : > { %2240 = vperm.xlu1 %5257, %v2234_v25  }
 0x86a   : > { %2273 = vperm.xlu1 %5257, %v2267_v28   ;;  %v2060_v29 = vpop.permute.xlu0 %2059 }
 0x86e   : > { %v2062_v30 = vpop.permute.xlu0 %2061  ;;  %5324 = vrot.lane.b32.xlu1 %v5544_v38, %s5554_s14 }
 0x86f   : > { %v2100_v58 = vsel %vm2083_vm15, %v2060_v29, %v2062_v30  ;;  %v2003_v29 = vld [vmem:[#allocation7 + $0x60] sm:$0xff] }
 0x888   : > { %v2040_v3 = vpop.permute.xlu1 %2039 }
 0x889   : > { %v2038_v5 = vpop.permute.xlu0 %2037 }
 0x88a   : > { %v2093_v12 = vsel %vm2083_vm15, %v2038_v5, %v2040_v3  ;;  %v2004_v3 = vld [vmem:[#allocation7 + $0x68] sm:$0xff] }
 0x88c   : > { %v2064_v31 = vpop.permute.xlu1 %2063 }
 0x88d   : > { %v2046_v32 = vpop.permute.xlu0 %2045  ;;  %v2101_v55 = vsel %vm2083_vm15, %v2062_v30, %v2064_v31  ;;  %v2006_v31 = vld [vmem:[#allocation7 + $0x78] sm:$0xff] }
 0x890   : > { %v2066_v33 = vpop.permute.xlu1 %2065 }
 0x891   : > { %v2070_v34 = vpop.permute.xlu0 %2069 }
 0x894   : > { %v2042_v35 = vpop.permute.xlu1 %2041 }
 0x895   : > { %v2072_v36 = vpop.permute.xlu0 %2071 }
 0x898   : > { %v2068_v37 = vpop.permute.xlu1 %2067 }
 0x899   : > { %v2048_v39 = vpop.permute.xlu0 %2047  ;;  %v2103_v53 = vsel %vm2083_vm15, %v2068_v37, %v2070_v34  ;;  %v2102_v54 = vsel %vm2083_vm15, %v2066_v33, %v2068_v37 }
 0x89c   : > { %v2044_v57 = vpop.permute.xlu1 %2043 }
 0x89d   : > { %v2074_v40 = vpop.permute.xlu0 %2073  ;;  %v2095_v1 = vsel %vm2083_vm15, %v2044_v57, %v2046_v32  ;;  %v2094_v6 = vsel %vm2083_vm15, %v2042_v35, %v2044_v57 }
 0x89e   : > { %v2104_v27 = vsel %vm2083_vm15, %v2072_v36, %v2074_v40 }
 0x8a0   : > { %v2052_v41 = vpop.permute.xlu1 %2051 }
 0x8a1   : > { %v2050_v42 = vpop.permute.xlu0 %2049 }
 0x8a2   : > { %v2097_v62 = vsel %vm2083_vm15, %v2050_v42, %v2052_v41  ;;  %v2096_v0 = vsel %vm2083_vm15, %v2048_v39, %v2050_v42 }
 0x8a4   : > { %v2076_v43 = vpop.permute.xlu1 %2075 }
 0x8a5   : > { %v2058_v44 = vpop.permute.xlu0 %2057  ;;  %v2105_v49 = vsel %vm2083_vm15, %v2074_v40, %v2076_v43 }
 0x8a8   : > { %v2078_v45 = vpop.permute.xlu1 %2077 }
 0x8a9   : > { %v2082_v7 = vpop.permute.xlu0 %2081 }
 0x8ac   : > { %v2054_v47 = vpop.permute.xlu1 %2053 }
 0x8ad   : > { %v2036_v26 = vpop.permute.xlu0 %2035 }
 0x8ae   : > { %v2092_v13 = vsel %vm2083_vm15, %v2036_v26, %v2038_v5  ;;  %v2005_v5 = vld [vmem:[#allocation7 + $0x70] sm:$0xff] }
 0x8b0   : > { %v2080_v46 = vpop.permute.xlu1 %2079 }
 0x8b1   : > { %v2107_v2 = vsel %vm2083_vm15, %v2080_v46, %v2082_v7  ;;  %v2106_v10 = vsel %vm2083_vm15, %v2078_v45, %v2080_v46  ;;  %v2034_v48 = vpop.permute.xlu0 %2033 }
 0x8b2   : > { %2152 = vmatprep.subr.mxu1 %v2107_v2 }
 0x8b3   : > { %2153 = vmatpush1.msra.mxu1 %v2106_v10 }
 0x8b4   : > { %v2032_v50 = vpop.permute.xlu1 %2031  ;;  %2154 = vmatprep.subr.mxu1 %v2105_v49 }
 0x8b5   : > { %2155 = vmatpush1.msra.mxu1 %v2104_v27  ;;  %v2026_v56 = vpop.permute.xlu0 %2025  ;;  %v2091_v16 = vsel %vm2083_vm15, %v2032_v50, %v2034_v48 }
 0x8b6   : > { %2156 = vmatprep.subr.mxu1 %v2103_v53 }
 0x8b7   : > { %2157 = vmatpush1.msra.mxu1 %v2102_v54 }
 0x8b8   : > { %v5315_v9 = vpop.permute.xlu1 %5314  ;;  %2158 = vmatprep.subr.mxu1 %v2101_v55 }
 0x8b9   : > { %2159 = vmatpush1.msra.mxu1 %v2100_v58  ;;  %v2020_v51 = vpop.permute.xlu0 %2019  ;;  %v5316_v4 = vunpack.i.l.bf16 %v5315_v9  ;;  %v5317_v11 = vunpack.i.h.bf16 %v5315_v9 }
 0x8bb   : > { %v2090_v17 = vsel %vm2083_vm15, %v5316_v4, %v2032_v50  ;;  %v2088_v8 = vsel %vm2083_vm15, %v5317_v11, %v2026_v56 }
 0x8bc   : > { %v2056_v59 = vpop.permute.xlu1 %2055 }
 0x8bd   : > { %v2099_v60 = vsel %vm2083_vm15, %v2056_v59, %v2058_v44  ;;  %v2098_v61 = vsel %vm2083_vm15, %v2054_v47, %v2056_v59  ;;  %v2018_v14 = vpop.permute.xlu0 %2017 }
 0x8be   : > { %2160 = vmatprep.subr.mxu1 %v2099_v60  ;;  %v2086_v23 = vsel %vm2083_vm15, %v2018_v14, %v2020_v51 }
 0x8bf   : > { %2161 = vmatpush1.msra.mxu1 %v2098_v61 }
 0x8c0   : > { %v2028_v52 = vpop.permute.xlu1 %2027  ;;  %2162 = vmatprep.subr.mxu1 %v2097_v62 }
 0x8c1   : > { %2163 = vmatpush1.msra.mxu1 %v2096_v0  ;;  %v2089_v63 = vsel %vm2083_vm15, %v2026_v56, %v2028_v52  ;;  %v2016_v19 = vpop.permute.xlu0 %2015 }
 0x8c2   : > { %2164 = vmatprep.subr.mxu1 %v2095_v1 }
 0x8c3   : > { %2165 = vmatpush1.msra.mxu1 %v2094_v6 }
 0x8c4   : > { %v2022_v15 = vpop.permute.xlu1 %2021  ;;  %2166 = vmatprep.subr.mxu1 %v2093_v12 }
 0x8c5   : > { %2167 = vmatpush1.msra.mxu1 %v2092_v13  ;;  %v2087_v20 = vsel %vm2083_vm15, %v2020_v51, %v2022_v15 }
 0x8c6   : > { %2168 = vmatprep.subr.mxu1 %v2091_v16 }
 0x8c7   : > { %2169 = vmatpush1.msra.mxu1 %v2090_v17 }
 0x8c8   : > { %v2014_v18 = vpop.permute.xlu1 %2013  ;;  %2170 = vmatprep.subr.mxu1 %v2089_v63 }
 0x8c9   : > { %2171 = vmatpush1.msra.mxu1 %v2088_v8  ;;  %v2085_v25 = vsel %vm2083_vm15, %v2014_v18, %v2016_v19 }
 0x8ca   : > { %2172 = vmatprep.subr.mxu1 %v2087_v20 }
 0x8cb   : > { %2173 = vmatpush1.msra.mxu1 %v2086_v23 }
 0x8cc   : > { %v2012_v28 = vpop.permute.xlu1 %2011  ;;  %2174 = vmatprep.subr.mxu1 %v2085_v25 }
 0x8cd   : > { %v2084_v30 = vsel %vm2083_vm15, %v2012_v28, %v2014_v18 }
 0x8ce   : > { %2175 = vmatpush1.msra.mxu1 %v2084_v30  ;;  %v2256_v33 = vpop.permute.xlu0 %2255 }
 0x8cf   : > { %5111 = vmatmul.mubr.msk.f32.vlgmr.msra.gmra.mxu1 %vm902_vm12, %v2003_v29 }
 0x8d0   : > { %2214 = vmatprep.mubr.f32.mxu1 %v5544_v38 }
 0x8d2   : > { %v2289_v35 = vpop.permute.xlu0 %2288 }
 0x8d3   : > { %5112 = vmatmul.mubr.msk.f32.gmra.mxu1 %vm902_vm12, %v2004_v3 }
 0x8d4   : > { %2220 = vmatprep.mubr.f32.mxu1 %v5544_v38 }
 0x8d6   : > { %v2284_v37 = vpop.permute.xlu0 %2283 }
 0x8d7   : > { %5113 = vmatmul.mubr.msk.f32.gmra.mxu1 %vm902_vm12, %v2005_v5 }
 0x8d8   : > { %2226 = vmatprep.mubr.f32.mxu1 %v5544_v38 }
 0x8d9   : > { %v2251_v32 = vpop.permute.xlu1 %2250 }
 0x8da   : > { %v2279_v26 = vpop.permute.xlu0 %2278 }
 0x8db   : > { %5114 = vmatmul.mubr.msk.f32.gmra.mxu1 %vm902_vm12, %v2006_v31 }
 0x8dc   : > { %2950 = vmatprep.mubr.f32.mxu1 %v5544_v38 }
 0x8dd   : > { %v2246_v34 = vpop.permute.xlu1 %2245 }
 0x8de   : > { %v5320_v18 = vpop.permute.xlu0 %5319 }
 0x8e1   : > { %v2241_v36 = vpop.permute.xlu1 %2240 }
 0x8e5   : > { %v2274_v40 = vpop.permute.xlu1 %2273 }
 0x8e9   : > { %v5325_v8 = vpop.permute.xlu1 %5324 }
 0x98f   : > { %v2210_v39 = vpop.f32.mrf.mxu1 }
 0x990   : > { %v2258_v57 = vmul.f32 %v2241_v36, %v2210_v39 }
 0x991   : > { %v2212_v41 = vpop.f32.mrf.mxu1 }
 0x992   : > { %v2291_v42 = vadd.f32 %v2274_v40, %v2258_v57  ;;  %v2259_v43 = vmul.f32 %v2241_v36, %v2212_v41 }
 0x993   : > { %v2216_v44 = vpop.f32.mrf.mxu1 }
 0x994   : > { %v2307_v45 = vmul.f32 0.01, %v2291_v42  ;;  %v2292_v7 = vadd.f32 %v2274_v40, %v2259_v43  ;;  %v2260_v47 = vmul.f32 %v2246_v34, %v2216_v44  ;;  %vm2299_vm2 = vcmp.ge.f32.partialorder %v2291_v42, 0.0 }
 0x995   : > { %v2218_v46 = vpop.f32.mrf.mxu1  ;;  %v5327_v40 = vunpack.i.h.bf16 %v5325_v8 }
 0x996   : > { %v2308_v2 = vmul.f32 0.01, %v2292_v7  ;;  %v2293_v10 = vadd.f32 %v2279_v26, %v2260_v47  ;;  %v2261_v48 = vmul.f32 %v2246_v34, %v2218_v46  ;;  %v6409_v49 = vsel %vm2299_vm2, %v2291_v42, %v2307_v45 }
 0x997   : > { %2379 = vrot.lane.b32.xlu0 %v6409_v49, %s5554_s14  ;;  %v2222_v50 = vpop.f32.mrf.mxu1  ;;  %vm2300_vm3 = vcmp.ge.f32.partialorder %v2292_v7, 0.0  ;;  %v5326_v42 = vunpack.i.l.bf16 %v5325_v8 }
 0x998   : > { %v2309_v27 = vmul.f32 0.01, %v2293_v10  ;;  %v2294_v53 = vadd.f32 %v2279_v26, %v2261_v48  ;;  %v2262_v54 = vmul.f32 %v2251_v32, %v2222_v50  ;;  %v6413_v55 = vsel %vm2300_vm3, %v2292_v7, %v2308_v2 }
 0x999   : > { %2381 = vrot.lane.b32.xlu1 %v6413_v55, %s5554_s14  ;;  %v2224_v56 = vpop.f32.mrf.mxu1  ;;  %vm2301_vm4 = vcmp.ge.f32.partialorder %v2293_v10, 0.0  ;;  %v5322_v26 = vunpack.i.h.bf16 %v5320_v18  ;;  %v5321_v2 = vunpack.i.l.bf16 %v5320_v18 }
 0x99a   : > { %v2310_v9 = vmul.f32 0.01, %v2294_v53  ;;  %v2295_v58 = vadd.f32 %v2284_v37, %v2262_v54  ;;  %v2263_v59 = vmul.f32 %v2251_v32, %v2224_v56  ;;  %vm2302_vm5 = vcmp.ge.f32.partialorder %v2294_v53, 0.0  ;;  %v2679_v54 = vld [vmem:[#allocation10 + $0xb0] sm:$0xff] }
 0x99b   : > { %v2228_v60 = vpop.f32.mrf.mxu1  ;;  %v6417_v61 = vsel %vm2301_vm4, %v2293_v10, %v2309_v27  ;;  %v2647_v27 = vld [vmem:[#allocation9 + $0xb8] sm:$0xff]  ;;  %v2646_v56 = vld [vmem:[#allocation9 + $0xb0] sm:$0xff] }
 0x99c   : > { %v2311_v51 = vmul.f32 0.01, %v2295_v58  ;;  %v2296_v62 = vadd.f32 %v2284_v37, %v2263_v59  ;;  %v2264_v52 = vmul.f32 %v2256_v33, %v2228_v60  ;;  %v6419_v0 = vsel %vm2302_vm5, %v2294_v53, %v2310_v9  ;;  %v2680_v53 = vld [vmem:[#allocation10 + $0xb8] sm:$0xff]  ;;  %v2678_v9 = vld [vmem:[#allocation10 + $0xa8] sm:$0xff]  ;;  %v2677_v59 = vld [vmem:[#allocation10 + $0xa0] sm:$0xff] }
 0x99d   : > { %v2230_v1 = vpop.f32.mrf.mxu1  ;;  %2387 = vrot.lane.b32.xlu0 %v6419_v0, %s5554_s14  ;;  %2385 = vrot.lane.b32.xlu1 %v6417_v61, %s5554_s14  ;;  %vm2303_vm6 = vcmp.ge.f32.partialorder %v2295_v58, 0.0 }
 0x99e   : > { %v2265_v4 = vmul.f32 %v2256_v33, %v2230_v1  ;;  %v2312_v6 = vmul.f32 0.01, %v2296_v62  ;;  %v2297_v12 = vadd.f32 %v2289_v35, %v2264_v52  ;;  %v6425_v11 = vsel %vm2303_vm6, %v2295_v58, %v2311_v51  ;;  %v2644_v58 = vld [vmem:[#allocation9 + $0xa0] sm:$0xff] }
 0x99f   : > { %vm2304_vm7 = vcmp.ge.f32.partialorder %v2296_v62, 0.0 }
 0x9a0   : > { %v2298_v13 = vadd.f32 %v2289_v35, %v2265_v4  ;;  %v2313_v15 = vmul.f32 0.01, %v2297_v12  ;;  %v6431_v16 = vsel %vm2304_vm7, %v2296_v62, %v2312_v6  ;;  %vm2305_vm9 = vcmp.ge.f32.partialorder %v2297_v12, 0.0 }
 0x9a1   : > { %2363 = vrot.lane.b32.xlu0 %v6425_v11, %s5552_s21  ;;  %2391 = vrot.lane.b32.xlu1 %v6425_v11, %s5554_s14 }
 0x9a2   : > { %v2314_v14 = vmul.f32 0.01, %v2298_v13  ;;  %vm2306_vm8 = vcmp.ge.f32.partialorder %v2298_v13, 0.0  ;;  %v6439_v63 = vsel %vm2305_vm9, %v2297_v12, %v2313_v15 }
 0x9a4   : > { %v6433_v17 = vsel %vm2306_vm8, %v2298_v13, %v2314_v14 }
 0x9a5   : > { %2393 = vrot.lane.b32.xlu0 %v6431_v16, %s5554_s14  ;;  %2399 = vrot.lane.b32.xlu1 %v6433_v17, %s5554_s14 }
 0x9a9   : > { %2397 = vrot.lane.b32.xlu0 %v6439_v63, %s5554_s14  ;;  %2365 = vrot.lane.b32.xlu1 %v6431_v16, %s5552_s21 }
 0x9ad   : > { %2367 = vrot.lane.b32.xlu0 %v6439_v63, %s5552_s21  ;;  %2369 = vrot.lane.b32.xlu1 %v6433_v17, %s5552_s21 }
 0x9b1   : > { %2359 = vrot.lane.b32.xlu0 %v6417_v61, %s5552_s21  ;;  %2361 = vrot.lane.b32.xlu1 %v6419_v0, %s5552_s21 }
 0x9b5   : > { %2355 = vrot.lane.b32.xlu0 %v6409_v49, %s5552_s21  ;;  %2357 = vrot.lane.b32.xlu1 %v6413_v55, %s5552_s21  ;;  %s4973_s21 = scalar_lea.sflag [#allocation6], %s328_s23 }
 0xa09   : > { %v2380_v20 = vpop.permute.xlu0 %2379 }
 0xa0a   : > { %2469 = vrot.lane.b32.xlu1 %v2380_v20, %s5555_s17 }
 0xa0b   : > { %v2382_v23 = vpop.permute.xlu1 %2381 }
 0xa0c   : > { %v2404_v19 = vsel %vm2403_vm10, %v2380_v20, %v2382_v23  ;;  %v2405_v41 = vsel %vm2403_vm10, %v2382_v23, %v5327_v40 }
 0xa0e   : > { %2471 = vrot.lane.b32.xlu1 %v2404_v19, %s5555_s17 }
 0xa0f   : > { %v2386_v25 = vpop.permute.xlu1 %2385  ;;  %v2388_v28 = vpop.permute.xlu0 %2387 }
 0xa10   : > { %v2407_v43 = vsel %vm2403_vm10, %v2388_v28, %v5326_v42  ;;  %v2406_v44 = vsel %vm2403_vm10, %v2386_v25, %v2388_v28 }
 0xa13   : > { %v2392_v29 = vpop.permute.xlu1 %2391  ;;  %v2364_v30 = vpop.permute.xlu0 %2363 }
 0xa17   : > { %v2400_v3 = vpop.permute.xlu1 %2399  ;;  %v2394_v5 = vpop.permute.xlu0 %2393 }
 0xa18   : > { %v2408_v7 = vsel %vm2403_vm10, %v2392_v29, %v2394_v5  ;;  %v2409_v46 = vsel %vm2403_vm10, %v2394_v5, %v5322_v26  ;;  %v2411_v10 = vsel %vm2403_vm10, %v2400_v3, %v5321_v2 }
 0xa1b   : > { %v2366_v31 = vpop.permute.xlu1 %2365  ;;  %v2398_v32 = vpop.permute.xlu0 %2397 }
 0xa1c   : > { %v2373_v47 = vsel %vm902_vm12, %v2364_v30, %v2366_v31  ;;  %v2410_v48 = vsel %vm2403_vm10, %v2398_v32, %v2400_v3 }
 0xa1f   : > { %v2370_v33 = vpop.permute.xlu1 %2369  ;;  %v2368_v34 = vpop.permute.xlu0 %2367 }
 0xa20   : > { %v2374_v50 = vsel %vm902_vm12, %v2368_v34, %v2370_v33 }
 0xa23   : > { %v2362_v35 = vpop.permute.xlu1 %2361  ;;  %v2360_v36 = vpop.permute.xlu0 %2359 }
 0xa24   : > { %v2372_v45 = vsel %vm902_vm12, %v2360_v36, %v2362_v35 }
 0xa27   : > { %v2358_v37 = vpop.permute.xlu1 %2357  ;;  %v2356_v39 = vpop.permute.xlu0 %2355 }
 0xa28   : > { %2449 = vrot.lane.b32.xlu0 %v2358_v37, %s5555_s17  ;;  %v2371_v57 = vsel %vm902_vm12, %v2356_v39, %v2358_v37 }
 0xa29   : > { %2447 = vrot.lane.b32.xlu1 %v2371_v57, %s5555_s17 }
 0xa2c   : > { %2473 = vrot.lane.b32.xlu0 %v2405_v41, %s5555_s17 }
 0xa2d   : > { %2455 = vrot.lane.b32.xlu1 %v2362_v35, %s5555_s17 }
 0xa30   : > { %2475 = vrot.lane.b32.xlu0 %v2386_v25, %s5555_s17 }
 0xa31   : > { %2479 = vrot.lane.b32.xlu1 %v2407_v43, %s5555_s17 }
 0xa34   : > { %2451 = vrot.lane.b32.xlu0 %v2360_v36, %s5555_s17 }
 0xa35   : > { %2481 = vrot.lane.b32.xlu1 %v2392_v29, %s5555_s17 }
 0xa38   : > { %2477 = vrot.lane.b32.xlu0 %v2406_v44, %s5555_s17 }
 0xa39   : > { %2457 = vrot.lane.b32.xlu1 %v2364_v30, %s5555_s17 }
 0xa3c   : > { %2453 = vrot.lane.b32.xlu0 %v2372_v45, %s5555_s17 }
 0xa3d   : > { %2483 = vrot.lane.b32.xlu1 %v2408_v7, %s5555_s17 }
 0xa40   : > { %2461 = vrot.lane.b32.xlu0 %v2366_v31, %s5555_s17 }
 0xa41   : > { %2459 = vrot.lane.b32.xlu1 %v2373_v47, %s5555_s17 }
 0xa44   : > { %2485 = vrot.lane.b32.xlu0 %v2409_v46, %s5555_s17 }
 0xa45   : > { %2467 = vrot.lane.b32.xlu1 %v2370_v33, %s5555_s17 }
 0xa48   : > { %2487 = vrot.lane.b32.xlu0 %v2398_v32, %s5555_s17 }
 0xa49   : > { %2491 = vrot.lane.b32.xlu1 %v2411_v10, %s5555_s17 }
 0xa4c   : > { %2463 = vrot.lane.b32.xlu0 %v2368_v34, %s5555_s17 }
 0xa4d   : > { %2445 = vrot.lane.b32.xlu1 %v2356_v39, %s5555_s17 }
 0xa50   : > { %2489 = vrot.lane.b32.xlu0 %v2410_v48, %s5555_s17 }
 0xa51   : > { %2443 = vrot.lane.b32.xlu1 %v6433_v17, %s5555_s17 }
 0xa54   : > { %2441 = vrot.lane.b32.xlu0 %v6439_v63, %s5555_s17 }
 0xa55   : > { %2435 = vrot.lane.b32.xlu1 %v6425_v11, %s5555_s17 }
 0xa58   : > { %5329 = vrot.lane.b32.xlu0 %v5544_v38, %s5555_s17 }
 0xa59   : > { %2429 = vrot.lane.b32.xlu1 %v6417_v61, %s5555_s17 }
 0xa5c   : > { %2465 = vrot.lane.b32.xlu0 %v2374_v50, %s5555_s17 }
 0xa5d   : > { %2427 = vrot.lane.b32.xlu1 %v5544_v38, %s5555_s17 }
 0xa60   : > { %2437 = vrot.lane.b32.xlu0 %v6431_v16, %s5555_s17 }
 0xa61   : > { %2425 = vrot.lane.b32.xlu1 %v6413_v55, %s5555_s17  ;;  %v2645_v55 = vld [vmem:[#allocation9 + $0xa8] sm:$0xff] }
 0xa64   : > { %2431 = vrot.lane.b32.xlu0 %v6419_v0, %s5555_s17 }
 0xa65   : > { %2665 = vperm.xlu1 %5257, %v2647_v27  }
 0xa68   : > { %2423 = vrot.lane.b32.xlu0 %v6409_v49, %s5555_s17 }
 0xa69   : > { %2698 = vperm.xlu1 %5257, %v2680_v53  }
 0xa6c   : > { %2421 = vrot.lane.b32.xlu0 %v5544_v38, %s5555_s17 }
 0xa6d   : > { %2693 = vperm.xlu1 %5257, %v2679_v54  }
 0xa70   : > { %2660 = vperm.xlu0 %5256, %v2646_v56  }
 0xa71   : > { %2688 = vperm.xlu1 %5257, %v2678_v9  }
 0xa74   : > { %2655 = vperm.xlu0 %5256, %v2645_v55  }
 0xa78   : > { %2650 = vperm.xlu0 %5256, %v2644_v58  }
 0xa7c   : > { %2683 = vperm.xlu0 %5256, %v2677_v59   ;;  %v2470_v60 = vpop.permute.xlu1 %2469 }
 0xa80   : > { %v2472_v61 = vpop.permute.xlu1 %2471 }
 0xa81   : > { %v2510_v36 = vsel %vm2493_vm11, %v2470_v60, %v2472_v61  ;;  %v2413_v60 = vld [vmem:[#allocation7 + $0x80] sm:$0xff] }
 0xa9a   : > { %v2450_v51 = vpop.permute.xlu0 %2449 }
 0xa9b   : > { %v2448_v49 = vpop.permute.xlu1 %2447 }
 0xa9c   : > { %v2503_v47 = vsel %vm2493_vm11, %v2448_v49, %v2450_v51  ;;  %v2414_v51 = vld [vmem:[#allocation7 + $0x88] sm:$0xff] }
 0xa9e   : > { %v2474_v62 = vpop.permute.xlu0 %2473 }
 0xa9f   : > { %v2456_v52 = vpop.permute.xlu1 %2455  ;;  %v2511_v33 = vsel %vm2493_vm11, %v2472_v61, %v2474_v62  ;;  %v2416_v62 = vld [vmem:[#allocation7 + $0x98] sm:$0xff] }
 0xaa2   : > { %v2476_v0 = vpop.permute.xlu0 %2475 }
 0xaa3   : > { %v2480_v1 = vpop.permute.xlu1 %2479 }
 0xaa6   : > { %v2452_v4 = vpop.permute.xlu0 %2451 }
 0xaa7   : > { %v2482_v6 = vpop.permute.xlu1 %2481 }
 0xaaa   : > { %v2478_v12 = vpop.permute.xlu0 %2477 }
 0xaab   : > { %v2458_v13 = vpop.permute.xlu1 %2457  ;;  %v2513_v31 = vsel %vm2493_vm11, %v2478_v12, %v2480_v1  ;;  %v2512_v32 = vsel %vm2493_vm11, %v2476_v0, %v2478_v12 }
 0xaae   : > { %v2454_v11 = vpop.permute.xlu0 %2453 }
 0xaaf   : > { %v2484_v14 = vpop.permute.xlu1 %2483  ;;  %v2505_v44 = vsel %vm2493_vm11, %v2454_v11, %v2456_v52  ;;  %v2504_v7 = vsel %vm2493_vm11, %v2452_v4, %v2454_v11 }
 0xab0   : > { %v2514_v5 = vsel %vm2493_vm11, %v2482_v6, %v2484_v14 }
 0xab2   : > { %v2462_v15 = vpop.permute.xlu0 %2461 }
 0xab3   : > { %v2460_v16 = vpop.permute.xlu1 %2459 }
 0xab4   : > { %v2507_v41 = vsel %vm2493_vm11, %v2460_v16, %v2462_v15  ;;  %v2506_v43 = vsel %vm2493_vm11, %v2458_v13, %v2460_v16 }
 0xab6   : > { %v2486_v17 = vpop.permute.xlu0 %2485 }
 0xab7   : > { %v2468_v63 = vpop.permute.xlu1 %2467  ;;  %v2515_v30 = vsel %vm2493_vm11, %v2484_v14, %v2486_v17 }
 0xaba   : > { %v2488_v18 = vpop.permute.xlu0 %2487 }
 0xabb   : > { %v2492_v8 = vpop.permute.xlu1 %2491 }
 0xabe   : > { %v2464_v20 = vpop.permute.xlu0 %2463 }
 0xabf   : > { %v2446_v23 = vpop.permute.xlu1 %2445 }
 0xac0   : > { %v2502_v26 = vsel %vm2493_vm11, %v2446_v23, %v2448_v49  ;;  %v2415_v49 = vld [vmem:[#allocation7 + $0x90] sm:$0xff] }
 0xac2   : > { %v2490_v19 = vpop.permute.xlu0 %2489 }
 0xac3   : > { %v2517_v25 = vsel %vm2493_vm11, %v2490_v19, %v2492_v8  ;;  %v2516_v28 = vsel %vm2493_vm11, %v2488_v18, %v2490_v19  ;;  %v2444_v29 = vpop.permute.xlu1 %2443 }
 0xac4   : > { %2562 = vmatprep.subr.mxu0 %v2517_v25 }
 0xac5   : > { %2563 = vmatpush1.msra.mxu0 %v2516_v28 }
 0xac6   : > { %v2442_v3 = vpop.permute.xlu0 %2441  ;;  %2564 = vmatprep.subr.mxu0 %v2515_v30 }
 0xac7   : > { %2565 = vmatpush1.msra.mxu0 %v2514_v5  ;;  %v2436_v34 = vpop.permute.xlu1 %2435  ;;  %v2501_v48 = vsel %vm2493_vm11, %v2442_v3, %v2444_v29 }
 0xac8   : > { %2566 = vmatprep.subr.mxu0 %v2513_v31 }
 0xac9   : > { %2567 = vmatpush1.msra.mxu0 %v2512_v32 }
 0xaca   : > { %v5330_v35 = vpop.permute.xlu0 %5329  ;;  %2568 = vmatprep.subr.mxu0 %v2511_v33 }
 0xacb   : > { %2569 = vmatpush1.msra.mxu0 %v2510_v36  ;;  %v2430_v40 = vpop.permute.xlu1 %2429  ;;  %v5331_v45 = vunpack.i.l.bf16 %v5330_v35  ;;  %v5332_v46 = vunpack.i.h.bf16 %v5330_v35 }
 0xacd   : > { %v2500_v50 = vsel %vm2493_vm11, %v5331_v45, %v2442_v3  ;;  %v2498_v54 = vsel %vm2493_vm11, %v5332_v46, %v2436_v34 }
 0xace   : > { %v2466_v37 = vpop.permute.xlu0 %2465 }
 0xacf   : > { %v2509_v39 = vsel %vm2493_vm11, %v2466_v37, %v2468_v63  ;;  %v2508_v57 = vsel %vm2493_vm11, %v2464_v20, %v2466_v37  ;;  %v2428_v2 = vpop.permute.xlu1 %2427 }
 0xad0   : > { %2570 = vmatprep.subr.mxu0 %v2509_v39  ;;  %v2496_v9 = vsel %vm2493_vm11, %v2428_v2, %v2430_v40 }
 0xad1   : > { %2571 = vmatpush1.msra.mxu0 %v2508_v57 }
 0xad2   : > { %v2438_v42 = vpop.permute.xlu0 %2437  ;;  %2572 = vmatprep.subr.mxu0 %v2507_v41 }
 0xad3   : > { %2573 = vmatpush1.msra.mxu0 %v2506_v43  ;;  %v2499_v27 = vsel %vm2493_vm11, %v2436_v34, %v2438_v42  ;;  %v2426_v55 = vpop.permute.xlu1 %2425 }
 0xad4   : > { %2574 = vmatprep.subr.mxu0 %v2505_v44 }
 0xad5   : > { %2575 = vmatpush1.msra.mxu0 %v2504_v7 }
 0xad6   : > { %v2432_v10 = vpop.permute.xlu0 %2431  ;;  %2576 = vmatprep.subr.mxu0 %v2503_v47 }
 0xad7   : > { %2577 = vmatpush1.msra.mxu0 %v2502_v26  ;;  %v2497_v56 = vsel %vm2493_vm11, %v2430_v40, %v2432_v10 }
 0xad8   : > { %2578 = vmatprep.subr.mxu0 %v2501_v48 }
 0xad9   : > { %2579 = vmatpush1.msra.mxu0 %v2500_v50 }
 0xada   : > { %v2424_v53 = vpop.permute.xlu0 %2423  ;;  %2580 = vmatprep.subr.mxu0 %v2499_v27 }
 0xadb   : > { %2581 = vmatpush1.msra.mxu0 %v2498_v54  ;;  %v2495_v58 = vsel %vm2493_vm11, %v2424_v53, %v2426_v55 }
 0xadc   : > { %2582 = vmatprep.subr.mxu0 %v2497_v56 }
 0xadd   : > { %2583 = vmatpush1.msra.mxu0 %v2496_v9 }
 0xade   : > { %v2422_v59 = vpop.permute.xlu0 %2421  ;;  %2584 = vmatprep.subr.mxu0 %v2495_v58 }
 0xadf   : > { %v2494_v61 = vsel %vm2493_vm11, %v2422_v59, %v2424_v53 }
 0xae0   : > { %2585 = vmatpush1.msra.mxu0 %v2494_v61  ;;  %v2666_v52 = vpop.permute.xlu1 %2665 }
 0xae1   : > { %5115 = vmatmul.mubr.msk.f32.vlgmr.msra.gmra.mxu0 %vm902_vm12, %v2413_v60  ;;  %3114 = vmatprep.subr.mxu0 %v5544_v38 }
 0xae2   : > { %2624 = vmatprep.mubr.f32.mxu0 %v5544_v38 }
 0xae4   : > { %v2699_v4 = vpop.permute.xlu1 %2698 }
 0xae5   : > { %5116 = vmatmul.mubr.msk.f32.gmra.mxu0 %vm902_vm12, %v2414_v51 }
 0xae6   : > { %2630 = vmatprep.mubr.f32.mxu0 %v5544_v38 }
 0xae8   : > { %v2694_v14 = vpop.permute.xlu1 %2693 }
 0xae9   : > { %5117 = vmatmul.mubr.msk.f32.gmra.mxu0 %vm902_vm12, %v2415_v49 }
 0xaea   : > { %2636 = vmatprep.mubr.f32.mxu0 %v5544_v38 }
 0xaeb   : > { %v2661_v0 = vpop.permute.xlu0 %2660 }
 0xaec   : > { %v2689_v25 = vpop.permute.xlu1 %2688 }
 0xaed   : > { %5118 = vmatmul.mubr.msk.f32.gmra.mxu0 %vm902_vm12, %v2416_v62 }
 0xaee   : > { %3170 = vmatprep.mubr.f32.mxu0 %v5544_v38 }
 0xaef   : > { %v2656_v13 = vpop.permute.xlu0 %2655 }
 0xaf3   : > { %v2651_v18 = vpop.permute.xlu0 %2650 }
 0xaf7   : > { %v2684_v39 = vpop.permute.xlu0 %2683 }
 0xba1   : > { %v2620_v1 = vpop.f32.mrf.mxu0 }
 0xba2   : > { %v2668_v3 = vmul.f32 %v2651_v18, %v2620_v1 }
 0xba3   : > { %v2622_v6 = vpop.f32.mrf.mxu0 }
 0xba4   : > { %v2669_v36 = vmul.f32 %v2651_v18, %v2622_v6  ;;  %v2701_v42 = vadd.f32 %v2684_v39, %v2668_v3  ;;  %v3012_v18 = vld [vmem:[#allocation10 + $0xd8] sm:$0xff]  ;;  %v3196_v3 = vld [vmem:[#allocation9 + $0xe0] sm:$0xff] }
 0xba5   : > { %v2626_v12 = vpop.f32.mrf.mxu0 }
 0xba6   : > { %v2670_v17 = vmul.f32 %v2656_v13, %v2626_v12  ;;  %v2702_v7 = vadd.f32 %v2684_v39, %v2669_v36  ;;  %v2717_v46 = vmul.f32 0.01, %v2701_v42  ;;  %vm2709_vm5 = vcmp.ge.f32.partialorder %v2701_v42, 0.0  ;;  %v3460_v36 = vld [vmem:[#allocation10 + $0x118] sm:$0xff]  ;;  %v3459_v39 = vld [vmem:[#allocation10 + $0x110] sm:$0xff] }
 0xba7   : > { %v2628_v11 = vpop.f32.mrf.mxu0 }
 0xba8   : > { %v2671_v23 = vmul.f32 %v2656_v13, %v2628_v11  ;;  %v2703_v5 = vadd.f32 %v2689_v25, %v2670_v17  ;;  %v2718_v10 = vmul.f32 0.01, %v2702_v7  ;;  %vm2710_vm6 = vcmp.ge.f32.partialorder %v2702_v7, 0.0  ;;  %v2979_v17 = vld [vmem:[#allocation9 + $0xd8] sm:$0xff] }
 0xba9   : > { %v2632_v15 = vpop.f32.mrf.mxu0  ;;  %v2725_v50 = vsel %vm2709_vm5, %v2701_v42, %v2717_v46  ;;  %v3655_v42 = vld [vmem:[#allocation9 + $0x138] sm:$0xff]  ;;  %v3882_v46 = vld [vmem:[#allocation9 + $0x150] sm:$0xff] }
 0xbaa   : > { %v2672_v16 = vmul.f32 %v2661_v0, %v2632_v15  ;;  %v2704_v37 = vadd.f32 %v2689_v25, %v2671_v23  ;;  %v2719_v43 = vmul.f32 0.01, %v2703_v5  ;;  %vm2711_vm3 = vcmp.ge.f32.partialorder %v2703_v5, 0.0  ;;  %v3009_v23 = vld [vmem:[#allocation10 + $0xc0] sm:$0xff]  ;;  %v3198_v25 = vld [vmem:[#allocation9 + $0xf0] sm:$0xff] }
 0xbab   : > { %v2634_v63 = vpop.f32.mrf.mxu0  ;;  %v2726_v27 = vsel %vm2710_vm6, %v2702_v7, %v2718_v10  ;;  %v3687_v7 = vld [vmem:[#allocation10 + $0x130] sm:$0xff]  ;;  %v3881_v10 = vld [vmem:[#allocation9 + $0x148] sm:$0xff] }
 0xbac   : > { %v2705_v8 = vadd.f32 %v2694_v14, %v2672_v16  ;;  %v2673_v20 = vmul.f32 %v2661_v0, %v2634_v63  ;;  %v2720_v47 = vmul.f32 0.01, %v2704_v37  ;;  %vm2712_vm4 = vcmp.ge.f32.partialorder %v2704_v37, 0.0  ;;  %v2978_v16 = vld [vmem:[#allocation9 + $0xd0] sm:$0xff]  ;;  %v2977_v63 = vld [vmem:[#allocation9 + $0xc8] sm:$0xff] }
 0xbad   : > { %v2638_v19 = vpop.f32.mrf.mxu0  ;;  %v2727_v2 = vsel %vm2711_vm3, %v2703_v5, %v2719_v43  ;;  %v3231_v5 = vld [vmem:[#allocation10 + $0xf0] sm:$0xff]  ;;  %v3653_v43 = vld [vmem:[#allocation9 + $0x128] sm:$0xff] }
 0xbae   : > { %v2721_v28 = vmul.f32 0.01, %v2705_v8  ;;  %v2706_v29 = vadd.f32 %v2694_v14, %v2673_v20  ;;  %v2674_v30 = vmul.f32 %v2666_v52, %v2638_v19  ;;  %vm2713_vm13 = vcmp.ge.f32.partialorder %v2705_v8, 0.0  ;;  %v3011_v20 = vld [vmem:[#allocation10 + $0xd0] sm:$0xff]  ;;  %v3010_v19 = vld [vmem:[#allocation10 + $0xc8] sm:$0xff] }
 0xbaf   : > { %v2640_v31 = vpop.f32.mrf.mxu0  ;;  %v2728_v48 = vsel %vm2712_vm4, %v2704_v37, %v2720_v47  ;;  %v3424_v37 = vld [vmem:[#allocation9 + $0x100] sm:$0xff] }
 0xbb0   : > { %v2722_v32 = vmul.f32 0.01, %v2706_v29  ;;  %v2707_v33 = vadd.f32 %v2699_v4, %v2674_v30  ;;  %v2675_v34 = vmul.f32 %v2666_v52, %v2640_v31  ;;  %v2729_v35 = vsel %vm2713_vm13, %v2705_v8, %v2721_v28  ;;  %v2976_v8 = vld [vmem:[#allocation9 + $0xc0] sm:$0xff]  ;;  %v3199_v28 = vld [vmem:[#allocation9 + $0xf8] sm:$0xff] }
 0xbb1   : > { %2773 = vrot.lane.b32.xlu1 %v2729_v35, %s5554_s14  ;;  %vm2714_vm14 = vcmp.ge.f32.partialorder %v2706_v29, 0.0  ;;  %v3232_v30 = vld [vmem:[#allocation10 + $0xf8] sm:$0xff]  ;;  %v3229_v31 = vld [vmem:[#allocation10 + $0xe0] sm:$0xff]  ;;  %v3425_v35 = vld [vmem:[#allocation9 + $0x108] sm:$0xff] }
 0xbb2   : > { %v2723_v57 = vmul.f32 0.01, %v2707_v33  ;;  %v2708_v40 = vadd.f32 %v2699_v4, %v2675_v34  ;;  %v2730_v41 = vsel %vm2714_vm14, %v2706_v29, %v2722_v32  ;;  %vm2715_vm15 = vcmp.ge.f32.partialorder %v2707_v33, 0.0  ;;  %v3197_v29 = vld [vmem:[#allocation9 + $0xe8] sm:$0xff]  ;;  %v3427_v34 = vld [vmem:[#allocation9 + $0x118] sm:$0xff]  ;;  %v3685_v47 = vld [vmem:[#allocation10 + $0x120] sm:$0xff] }
 0xbb3   : > { %2775 = vrot.lane.b32.xlu0 %v2730_v41, %s5554_s14  ;;  %v3230_v32 = vld [vmem:[#allocation10 + $0xe8] sm:$0xff]  ;;  %v3654_v41 = vld [vmem:[#allocation9 + $0x130] sm:$0xff] }
 0xbb4   : > { %v2724_v44 = vmul.f32 0.01, %v2708_v40  ;;  %v2731_v45 = vsel %vm2715_vm15, %v2707_v33, %v2723_v57  ;;  %vm2716_vm2 = vcmp.ge.f32.partialorder %v2708_v40, 0.0  ;;  %v3426_v33 = vld [vmem:[#allocation9 + $0x110] sm:$0xff]  ;;  %v3457_v57 = vld [vmem:[#allocation10 + $0x100] sm:$0xff] }
 0xbb5   : > { %2777 = vrot.lane.b32.xlu1 %v2731_v45, %s5554_s14  ;;  %v3652_v45 = vld [vmem:[#allocation9 + $0x120] sm:$0xff] }
 0xbb6   : > { %v2732_v26 = vsel %vm2716_vm2, %v2708_v40, %v2724_v44  ;;  %v3458_v40 = vld [vmem:[#allocation10 + $0x108] sm:$0xff]  ;;  %v3688_v44 = vld [vmem:[#allocation10 + $0x138] sm:$0xff] }
 0xbb7   : > { %2779 = vrot.lane.b32.xlu0 %v2732_v26, %s5554_s14  ;;  %v3686_v26 = vld [vmem:[#allocation10 + $0x128] sm:$0xff] }
 0xbb9   : > { %2769 = vrot.lane.b32.xlu1 %v2727_v2, %s5554_s14  ;;  %v3883_v2 = vld [vmem:[#allocation9 + $0x158] sm:$0xff] }
 0xbbb   : > { %2771 = vrot.lane.b32.xlu0 %v2728_v48, %s5554_s14  ;;  %v3916_v48 = vld [vmem:[#allocation10 + $0x158] sm:$0xff] }
 0xbbd   : > { %2765 = vrot.lane.b32.xlu1 %v2725_v50, %s5554_s14  ;;  %v3880_v50 = vld [vmem:[#allocation9 + $0x140] sm:$0xff] }
 0xbbf   : > { %2767 = vrot.lane.b32.xlu0 %v2726_v27, %s5554_s14  ;;  %v3915_v27 = vld [vmem:[#allocation10 + $0x150] sm:$0xff] }
 0xbc1   : > { %5334 = vrot.lane.b32.xlu1 %v5544_v38, %s5554_s14 }
 0xbc3   : > { %5339 = vrot.lane.b32.xlu0 %v5544_v38, %s5554_s14 }
 0xc23   : > { %v6560_v53 = vpop.permute.xlu1 %2773 }
 0xc25   : > { %v2776_v54 = vpop.permute.xlu0 %2775 }
 0xc26   : > { %v6580_v0 = vsel %vm2403_vm10, %v6560_v53, %v2776_v54 }
 0xc27   : > { %v6562_v56 = vpop.permute.xlu1 %2777 }
 0xc29   : > { %v2780_v9 = vpop.permute.xlu0 %2779 }
 0xc2a   : > { %v6589_v6 = vsel %vm2403_vm10, %v6562_v56, %v2780_v9 }
 0xc2b   : > { %v6564_v55 = vpop.permute.xlu1 %2769 }
 0xc2d   : > { %v2772_v58 = vpop.permute.xlu0 %2771 }
 0xc2e   : > { %2816 = vrot.lane.b32.xlu0 %v2772_v58, %s5554_s14  ;;  %v6569_v59 = vsel %vm2403_vm10, %v6564_v55, %v2772_v58 }
 0xc2f   : > { %2814 = vrot.lane.b32.xlu1 %v6569_v59, %s5554_s14  ;;  %v6573_v60 = vpop.permute.xlu1 %2765 }
 0xc31   : > { %v2768_v61 = vpop.permute.xlu0 %2767 }
 0xc32   : > { %2818 = vrot.lane.b32.xlu0 %v6560_v53, %s5554_s14  ;;  %v6602_v15 = vsel %vm2403_vm10, %v6573_v60, %v2768_v61 }
 0xc33   : > { %2822 = vrot.lane.b32.xlu1 %v2776_v54, %s5554_s14  ;;  %v5335_v51 = vpop.permute.xlu1 %5334 }
 0xc34   : > { %v5337_v49 = vunpack.i.h.bf16 %v5335_v51  ;;  %v5336_v62 = vunpack.i.l.bf16 %v5335_v51  ;;  %v4109_v51 = vld [vmem:[#allocation9 + $0x168] sm:$0xff] }
 0xc35   : > { %v5340_v52 = vpop.permute.xlu0 %5339 }
 0xc36   : > { %v5341_v1 = vunpack.i.l.bf16 %v5340_v52  ;;  %2820 = vrot.lane.b32.xlu0 %v6580_v0, %s5554_s14  ;;  %v2853_v4 = vsel %vm2403_vm10, %v2780_v9, %v5336_v62  ;;  %v5342_v12 = vunpack.i.h.bf16 %v5340_v52  ;;  %v2852_v13 = vsel %vm2403_vm10, %v2776_v54, %v5337_v49  ;;  %v3913_v54 = vld [vmem:[#allocation10 + $0x140] sm:$0xff]  ;;  %v4144_v62 = vld [vmem:[#allocation10 + $0x178] sm:$0xff] }
 0xc37   : > { %2824 = vrot.lane.b32.xlu1 %v6562_v56, %s5554_s14  ;;  %2894 = vmatprep.subr.mxu1 %v2853_v4 }
 0xc38   : > { %2895 = vmatpush1.msra.mxu1 %v6589_v6  ;;  %v2851_v11 = vsel %vm2403_vm10, %v2772_v58, %v5341_v1  ;;  %v2850_v14 = vsel %vm2403_vm10, %v2768_v61, %v5342_v12  ;;  %v4110_v58 = vld [vmem:[#allocation9 + $0x170] sm:$0xff]  ;;  %v4108_v1 = vld [vmem:[#allocation9 + $0x160] sm:$0xff] }
 0xc39   : > { %2896 = vmatprep.subr.mxu1 %v2852_v13  ;;  %v4143_v12 = vld [vmem:[#allocation10 + $0x170] sm:$0xff] }
 0xc3a   : > { %2828 = vrot.lane.b32.xlu0 %v2780_v9, %s5554_s14  ;;  %2897 = vmatpush1.msra.mxu1 %v6580_v0  ;;  %v3914_v9 = vld [vmem:[#allocation10 + $0x148] sm:$0xff] }
 0xc3b   : > { %2826 = vrot.lane.b32.xlu1 %v6589_v6, %s5554_s14  ;;  %2898 = vmatprep.subr.mxu1 %v2851_v11  ;;  %v4141_v11 = vld [vmem:[#allocation10 + $0x160] sm:$0xff] }
 0xc3c   : > { %2899 = vmatpush1.msra.mxu1 %v6569_v59 }
 0xc3d   : > { %2900 = vmatprep.subr.mxu1 %v2850_v14 }
 0xc3e   : > { %2808 = vrot.lane.b32.xlu0 %v6602_v15, %s5554_s14  ;;  %2901 = vmatpush1.msra.mxu1 %v6602_v15 }
 0xc3f   : > { %2812 = vrot.lane.b32.xlu1 %v6564_v55, %s5554_s14 }
 0xc42   : > { %2806 = vrot.lane.b32.xlu0 %v6573_v60, %s5554_s14 }
 0xc43   : > { %2810 = vrot.lane.b32.xlu1 %v2768_v61, %s5554_s14  ;;  %v4111_v61 = vld [vmem:[#allocation9 + $0x178] sm:$0xff] }
 0xc46   : > { %2802 = vrot.lane.b32.xlu0 %v5544_v38, %s5554_s14 }
 0xc47   : > { %2804 = vrot.lane.b32.xlu1 %v5544_v38, %s5554_s14 }
 0xc4a   : > { %2798 = vrot.lane.b32.xlu0 %v5544_v38, %s5554_s14 }
 0xc4b   : > { %2800 = vrot.lane.b32.xlu1 %v5544_v38, %s5554_s14  ;;  %s5466_s14 = sshll.u32 %s5558_s6, 4  ;;  %s5467_s14 = int_to_ptr.vmem [resolvable:$false] %s5466_s14 }
 0xc4c   : > { %s5468_s17 = scalar_lea.vmem %s5467_s14, 96  ;;  %p5469_p4 = scmp.lt.s32.totalorder %s4988_s20, %s5467_s14 }
 0xc4d   : > { %p5470_p7 = scmp.lt.s32.totalorder %s5468_s17, %s5462_s30 }
 0xc4e   : > { %2992 = vperm.xlu0 %5256, %v2978_v16   ;;  %v4142_v16 = vld [vmem:[#allocation10 + $0x168] sm:$0xff] }
 0xc4f   : > { %2997 = vperm.xlu1 %5257, %v2979_v17   ;;  %p5471_p8 = por %p5470_p7, %p5469_p4 }
 0xc51   : > { %p5472_p11 = pnand %p5471_p8, %p5465_p13 }
 0xc52   : > { %2987 = vperm.xlu0 %5256, %v2977_v63   ;;  %v4338_v63 = vld [vmem:[#allocation9 + $0x190] sm:$0xff] }
 0xc53   : > { %3030 = vperm.xlu1 %5257, %v3012_v18  }
 0xc56   : > { %2982 = vperm.xlu0 %5256, %v2976_v8   ;;  %v4339_v8 = vld [vmem:[#allocation9 + $0x198] sm:$0xff] }
 0xc57   : > { %3025 = vperm.xlu1 %5257, %v3011_v20  }
 0xc5a   : > { %3015 = vperm.xlu0 %5256, %v3009_v23  }
 0xc5b   : > { %3020 = vperm.xlu1 %5257, %v3010_v19  }
 0xc5e   : > { %3212 = vperm.xlu0 %5256, %v3198_v25   ;;  %v4337_v25 = vld [vmem:[#allocation9 + $0x188] sm:$0xff] }
 0xc5f   : > { %3217 = vperm.xlu1 %5257, %v3199_v28  }
 0xc62   : > { %3207 = vperm.xlu0 %5256, %v3197_v29  }
 0xc63   : > { %3250 = vperm.xlu1 %5257, %v3232_v30   ;;  %v4372_v30 = vld [vmem:[#allocation10 + $0x198] sm:$0xff] }
 0xc66   : > { %3202 = vperm.xlu0 %5256, %v3196_v3  }
 0xc67   : > { %3245 = vperm.xlu1 %5257, %v3231_v5  }
 0xc6a   : > { %3235 = vperm.xlu0 %5256, %v3229_v31  }
 0xc6b   : > { %3240 = vperm.xlu1 %5257, %v3230_v32  }
 0xc6e   : > { %3440 = vperm.xlu0 %5256, %v3426_v33   ;;  %v4336_v33 = vld [vmem:[#allocation9 + $0x180] sm:$0xff] }
 0xc6f   : > { %3445 = vperm.xlu1 %5257, %v3427_v34  }
 0xc72   : > { %3435 = vperm.xlu0 %5256, %v3425_v35   ;;  %v4371_v35 = vld [vmem:[#allocation10 + $0x190] sm:$0xff] }
 0xc73   : > { %3478 = vperm.xlu1 %5257, %v3460_v36  }
 0xc76   : > { %3430 = vperm.xlu0 %5256, %v3424_v37  }
 0xc77   : > { %3473 = vperm.xlu1 %5257, %v3459_v39  }
 0xc7a   : > { %3463 = vperm.xlu0 %5256, %v3457_v57   ;;  %v4369_v57 = vld [vmem:[#allocation10 + $0x180] sm:$0xff] }
 0xc7b   : > { %3468 = vperm.xlu1 %5257, %v3458_v40  }
 0xc7e   : > { %3668 = vperm.xlu0 %5256, %v3654_v41   ;;  %v4370_v41 = vld [vmem:[#allocation10 + $0x188] sm:$0xff] }
 0xc7f   : > { %3673 = vperm.xlu1 %5257, %v3655_v42  }
 0xc82   : > { %3663 = vperm.xlu0 %5256, %v3653_v43  }
 0xc83   : > { %3706 = vperm.xlu1 %5257, %v3688_v44  }
 0xc86   : > { %3658 = vperm.xlu0 %5256, %v3652_v45  }
 0xc87   : > { %3701 = vperm.xlu1 %5257, %v3687_v7  }
 0xc8a   : > { %3691 = vperm.xlu0 %5256, %v3685_v47  }
 0xc8b   : > { %3696 = vperm.xlu1 %5257, %v3686_v26  }
 0xc8e   : > { %3896 = vperm.xlu0 %5256, %v3882_v46  }
 0xc8f   : > { %3901 = vperm.xlu1 %5257, %v3883_v2  }
 0xc92   : > { %3891 = vperm.xlu0 %5256, %v3881_v10  }
 0xc93   : > { %3934 = vperm.xlu1 %5257, %v3916_v48  }
 0xc96   : > { %3886 = vperm.xlu0 %5256, %v3880_v50  }
 0xc97   : > { %3929 = vperm.xlu1 %5257, %v3915_v27  }
 0xc9a   : > { %3919 = vperm.xlu0 %5256, %v3913_v54  }
 0xc9b   : > { %3924 = vperm.xlu1 %5257, %v3914_v9  }
 0xc9e   : > { %4124 = vperm.xlu0 %5256, %v4110_v58  }
 0xc9f   : > { %4129 = vperm.xlu1 %5257, %v4111_v61  }
 0xca0   : > { %v2817_v49 = vpop.permute.xlu0 %2816 }
 0xca1   : > { %v2815_v52 = vpop.permute.xlu1 %2814 }
 0xca2   : > { %4119 = vperm.xlu0 %5256, %v4109_v51   ;;  %v2845_v32 = vsel %vm2403_vm10, %v2815_v52, %v2817_v49 }
 0xca3   : > { %4162 = vperm.xlu1 %5257, %v4144_v62  }
 0xca4   : > { %v2819_v4 = vpop.permute.xlu0 %2818 }
 0xca5   : > { %v2823_v13 = vpop.permute.xlu1 %2822 }
 0xca6   : > { %4114 = vperm.xlu0 %5256, %v4108_v1  }
 0xca7   : > { %4157 = vperm.xlu1 %5257, %v4143_v12  }
 0xca8   : > { %v2821_v14 = vpop.permute.xlu0 %2820 }
 0xca9   : > { %v2825_v17 = vpop.permute.xlu1 %2824  ;;  %v2847_v29 = vsel %vm2403_vm10, %v2821_v14, %v2823_v13  ;;  %v2846_v5 = vsel %vm2403_vm10, %v2819_v4, %v2821_v14 }
 0xcaa   : > { %4147 = vperm.xlu0 %5256, %v4141_v11  }
 0xcab   : > { %4152 = vperm.xlu1 %5257, %v4142_v16  }
 0xcac   : > { %v2829_v18 = vpop.permute.xlu0 %2828 }
 0xcad   : > { %v2827_v20 = vpop.permute.xlu1 %2826 }
 0xcae   : > { %4352 = vperm.xlu0 %5256, %v4338_v63   ;;  %v2849_v23 = vsel %vm2403_vm10, %v2827_v20, %v2829_v18  ;;  %v2848_v19 = vsel %vm2403_vm10, %v2825_v17, %v2827_v20 }
 0xcaf   : > { %4357 = vperm.xlu1 %5257, %v4339_v8   ;;  %2902 = vmatprep.subr.mxu1 %v2849_v23 }
 0xcb0   : > { %v2809_v28 = vpop.permute.xlu0 %2808  ;;  %2903 = vmatpush1.msra.mxu1 %v2848_v19 }
 0xcb1   : > { %v2813_v3 = vpop.permute.xlu1 %2812  ;;  %2904 = vmatprep.subr.mxu1 %v2847_v29 }
 0xcb2   : > { %v2844_v31 = vsel %vm2403_vm10, %v2813_v3, %v2815_v52  ;;  %4347 = vperm.xlu0 %5256, %v4337_v25   ;;  %2905 = vmatpush1.msra.mxu1 %v2846_v5 }
 0xcb3   : > { %4390 = vperm.xlu1 %5257, %v4372_v30   ;;  %2906 = vmatprep.subr.mxu1 %v2845_v32 }
 0xcb4   : > { %v2807_v34 = vpop.permute.xlu0 %2806  ;;  %2907 = vmatpush1.msra.mxu1 %v2844_v31 }
 0xcb5   : > { %v2811_v36 = vpop.permute.xlu1 %2810  ;;  %v2842_v39 = vsel %vm2403_vm10, %v2807_v34, %v2809_v28 }
 0xcb6   : > { %4342 = vperm.xlu0 %5256, %v4336_v33   ;;  %v2843_v37 = vsel %vm2403_vm10, %v2809_v28, %v2811_v36 }
 0xcb7   : > { %4385 = vperm.xlu1 %5257, %v4371_v35   ;;  %2908 = vmatprep.subr.mxu1 %v2843_v37 }
 0xcb8   : > { %v2803_v40 = vpop.permute.xlu0 %2802  ;;  %2909 = vmatpush1.msra.mxu1 %v2842_v39 }
 0xcb9   : > { %v2805_v42 = vpop.permute.xlu1 %2804  ;;  %2910 = vmatprep.subr.mxu1 %v6589_v6  ;;  %v2840_v44 = vsel %vm2403_vm10, %v2803_v40, %v6560_v53  ;;  %v2786_v6 = vld [vmem:[#allocation7 + $0xa0] sm:$0xff]  ;;  %v2787_v53 = vld [vmem:[#allocation7 + $0xa8] sm:$0xff] }
 0xcba   : > { %v2841_v43 = vsel %vm2403_vm10, %v2805_v42, %v6562_v56  ;;  %4375 = vperm.xlu0 %5256, %v4369_v57   ;;  %v3091_v42 = vld [vmem:[#allocation7 + $0xc8] sm:$0xff] }
 0xcbb   : > { %4380 = vperm.xlu1 %5257, %v4370_v41   ;;  %2911 = vmatpush1.msra.mxu1 %v2841_v43  ;;  %v3090_v41 = vld [vmem:[#allocation7 + $0xc0] sm:$0xff]  ;;  %v3092_v43 = vld [vmem:[#allocation7 + $0xd0] sm:$0xff] }
 0xcbc   : > { %2912 = vmatprep.subr.mxu1 %v6580_v0  ;;  %v2799_v45 = vpop.permute.xlu0 %2798 }
 0xcbd   : > { %v2801_v7 = vpop.permute.xlu1 %2800  ;;  %2913 = vmatpush1.msra.mxu1 %v2840_v44  ;;  %v2838_v56 = vsel %vm2403_vm10, %v2799_v45, %v6573_v60  ;;  %v3093_v44 = vld [vmem:[#allocation7 + $0xd8] sm:$0xff] }
 0xcbe   : > { %v2839_v47 = vsel %vm2403_vm10, %v2801_v7, %v6564_v55  ;;  %2914 = vmatprep.subr.mxu1 %v6569_v59  ;;  %v2788_v55 = vld [vmem:[#allocation7 + $0xb0] sm:$0xff]  ;;  %v2789_v59 = vld [vmem:[#allocation7 + $0xb8] sm:$0xff]  ;;  %5349 = vrot.lane.b32.xlu0 %v5544_v38, %s5545_s15 }
 0xcbf   : > { %2915 = vmatpush1.msra.mxu1 %v2839_v47  ;;  %5344 = vrot.lane.b32.xlu1 %v5544_v38, %s5545_s15 }
 0xcc0   : > { %2916 = vmatprep.subr.mxu1 %v6602_v15 }
 0xcc1   : > { %2917 = vmatpush1.msra.mxu1 %v2838_v56 }
 0xcc2   : > { %5119 = vmatmul.mubr.msk.f32.vlgmr.msra.gmra.mxu1 %vm902_vm12, %v2786_v6 }
 0xcc3   : > { %2956 = vmatprep.mubr.f32.mxu1 %v5544_v38 }
 0xcc6   : > { %5120 = vmatmul.mubr.msk.f32.gmra.mxu1 %vm902_vm12, %v2787_v53 }
 0xcc7   : > { %2962 = vmatprep.mubr.f32.mxu1 %v5544_v38 }
 0xcc9   : > { %v2993_v0 = vpop.permute.xlu0 %2992 }
 0xcca   : > { %5121 = vmatmul.mubr.msk.f32.gmra.mxu1 %vm902_vm12, %v2788_v55  ;;  %v2998_v60 = vpop.permute.xlu1 %2997 }
 0xccb   : > { %2968 = vmatprep.mubr.f32.mxu1 %v5544_v38 }
 0xccd   : > { %v2988_v10 = vpop.permute.xlu0 %2987 }
 0xcce   : > { %5122 = vmatmul.mubr.msk.f32.gmra.mxu1 %vm902_vm12, %v2789_v59  ;;  %v3031_v46 = vpop.permute.xlu1 %3030 }
 0xccf   : > { %3398 = vmatprep.mubr.f32.mxu1 %v5544_v38 }
 0xcd1   : > { %v2983_v9 = vpop.permute.xlu0 %2982 }
 0xcd2   : > { %v3026_v27 = vpop.permute.xlu1 %3025 }
 0xcd5   : > { %v3016_v12 = vpop.permute.xlu0 %3015 }
 0xcd6   : > { %v3021_v4 = vpop.permute.xlu1 %3020 }
 0xcd9   : > { %v3213_v7 = vpop.permute.xlu0 %3212 }
 0xcda   : > { %v3218_v45 = vpop.permute.xlu1 %3217 }
 0xcdd   : > { %v3208_v55 = vpop.permute.xlu0 %3207 }
 0xcde   : > { %v3251_v56 = vpop.permute.xlu1 %3250 }
 0xd82   : > { %v2952_v15 = vpop.f32.mrf.mxu1 }
 0xd83   : > { %v3000_v25 = vmul.f32 %v2983_v9, %v2952_v15 }
 0xd84   : > { %v2954_v26 = vpop.f32.mrf.mxu1 }
 0xd85   : > { %v3001_v49 = vmul.f32 %v2983_v9, %v2954_v26  ;;  %v3033_v32 = vadd.f32 %v3016_v12, %v3000_v25  ;;  %v3203_v26 = vpop.permute.xlu0 %3202 }
 0xd86   : > { %v2958_v2 = vpop.f32.mrf.mxu1 }
 0xd87   : > { %v3034_v16 = vadd.f32 %v3016_v12, %v3001_v49  ;;  %v3002_v8 = vmul.f32 %v2988_v10, %v2958_v2  ;;  %v3049_v37 = vmul.f32 0.01, %v3033_v32  ;;  %vm3041_vm2 = vcmp.ge.f32.partialorder %v3033_v32, 0.0 }
 0xd88   : > { %v2960_v48 = vpop.f32.mrf.mxu1 }
 0xd89   : > { %v3003_v51 = vmul.f32 %v2988_v10, %v2960_v48  ;;  %v3050_v28 = vmul.f32 0.01, %v3034_v16  ;;  %vm3042_vm10 = vcmp.ge.f32.partialorder %v3034_v16, 0.0  ;;  %v3035_v3 = vadd.f32 %v3021_v4, %v3002_v8 }
 0xd8a   : > { %v2964_v50 = vpop.f32.mrf.mxu1  ;;  %v3057_v40 = vsel %vm3041_vm2, %v3033_v32, %v3049_v37 }
 0xd8b   : > { %v3036_v13 = vadd.f32 %v3021_v4, %v3003_v51  ;;  %v3004_v17 = vmul.f32 %v2993_v0, %v2964_v50  ;;  %v3058_v34 = vsel %vm3042_vm10, %v3034_v16, %v3050_v28  ;;  %v3051_v35 = vmul.f32 0.01, %v3035_v3 }
 0xd8c   : > { %v2966_v54 = vpop.f32.mrf.mxu1  ;;  %vm3043_vm15 = vcmp.ge.f32.partialorder %v3035_v3, 0.0 }
 0xd8d   : > { %v3005_v58 = vmul.f32 %v2993_v0, %v2966_v54  ;;  %v3052_v20 = vmul.f32 0.01, %v3036_v13  ;;  %vm3044_vm9 = vcmp.ge.f32.partialorder %v3036_v13, 0.0  ;;  %v3037_v29 = vadd.f32 %v3026_v27, %v3004_v17  ;;  %v3246_v0 = vpop.permute.xlu1 %3245 }
 0xd8e   : > { %v2970_v61 = vpop.f32.mrf.mxu1  ;;  %v3059_v57 = vsel %vm3043_vm15, %v3035_v3, %v3051_v35  ;;  %v3320_v35 = vld [vmem:[#allocation7 + $0xf0] sm:$0xff] }
 0xd8f   : > { %v3038_v52 = vadd.f32 %v3026_v27, %v3005_v58  ;;  %v3006_v11 = vmul.f32 %v2998_v60, %v2970_v61  ;;  %v3060_v31 = vsel %vm3044_vm9, %v3036_v13, %v3052_v20  ;;  %v3053_v33 = vmul.f32 0.01, %v3037_v29 }
 0xd90   : > { %v2972_v62 = vpop.f32.mrf.mxu1  ;;  %vm3045_vm14 = vcmp.ge.f32.partialorder %v3037_v29, 0.0 }
 0xd91   : > { %v3007_v1 = vmul.f32 %v2998_v60, %v2972_v62  ;;  %v3054_v63 = vmul.f32 0.01, %v3038_v52  ;;  %vm3046_vm8 = vcmp.ge.f32.partialorder %v3038_v52, 0.0  ;;  %v3039_v23 = vadd.f32 %v3031_v46, %v3006_v11  ;;  %v3241_v49 = vpop.permute.xlu1 %3240 }
 0xd92   : > { %v3061_v39 = vsel %vm3045_vm14, %v3037_v29, %v3053_v33  ;;  %v3318_v33 = vld [vmem:[#allocation7 + $0xe0] sm:$0xff] }
 0xd93   : > { %v3040_v14 = vadd.f32 %v3031_v46, %v3007_v1  ;;  %v3062_v30 = vsel %vm3046_vm8, %v3038_v52, %v3054_v63  ;;  %v3055_v5 = vmul.f32 0.01, %v3039_v23  ;;  %vm3047_vm13 = vcmp.ge.f32.partialorder %v3039_v23, 0.0  ;;  %v3236_v1 = vpop.permute.xlu0 %3235 }
 0xd95   : > { %v3056_v18 = vmul.f32 0.01, %v3040_v14  ;;  %vm3048_vm7 = vcmp.ge.f32.partialorder %v3040_v14, 0.0  ;;  %v3063_v36 = vsel %vm3047_vm13, %v3039_v23, %v3055_v5  ;;  %v3446_v37 = vpop.permute.xlu1 %3445 }
 0xd97   : > { %v3064_v19 = vsel %vm3048_vm7, %v3040_v14, %v3056_v18 }
 0xd98   : > { %3115 = vmatpush1.msra.mxu0 %v3064_v19 }
 0xd99   : > { %3116 = vmatprep.subr.mxu0 %v5544_v38 }
 0xd9a   : > { %3117 = vmatpush1.msra.mxu0 %v3062_v30 }
 0xd9b   : > { %3118 = vmatprep.subr.mxu0 %v5544_v38 }
 0xd9c   : > { %3119 = vmatpush1.msra.mxu0 %v3060_v31 }
 0xd9d   : > { %3120 = vmatprep.subr.mxu0 %v5544_v38 }
 0xd9e   : > { %3121 = vmatpush1.msra.mxu0 %v3058_v34 }
 0xd9f   : > { %3122 = vmatprep.subr.mxu0 %v3064_v19 }
 0xda0   : > { %3123 = vmatpush1.msra.mxu0 %v3063_v36 }
 0xda1   : > { %3124 = vmatprep.subr.mxu0 %v3062_v30 }
 0xda2   : > { %3125 = vmatpush1.msra.mxu0 %v3061_v39 }
 0xda3   : > { %3126 = vmatprep.subr.mxu0 %v3060_v31 }
 0xda4   : > { %3127 = vmatpush1.msra.mxu0 %v3059_v57 }
 0xda5   : > { %3128 = vmatprep.subr.mxu0 %v3058_v34  ;;  %v3319_v34 = vld [vmem:[#allocation7 + $0xe8] sm:$0xff] }
 0xda6   : > { %3129 = vmatpush1.msra.mxu0 %v3057_v40 }
 0xda7   : > { %3130 = vmatprep.subr.mxu0 %v3063_v36  ;;  %v3321_v36 = vld [vmem:[#allocation7 + $0xf8] sm:$0xff] }
 0xda8   : > { %3131 = vmatpush1.msra.mxu0 %v5544_v38 }
 0xda9   : > { %3132 = vmatprep.subr.mxu0 %v3061_v39  ;;  %v3441_v39 = vpop.permute.xlu0 %3440 }
 0xdaa   : > { %3133 = vmatpush1.msra.mxu0 %v5544_v38 }
 0xdab   : > { %3134 = vmatprep.subr.mxu0 %v3059_v57 }
 0xdac   : > { %3135 = vmatpush1.msra.mxu0 %v5544_v38 }
 0xdad   : > { %3136 = vmatprep.subr.mxu0 %v3057_v40 }
 0xdae   : > { %3137 = vmatpush1.msra.mxu0 %v5544_v38 }
 0xdaf   : > { %5123 = vmatmul.mubr.msk.f32.vlgmr.msra.gmra.mxu0 %vm902_vm12, %v3090_v41  ;;  %v3479_v41 = vpop.permute.xlu1 %3478 }
 0xdb0   : > { %3176 = vmatprep.mubr.f32.mxu0 %v5544_v38 }
 0xdb3   : > { %5124 = vmatmul.mubr.msk.f32.gmra.mxu0 %vm902_vm12, %v3091_v42 }
 0xdb4   : > { %3182 = vmatprep.mubr.f32.mxu0 %v5544_v38 }
 0xdb7   : > { %5125 = vmatmul.mubr.msk.f32.gmra.mxu0 %vm902_vm12, %v3092_v43  ;;  %v3436_v43 = vpop.permute.xlu0 %3435 }
 0xdb8   : > { %3188 = vmatprep.mubr.f32.mxu0 %v5544_v38 }
 0xdbb   : > { %5126 = vmatmul.mubr.msk.f32.gmra.mxu0 %vm902_vm12, %v3093_v44 }
 0xdbc   : > { %3854 = vmatprep.mubr.f32.mxu0 %v5544_v38 }
 0xe6f   : > { %v3172_v47 = vpop.f32.mrf.mxu0 }
 0xe70   : > { %v3220_v62 = vmul.f32 %v3203_v26, %v3172_v47 }
 0xe71   : > { %v3174_v6 = vpop.f32.mrf.mxu0 }
 0xe72   : > { %v3221_v27 = vmul.f32 %v3203_v26, %v3174_v6  ;;  %v3253_v63 = vadd.f32 %v3236_v1, %v3220_v62  ;;  %v3431_v6 = vpop.permute.xlu0 %3430 }
 0xe73   : > { %v3178_v53 = vpop.f32.mrf.mxu0 }
 0xe74   : > { %v3222_v54 = vmul.f32 %v3208_v55, %v3178_v53  ;;  %v3254_v13 = vadd.f32 %v3236_v1, %v3221_v27  ;;  %v3269_v29 = vmul.f32 0.01, %v3253_v63  ;;  %vm3261_vm10 = vcmp.ge.f32.partialorder %v3253_v63, 0.0 }
 0xe75   : > { %v3180_v59 = vpop.f32.mrf.mxu0 }
 0xe76   : > { %v3223_v48 = vmul.f32 %v3208_v55, %v3180_v59  ;;  %v3255_v11 = vadd.f32 %v3241_v49, %v3222_v54  ;;  %v3270_v28 = vmul.f32 0.01, %v3254_v13  ;;  %vm3262_vm9 = vcmp.ge.f32.partialorder %v3254_v13, 0.0  ;;  %v3464_v54 = vpop.permute.xlu0 %3463 }
 0xe77   : > { %v3184_v60 = vpop.f32.mrf.mxu0  ;;  %v3277_v32 = vsel %vm3261_vm10, %v3253_v63, %v3269_v29  ;;  %v3548_v29 = vld [vmem:[#allocation7 + $0x110] sm:$0xff] }
 0xe78   : > { %v3224_v2 = vmul.f32 %v3213_v7, %v3184_v60  ;;  %v3256_v4 = vadd.f32 %v3241_v49, %v3223_v48  ;;  %v3271_v23 = vmul.f32 0.01, %v3255_v11  ;;  %vm3263_vm8 = vcmp.ge.f32.partialorder %v3255_v11, 0.0 }
 0xe79   : > { %v3186_v15 = vpop.f32.mrf.mxu0  ;;  %v3278_v31 = vsel %vm3262_vm9, %v3254_v13, %v3270_v28  ;;  %v3547_v28 = vld [vmem:[#allocation7 + $0x108] sm:$0xff] }
 0xe7a   : > { %v3225_v46 = vmul.f32 %v3213_v7, %v3186_v15  ;;  %v3257_v52 = vadd.f32 %v3246_v0, %v3224_v2  ;;  %v3272_v20 = vmul.f32 0.01, %v3256_v4  ;;  %vm3264_vm7 = vcmp.ge.f32.partialorder %v3256_v4, 0.0  ;;  %v3474_v7 = vpop.permute.xlu1 %3473 }
 0xe7b   : > { %v3190_v10 = vpop.f32.mrf.mxu0  ;;  %v3279_v5 = vsel %vm3263_vm8, %v3255_v11, %v3271_v23 }
 0xe7c   : > { %v3226_v50 = vmul.f32 %v3218_v45, %v3190_v10  ;;  %v3258_v58 = vadd.f32 %v3246_v0, %v3225_v46  ;;  %v3273_v18 = vmul.f32 0.01, %v3257_v52  ;;  %vm3265_vm6 = vcmp.ge.f32.partialorder %v3257_v52, 0.0 }
 0xe7d   : > { %v3192_v9 = vpop.f32.mrf.mxu0  ;;  %v3280_v3 = vsel %vm3264_vm7, %v3256_v4, %v3272_v20 }
 0xe7e   : > { %v3259_v61 = vadd.f32 %v3251_v56, %v3226_v50  ;;  %v3227_v51 = vmul.f32 %v3218_v45, %v3192_v9  ;;  %v3274_v17 = vmul.f32 0.01, %v3258_v58  ;;  %vm3266_vm5 = vcmp.ge.f32.partialorder %v3258_v58, 0.0  ;;  %v3469_v48 = vpop.permute.xlu1 %3468 }
 0xe7f   : > { %v3281_v30 = vsel %vm3265_vm6, %v3257_v52, %v3273_v18 }
 0xe80   : > { %v3260_v12 = vadd.f32 %v3251_v56, %v3227_v51  ;;  %v3275_v14 = vmul.f32 0.01, %v3259_v61  ;;  %vm3267_vm4 = vcmp.ge.f32.partialorder %v3259_v61, 0.0  ;;  %v3282_v25 = vsel %vm3266_vm5, %v3258_v58, %v3274_v17 }
 0xe82   : > { %vm3268_vm3 = vcmp.ge.f32.partialorder %v3260_v12, 0.0  ;;  %v3276_v16 = vmul.f32 0.01, %v3260_v12  ;;  %v3283_v19 = vsel %vm3267_vm4, %v3259_v61, %v3275_v14 }
 0xe84   : > { %v3284_v8 = vsel %vm3268_vm3, %v3260_v12, %v3276_v16 }
 0xe85   : > { %3350 = vmatprep.subr.mxu1 %v3284_v8 }
 0xe86   : > { %3351 = vmatpush1.msra.mxu1 %v3283_v19 }
 0xe87   : > { %3352 = vmatprep.subr.mxu1 %v3282_v25  ;;  %v3546_v25 = vld [vmem:[#allocation7 + $0x100] sm:$0xff] }
 0xe88   : > { %3353 = vmatpush1.msra.mxu1 %v3281_v30  ;;  %v3549_v30 = vld [vmem:[#allocation7 + $0x118] sm:$0xff] }
 0xe89   : > { %3354 = vmatprep.subr.mxu1 %v3280_v3  ;;  %v3674_v3 = vpop.permute.xlu1 %3673 }
 0xe8a   : > { %3355 = vmatpush1.msra.mxu1 %v3279_v5  ;;  %v3669_v5 = vpop.permute.xlu0 %3668 }
 0xe8b   : > { %3356 = vmatprep.subr.mxu1 %v3278_v31 }
 0xe8c   : > { %3357 = vmatpush1.msra.mxu1 %v3277_v32 }
 0xe8d   : > { %3358 = vmatprep.subr.mxu1 %v5544_v38 }
 0xe8e   : > { %3359 = vmatpush1.msra.mxu1 %v5544_v38 }
 0xe8f   : > { %3360 = vmatprep.subr.mxu1 %v5544_v38 }
 0xe90   : > { %3361 = vmatpush1.msra.mxu1 %v5544_v38 }
 0xe91   : > { %3362 = vmatprep.subr.mxu1 %v5544_v38 }
 0xe92   : > { %3363 = vmatpush1.msra.mxu1 %v5544_v38 }
 0xe93   : > { %3364 = vmatprep.subr.mxu1 %v5544_v38 }
 0xe94   : > { %3365 = vmatpush1.msra.mxu1 %v5544_v38 }
 0xe95   : > { %5127 = vmatmul.mubr.msk.f32.vlgmr.msra.gmra.mxu1 %vm902_vm12, %v3318_v33  ;;  %v3707_v33 = vpop.permute.xlu1 %3706 }
 0xe96   : > { %3404 = vmatprep.mubr.f32.mxu1 %v5544_v38 }
 0xe99   : > { %5128 = vmatmul.mubr.msk.f32.gmra.mxu1 %vm902_vm12, %v3319_v34 }
 0xe9a   : > { %3410 = vmatprep.mubr.f32.mxu1 %v5544_v38 }
 0xe9d   : > { %5129 = vmatmul.mubr.msk.f32.gmra.mxu1 %vm902_vm12, %v3320_v35  ;;  %v3664_v35 = vpop.permute.xlu0 %3663 }
 0xe9e   : > { %3416 = vmatprep.mubr.f32.mxu1 %v5544_v38 }
 0xea1   : > { %5130 = vmatmul.mubr.msk.f32.gmra.mxu1 %vm902_vm12, %v3321_v36 }
 0xea2   : > { %3626 = vmatprep.mubr.f32.mxu1 %v5544_v38 }
 0xf55   : > { %v3400_v57 = vpop.f32.mrf.mxu1 }
 0xf56   : > { %v3448_v50 = vmul.f32 %v3431_v6, %v3400_v57 }
 0xf57   : > { %v3402_v40 = vpop.f32.mrf.mxu1 }
 0xf58   : > { %v3449_v0 = vmul.f32 %v3431_v6, %v3402_v40  ;;  %v3481_v1 = vadd.f32 %v3464_v54, %v3448_v50  ;;  %v3659_v40 = vpop.permute.xlu0 %3658 }
 0xf59   : > { %v3406_v42 = vpop.f32.mrf.mxu1 }
 0xf5a   : > { %v3450_v15 = vmul.f32 %v3436_v43, %v3406_v42  ;;  %v3482_v61 = vadd.f32 %v3464_v54, %v3449_v0  ;;  %v3497_v63 = vmul.f32 0.01, %v3481_v1  ;;  %vm3489_vm6 = vcmp.ge.f32.partialorder %v3481_v1, 0.0 }
 0xf5b   : > { %v3408_v44 = vpop.f32.mrf.mxu1 }
 0xf5c   : > { %v3451_v59 = vmul.f32 %v3436_v43, %v3408_v44  ;;  %v3483_v51 = vadd.f32 %v3469_v48, %v3450_v15  ;;  %v3498_v17 = vmul.f32 0.01, %v3482_v61  ;;  %vm3490_vm5 = vcmp.ge.f32.partialorder %v3482_v61, 0.0  ;;  %v3692_v15 = vpop.permute.xlu0 %3691 }
 0xf5d   : > { %v3412_v45 = vpop.f32.mrf.mxu1  ;;  %v3505_v19 = vsel %vm3489_vm6, %v3481_v1, %v3497_v63  ;;  %v3776_v63 = vld [vmem:[#allocation7 + $0x130] sm:$0xff] }
 0xf5e   : > { %v3452_v53 = vmul.f32 %v3441_v39, %v3412_v45  ;;  %v3484_v9 = vadd.f32 %v3469_v48, %v3451_v59  ;;  %v3499_v11 = vmul.f32 0.01, %v3483_v51  ;;  %vm3491_vm4 = vcmp.ge.f32.partialorder %v3483_v51, 0.0 }
 0xf5f   : > { %v3414_v47 = vpop.f32.mrf.mxu1  ;;  %v3506_v23 = vsel %vm3490_vm5, %v3482_v61, %v3498_v17  ;;  %v3775_v17 = vld [vmem:[#allocation7 + $0x128] sm:$0xff] }
 0xf60   : > { %v3453_v56 = vmul.f32 %v3441_v39, %v3414_v47  ;;  %v3485_v27 = vadd.f32 %v3474_v7, %v3452_v53  ;;  %v3500_v13 = vmul.f32 0.01, %v3484_v9  ;;  %vm3492_vm3 = vcmp.ge.f32.partialorder %v3484_v9, 0.0  ;;  %v3702_v39 = vpop.permute.xlu1 %3701 }
 0xf61   : > { %v3418_v55 = vpop.f32.mrf.mxu1  ;;  %v3507_v20 = vsel %vm3491_vm4, %v3483_v51, %v3499_v11 }
 0xf62   : > { %v3454_v60 = vmul.f32 %v3446_v37, %v3418_v55  ;;  %v3486_v46 = vadd.f32 %v3474_v7, %v3453_v56  ;;  %v3501_v4 = vmul.f32 0.01, %v3485_v27  ;;  %vm3493_vm2 = vcmp.ge.f32.partialorder %v3485_v27, 0.0 }
 0xf63   : > { %v3420_v26 = vpop.f32.mrf.mxu1  ;;  %v3508_v8 = vsel %vm3492_vm3, %v3484_v9, %v3500_v13 }
 0xf64   : > { %v3487_v2 = vadd.f32 %v3479_v41, %v3454_v60  ;;  %v3455_v10 = vmul.f32 %v3446_v37, %v3420_v26  ;;  %v3502_v52 = vmul.f32 0.01, %v3486_v46  ;;  %vm3494_vm15 = vcmp.ge.f32.partialorder %v3486_v46, 0.0  ;;  %v3697_v59 = vpop.permute.xlu1 %3696 }
 0xf65   : > { %v3509_v18 = vsel %vm3493_vm2, %v3485_v27, %v3501_v4 }
 0xf66   : > { %v3488_v58 = vadd.f32 %v3479_v41, %v3455_v10  ;;  %v3503_v49 = vmul.f32 0.01, %v3487_v2  ;;  %vm3495_vm14 = vcmp.ge.f32.partialorder %v3487_v2, 0.0  ;;  %v3510_v16 = vsel %vm3494_vm15, %v3486_v46, %v3502_v52 }
 0xf68   : > { %vm3496_vm13 = vcmp.ge.f32.partialorder %v3488_v58, 0.0  ;;  %v3504_v62 = vmul.f32 0.01, %v3488_v58  ;;  %v3511_v14 = vsel %vm3495_vm14, %v3487_v2, %v3503_v49 }
 0xf6a   : > { %v3512_v12 = vsel %vm3496_vm13, %v3488_v58, %v3504_v62 }
 0xf6b   : > { %3578 = vmatprep.subr.mxu1 %v3512_v12 }
 0xf6c   : > { %3579 = vmatpush1.msra.mxu1 %v3511_v14 }
 0xf6d   : > { %3580 = vmatprep.subr.mxu1 %v3510_v16  ;;  %v3774_v16 = vld [vmem:[#allocation7 + $0x120] sm:$0xff] }
 0xf6e   : > { %3581 = vmatpush1.msra.mxu1 %v3509_v18  ;;  %v3777_v18 = vld [vmem:[#allocation7 + $0x138] sm:$0xff] }
 0xf6f   : > { %3582 = vmatprep.subr.mxu1 %v3508_v8  ;;  %v3902_v8 = vpop.permute.xlu1 %3901 }
 0xf70   : > { %3583 = vmatpush1.msra.mxu1 %v3507_v20  ;;  %v3897_v20 = vpop.permute.xlu0 %3896 }
 0xf71   : > { %3584 = vmatprep.subr.mxu1 %v3506_v23 }
 0xf72   : > { %3585 = vmatpush1.msra.mxu1 %v3505_v19 }
 0xf73   : > { %3586 = vmatprep.subr.mxu1 %v5544_v38 }
 0xf74   : > { %3587 = vmatpush1.msra.mxu1 %v5544_v38 }
 0xf75   : > { %3588 = vmatprep.subr.mxu1 %v5544_v38 }
 0xf76   : > { %3589 = vmatpush1.msra.mxu1 %v5544_v38 }
 0xf77   : > { %3590 = vmatprep.subr.mxu1 %v5544_v38 }
 0xf78   : > { %3591 = vmatpush1.msra.mxu1 %v5544_v38 }
 0xf79   : > { %3592 = vmatprep.subr.mxu1 %v5544_v38 }
 0xf7a   : > { %3593 = vmatpush1.msra.mxu1 %v5544_v38 }
 0xf7b   : > { %5131 = vmatmul.mubr.msk.f32.vlgmr.msra.gmra.mxu1 %vm902_vm12, %v3546_v25  ;;  %v3935_v25 = vpop.permute.xlu1 %3934 }
 0xf7c   : > { %3632 = vmatprep.mubr.f32.mxu1 %v5544_v38 }
 0xf7f   : > { %5132 = vmatmul.mubr.msk.f32.gmra.mxu1 %vm902_vm12, %v3547_v28 }
 0xf80   : > { %3638 = vmatprep.mubr.f32.mxu1 %v5544_v38 }
 0xf83   : > { %5133 = vmatmul.mubr.msk.f32.gmra.mxu1 %vm902_vm12, %v3548_v29  ;;  %v3892_v29 = vpop.permute.xlu0 %3891 }
 0xf84   : > { %3644 = vmatprep.mubr.f32.mxu1 %v5544_v38 }
 0xf87   : > { %5134 = vmatmul.mubr.msk.f32.gmra.mxu1 %vm902_vm12, %v3549_v30 }
 0xf88   : > { %4082 = vmatprep.mubr.f32.mxu1 %v5544_v38 }
0x103b   : > { %v3628_v31 = vpop.f32.mrf.mxu1 }
0x103c   : > { %v3676_v60 = vmul.f32 %v3659_v40, %v3628_v31 }
0x103d   : > { %v3630_v32 = vpop.f32.mrf.mxu1 }
0x103e   : > { %v3677_v7 = vmul.f32 %v3659_v40, %v3630_v32  ;;  %v3709_v54 = vadd.f32 %v3692_v15, %v3676_v60  ;;  %v3887_v32 = vpop.permute.xlu0 %3886 }
0x103f   : > { %v3634_v34 = vpop.f32.mrf.mxu1 }
0x1040   : > { %v3678_v47 = vmul.f32 %v3664_v35, %v3634_v34  ;;  %v3710_v2 = vadd.f32 %v3692_v15, %v3677_v7  ;;  %v3725_v1 = vmul.f32 0.01, %v3709_v54  ;;  %vm3717_vm2 = vcmp.ge.f32.partialorder %v3709_v54, 0.0 }
0x1041   : > { %v3636_v36 = vpop.f32.mrf.mxu1 }
0x1042   : > { %v3679_v44 = vmul.f32 %v3664_v35, %v3636_v36  ;;  %v3711_v10 = vadd.f32 %v3697_v59, %v3678_v47  ;;  %v3726_v52 = vmul.f32 0.01, %v3710_v2  ;;  %vm3718_vm15 = vcmp.ge.f32.partialorder %v3710_v2, 0.0  ;;  %v3920_v47 = vpop.permute.xlu0 %3919 }
0x1043   : > { %v3640_v37 = vpop.f32.mrf.mxu1  ;;  %v3733_v14 = vsel %vm3717_vm2, %v3709_v54, %v3725_v1  ;;  %v4004_v1 = vld [vmem:[#allocation7 + $0x150] sm:$0xff] }
0x1044   : > { %v3680_v42 = vmul.f32 %v3669_v5, %v3640_v37  ;;  %v3712_v26 = vadd.f32 %v3697_v59, %v3679_v44  ;;  %v3727_v51 = vmul.f32 0.01, %v3711_v10  ;;  %vm3719_vm14 = vcmp.ge.f32.partialorder %v3711_v10, 0.0 }
0x1045   : > { %v3642_v57 = vpop.f32.mrf.mxu1  ;;  %v3734_v11 = vsel %vm3718_vm15, %v3710_v2, %v3726_v52  ;;  %v4003_v52 = vld [vmem:[#allocation7 + $0x148] sm:$0xff] }
0x1046   : > { %v3681_v41 = vmul.f32 %v3669_v5, %v3642_v57  ;;  %v3713_v0 = vadd.f32 %v3702_v39, %v3680_v42  ;;  %v3728_v61 = vmul.f32 0.01, %v3712_v26  ;;  %vm3720_vm13 = vcmp.ge.f32.partialorder %v3712_v26, 0.0  ;;  %v3930_v5 = vpop.permute.xlu1 %3929 }
0x1047   : > { %v3646_v43 = vpop.f32.mrf.mxu1  ;;  %v3735_v13 = vsel %vm3719_vm14, %v3711_v10, %v3727_v51 }
0x1048   : > { %v3682_v45 = vmul.f32 %v3674_v3, %v3646_v43  ;;  %v3714_v56 = vadd.f32 %v3702_v39, %v3681_v41  ;;  %v3729_v9 = vmul.f32 0.01, %v3713_v0  ;;  %vm3721_vm10 = vcmp.ge.f32.partialorder %v3713_v0, 0.0 }
0x1049   : > { %v3648_v6 = vpop.f32.mrf.mxu1  ;;  %v3736_v12 = vsel %vm3720_vm13, %v3712_v26, %v3728_v61 }
0x104a   : > { %v3715_v53 = vadd.f32 %v3707_v33, %v3682_v45  ;;  %v3683_v55 = vmul.f32 %v3674_v3, %v3648_v6  ;;  %v3730_v27 = vmul.f32 0.01, %v3714_v56  ;;  %vm3722_vm9 = vcmp.ge.f32.partialorder %v3714_v56, 0.0  ;;  %v3925_v44 = vpop.permute.xlu1 %3924 }
0x104b   : > { %v3737_v4 = vsel %vm3721_vm10, %v3713_v0, %v3729_v9 }
0x104c   : > { %v3716_v46 = vadd.f32 %v3707_v33, %v3683_v55  ;;  %v3731_v48 = vmul.f32 0.01, %v3715_v53  ;;  %vm3723_vm8 = vcmp.ge.f32.partialorder %v3715_v53, 0.0  ;;  %v3738_v62 = vsel %vm3722_vm9, %v3714_v56, %v3730_v27 }
0x104e   : > { %vm3724_vm7 = vcmp.ge.f32.partialorder %v3716_v46, 0.0  ;;  %v3732_v50 = vmul.f32 0.01, %v3716_v46  ;;  %v3739_v49 = vsel %vm3723_vm8, %v3715_v53, %v3731_v48 }
0x1050   : > { %v3740_v58 = vsel %vm3724_vm7, %v3716_v46, %v3732_v50 }
0x1051   : > { %3806 = vmatprep.subr.mxu0 %v3740_v58 }
0x1052   : > { %3807 = vmatpush1.msra.mxu0 %v3739_v49 }
0x1053   : > { %3808 = vmatprep.subr.mxu0 %v3738_v62  ;;  %v4002_v62 = vld [vmem:[#allocation7 + $0x140] sm:$0xff] }
0x1054   : > { %3809 = vmatpush1.msra.mxu0 %v3737_v4  ;;  %v4005_v4 = vld [vmem:[#allocation7 + $0x158] sm:$0xff] }
0x1055   : > { %3810 = vmatprep.subr.mxu0 %v3736_v12  ;;  %v4130_v12 = vpop.permute.xlu1 %4129 }
0x1056   : > { %3811 = vmatpush1.msra.mxu0 %v3735_v13  ;;  %v4125_v13 = vpop.permute.xlu0 %4124 }
0x1057   : > { %3812 = vmatprep.subr.mxu0 %v3734_v11 }
0x1058   : > { %3813 = vmatpush1.msra.mxu0 %v3733_v14 }
0x1059   : > { %3814 = vmatprep.subr.mxu0 %v5544_v38 }
0x105a   : > { %3815 = vmatpush1.msra.mxu0 %v5544_v38 }
0x105b   : > { %3816 = vmatprep.subr.mxu0 %v5544_v38 }
0x105c   : > { %3817 = vmatpush1.msra.mxu0 %v5544_v38 }
0x105d   : > { %3818 = vmatprep.subr.mxu0 %v5544_v38 }
0x105e   : > { %3819 = vmatpush1.msra.mxu0 %v5544_v38 }
0x105f   : > { %3820 = vmatprep.subr.mxu0 %v5544_v38 }
0x1060   : > { %3821 = vmatpush1.msra.mxu0 %v5544_v38 }
0x1061   : > { %5135 = vmatmul.mubr.msk.f32.vlgmr.msra.gmra.mxu0 %vm902_vm12, %v3774_v16  ;;  %v4163_v16 = vpop.permute.xlu1 %4162 }
0x1062   : > { %3860 = vmatprep.mubr.f32.mxu0 %v5544_v38 }
0x1065   : > { %5136 = vmatmul.mubr.msk.f32.gmra.mxu0 %vm902_vm12, %v3775_v17 }
0x1066   : > { %3866 = vmatprep.mubr.f32.mxu0 %v5544_v38 }
0x1069   : > { %5137 = vmatmul.mubr.msk.f32.gmra.mxu0 %vm902_vm12, %v3776_v63  ;;  %v4120_v63 = vpop.permute.xlu0 %4119 }
0x106a   : > { %3872 = vmatprep.mubr.f32.mxu0 %v5544_v38 }
0x106d   : > { %5138 = vmatmul.mubr.msk.f32.gmra.mxu0 %vm902_vm12, %v3777_v18 }
0x106e   : > { %4310 = vmatprep.mubr.f32.mxu0 %v5544_v38 }
0x1121   : > { %v3856_v23 = vpop.f32.mrf.mxu0 }
0x1122   : > { %v3904_v45 = vmul.f32 %v3887_v32, %v3856_v23 }
0x1123   : > { %v3858_v19 = vpop.f32.mrf.mxu0 }
0x1124   : > { %v3905_v39 = vmul.f32 %v3887_v32, %v3858_v19  ;;  %v3937_v15 = vadd.f32 %v3920_v47, %v3904_v45  ;;  %v4115_v19 = vpop.permute.xlu0 %4114 }
0x1125   : > { %v3862_v28 = vpop.f32.mrf.mxu0 }
0x1126   : > { %v3906_v57 = vmul.f32 %v3892_v29, %v3862_v28  ;;  %v3938_v53 = vadd.f32 %v3920_v47, %v3905_v39  ;;  %v3953_v54 = vmul.f32 0.01, %v3937_v15  ;;  %vm3945_vm10 = vcmp.ge.f32.partialorder %v3937_v15, 0.0 }
0x1127   : > { %v3864_v30 = vpop.f32.mrf.mxu0 }
0x1128   : > { %v3907_v36 = vmul.f32 %v3892_v29, %v3864_v30  ;;  %v3939_v55 = vadd.f32 %v3925_v44, %v3906_v57  ;;  %v3954_v27 = vmul.f32 0.01, %v3938_v53  ;;  %vm3946_vm9 = vcmp.ge.f32.partialorder %v3938_v53, 0.0  ;;  %v4148_v57 = vpop.permute.xlu0 %4147 }
0x1129   : > { %v3868_v3 = vpop.f32.mrf.mxu0  ;;  %v3961_v49 = vsel %vm3945_vm10, %v3937_v15, %v3953_v54  ;;  %v4232_v54 = vld [vmem:[#allocation7 + $0x170] sm:$0xff] }
0x112a   : > { %v3908_v34 = vmul.f32 %v3897_v20, %v3868_v3  ;;  %v3940_v6 = vadd.f32 %v3925_v44, %v3907_v36  ;;  %v3955_v10 = vmul.f32 0.01, %v3939_v55  ;;  %vm3947_vm8 = vcmp.ge.f32.partialorder %v3939_v55, 0.0 }
0x112b   : > { %v3870_v31 = vpop.f32.mrf.mxu0  ;;  %v3962_v51 = vsel %vm3946_vm9, %v3938_v53, %v3954_v27  ;;  %v4231_v27 = vld [vmem:[#allocation7 + $0x168] sm:$0xff] }
0x112c   : > { %v3909_v33 = vmul.f32 %v3897_v20, %v3870_v31  ;;  %v3941_v7 = vadd.f32 %v3930_v5, %v3908_v34  ;;  %v3956_v2 = vmul.f32 0.01, %v3940_v6  ;;  %vm3948_vm7 = vcmp.ge.f32.partialorder %v3940_v6, 0.0  ;;  %v4158_v20 = vpop.permute.xlu1 %4157 }
0x112d   : > { %v3874_v35 = vpop.f32.mrf.mxu0  ;;  %v3963_v61 = vsel %vm3947_vm8, %v3939_v55, %v3955_v10 }
0x112e   : > { %v3910_v37 = vmul.f32 %v3902_v8, %v3874_v35  ;;  %v3942_v41 = vadd.f32 %v3930_v5, %v3909_v33  ;;  %v3957_v26 = vmul.f32 0.01, %v3941_v7  ;;  %vm3949_vm6 = vcmp.ge.f32.partialorder %v3941_v7, 0.0 }
0x112f   : > { %v3876_v40 = vpop.f32.mrf.mxu0  ;;  %v3964_v58 = vsel %vm3948_vm7, %v3940_v6, %v3956_v2 }
0x1130   : > { %v3943_v42 = vadd.f32 %v3935_v25, %v3910_v37  ;;  %v3911_v43 = vmul.f32 %v3902_v8, %v3876_v40  ;;  %v3958_v0 = vmul.f32 0.01, %v3942_v41  ;;  %vm3950_vm5 = vcmp.ge.f32.partialorder %v3942_v41, 0.0  ;;  %v4153_v36 = vpop.permute.xlu1 %4152 }
0x1131   : > { %v3965_v9 = vsel %vm3949_vm6, %v3941_v7, %v3957_v26 }
0x1132   : > { %v3944_v56 = vadd.f32 %v3935_v25, %v3911_v43  ;;  %v3959_v59 = vmul.f32 0.01, %v3943_v42  ;;  %vm3951_vm4 = vcmp.ge.f32.partialorder %v3943_v42, 0.0  ;;  %v3966_v50 = vsel %vm3950_vm5, %v3942_v41, %v3958_v0 }
0x1134   : > { %vm3952_vm3 = vcmp.ge.f32.partialorder %v3944_v56, 0.0  ;;  %v3960_v60 = vmul.f32 0.01, %v3944_v56  ;;  %v3967_v48 = vsel %vm3951_vm4, %v3943_v42, %v3959_v59 }
0x1136   : > { %v3968_v46 = vsel %vm3952_vm3, %v3944_v56, %v3960_v60 }
0x1137   : > { %4034 = vmatprep.subr.mxu1 %v3968_v46 }
0x1138   : > { %4035 = vmatpush1.msra.mxu1 %v3967_v48 }
0x1139   : > { %4036 = vmatprep.subr.mxu1 %v3966_v50  ;;  %v4230_v50 = vld [vmem:[#allocation7 + $0x160] sm:$0xff] }
0x113a   : > { %4037 = vmatpush1.msra.mxu1 %v3965_v9  ;;  %v4233_v9 = vld [vmem:[#allocation7 + $0x178] sm:$0xff] }
0x113b   : > { %4038 = vmatprep.subr.mxu1 %v3964_v58  ;;  %v4353_v58 = vpop.permute.xlu0 %4352 }
0x113c   : > { %4039 = vmatpush1.msra.mxu1 %v3963_v61  ;;  %v4358_v61 = vpop.permute.xlu1 %4357 }
0x113d   : > { %4040 = vmatprep.subr.mxu1 %v3962_v51 }
0x113e   : > { %4041 = vmatpush1.msra.mxu1 %v3961_v49 }
0x113f   : > { %4042 = vmatprep.subr.mxu1 %v5544_v38  ;;  %v4348_v51 = vpop.permute.xlu0 %4347 }
0x1140   : > { %4043 = vmatpush1.msra.mxu1 %v5544_v38  ;;  %v4391_v49 = vpop.permute.xlu1 %4390 }
0x1141   : > { %4044 = vmatprep.subr.mxu1 %v5544_v38 }
0x1142   : > { %4045 = vmatpush1.msra.mxu1 %v5544_v38 }
0x1143   : > { %4046 = vmatprep.subr.mxu1 %v5544_v38 }
0x1144   : > { %4047 = vmatpush1.msra.mxu1 %v5544_v38 }
0x1145   : > { %4048 = vmatprep.subr.mxu1 %v5544_v38 }
0x1146   : > { %4049 = vmatpush1.msra.mxu1 %v5544_v38 }
0x1147   : > { %5139 = vmatmul.mubr.msk.f32.vlgmr.msra.gmra.mxu1 %vm902_vm12, %v4002_v62  ;;  %v4343_v62 = vpop.permute.xlu0 %4342 }
0x1148   : > { %4088 = vmatprep.mubr.f32.mxu1 %v5544_v38 }
0x114b   : > { %5140 = vmatmul.mubr.msk.f32.gmra.mxu1 %vm902_vm12, %v4003_v52  ;;  %v4386_v52 = vpop.permute.xlu1 %4385 }
0x114c   : > { %4094 = vmatprep.mubr.f32.mxu1 %v5544_v38 }
0x114f   : > { %5141 = vmatmul.mubr.msk.f32.gmra.mxu1 %vm902_vm12, %v4004_v1 }
0x1150   : > { %4100 = vmatprep.mubr.f32.mxu1 %v5544_v38 }
0x1153   : > { %5142 = vmatmul.mubr.msk.f32.gmra.mxu1 %vm902_vm12, %v4005_v4 }
0x1154   : > { %4719 = vmatprep.mubr.f32.mxu1 %v5544_v38 }
0x1207   : > { %v4084_v11 = vpop.f32.mrf.mxu1 }
0x1208   : > { %v4132_v37 = vmul.f32 %v4115_v19, %v4084_v11 }
0x1209   : > { %v4086_v14 = vpop.f32.mrf.mxu1 }
0x120a   : > { %v4133_v5 = vmul.f32 %v4115_v19, %v4086_v14  ;;  %v4165_v47 = vadd.f32 %v4148_v57, %v4132_v37 }
0x120b   : > { %v4090_v17 = vpop.f32.mrf.mxu1 }
0x120c   : > { %v4134_v31 = vmul.f32 %v4120_v63, %v4090_v17  ;;  %v4166_v42 = vadd.f32 %v4148_v57, %v4133_v5  ;;  %v4181_v15 = vmul.f32 0.01, %v4165_v47  ;;  %vm4173_vm6 = vcmp.ge.f32.partialorder %v4165_v47, 0.0 }
0x120d   : > { %v4092_v18 = vpop.f32.mrf.mxu1 }
0x120e   : > { %v4135_v30 = vmul.f32 %v4120_v63, %v4092_v18  ;;  %v4167_v43 = vadd.f32 %v4153_v36, %v4134_v31  ;;  %v4182_v0 = vmul.f32 0.01, %v4166_v42  ;;  %vm4174_vm5 = vcmp.ge.f32.partialorder %v4166_v42, 0.0 }
0x120f   : > { %v4096_v8 = vpop.f32.mrf.mxu1  ;;  %v4189_v48 = vsel %vm4173_vm6, %v4165_v47, %v4181_v15 }
0x1210   : > { %v4136_v28 = vmul.f32 %v4125_v13, %v4096_v8  ;;  %v4168_v40 = vadd.f32 %v4153_v36, %v4135_v30  ;;  %v4183_v55 = vmul.f32 0.01, %v4167_v43  ;;  %vm4175_vm4 = vcmp.ge.f32.partialorder %v4167_v43, 0.0  ;;  %v4381_v8 = vpop.permute.xlu1 %4380 }
0x1211   : > { %v4098_v23 = vpop.f32.mrf.mxu1  ;;  %v4190_v10 = vsel %vm4174_vm5, %v4166_v42, %v4182_v0 }
0x1212   : > { %v4137_v25 = vmul.f32 %v4125_v13, %v4098_v23  ;;  %v4169_v39 = vadd.f32 %v4158_v20, %v4136_v28  ;;  %v4184_v53 = vmul.f32 0.01, %v4168_v40  ;;  %vm4176_vm3 = vcmp.ge.f32.partialorder %v4168_v40, 0.0 }
0x1213   : > { %v4102_v29 = vpop.f32.mrf.mxu1  ;;  %v4191_v2 = vsel %vm4175_vm4, %v4167_v43, %v4183_v55 }
0x1214   : > { %v4138_v3 = vmul.f32 %v4130_v12, %v4102_v29  ;;  %v4170_v33 = vadd.f32 %v4158_v20, %v4137_v25  ;;  %v4185_v6 = vmul.f32 0.01, %v4169_v39  ;;  %vm4177_vm2 = vcmp.ge.f32.partialorder %v4169_v39, 0.0  ;;  %v5345_v0 = vpop.permute.xlu1 %5344 }
0x1215   : > { %v4104_v32 = vpop.f32.mrf.mxu1  ;;  %v4192_v46 = vsel %vm4176_vm3, %v4168_v40, %v4184_v53  ;;  %vm4854_vm3 = vcmp.lt.s32.totalorder %v377_v21, 1 }
0x1216   : > { %v4171_v34 = vadd.f32 %v4163_v16, %v4138_v3  ;;  %v4139_v35 = vmul.f32 %v4130_v12, %v4104_v32  ;;  %v4186_v7 = vmul.f32 0.01, %v4170_v33  ;;  %vm4178_vm15 = vcmp.ge.f32.partialorder %v4170_v33, 0.0  ;;  %v4376_v12 = vpop.permute.xlu0 %4375 }
0x1217   : > { %v4193_v26 = vsel %vm4177_vm2, %v4169_v39, %v4185_v6 }
0x1218   : > { %v4172_v41 = vadd.f32 %v4163_v16, %v4139_v35  ;;  %v4187_v44 = vmul.f32 0.01, %v4171_v34  ;;  %vm4179_vm14 = vcmp.ge.f32.partialorder %v4171_v34, 0.0  ;;  %v4194_v60 = vsel %vm4178_vm15, %v4170_v33, %v4186_v7 }
0x121a   : > { %vm4180_vm13 = vcmp.ge.f32.partialorder %v4172_v41, 0.0  ;;  %v4188_v45 = vmul.f32 0.01, %v4172_v41  ;;  %v4195_v59 = vsel %vm4179_vm14, %v4171_v34, %v4187_v44  ;;  %v5350_v15 = vpop.permute.xlu0 %5349 }
0x121c   : > { %v4196_v56 = vsel %vm4180_vm13, %v4172_v41, %v4188_v45 }
0x121d   : > { %4262 = vmatprep.subr.mxu0 %v4196_v56 }
0x121e   : > { %4263 = vmatpush1.msra.mxu0 %v4195_v59 }
0x121f   : > { %4264 = vmatprep.subr.mxu0 %v4194_v60  ;;  %v6799_v60 = vld [vmem:[#allocation3] sm:$0x1] }
0x1220   : > { %4265 = vmatpush1.msra.mxu0 %v4193_v26  ;;  %4856 = vst.msk [vmem:[%s6801_s9] sm:$0x1] %vm4854_vm3, %v6799_v60 }
0x1221   : > { %4266 = vmatprep.subr.mxu0 %v4192_v46 }
0x1222   : > { %4267 = vmatpush1.msra.mxu0 %v4191_v2 }
0x1223   : > { %4268 = vmatprep.subr.mxu0 %v4190_v10 }
0x1224   : > { %4269 = vmatpush1.msra.mxu0 %v4189_v48 }
0x1225   : > { %4270 = vmatprep.subr.mxu0 %v5544_v38 }
0x1226   : > { %4271 = vmatpush1.msra.mxu0 %v5544_v38 }
0x1227   : > { %4272 = vmatprep.subr.mxu0 %v5544_v38 }
0x1228   : > { %4273 = vmatpush1.msra.mxu0 %v5544_v38 }
0x1229   : > { %4274 = vmatprep.subr.mxu0 %v5544_v38 }
0x122a   : > { %4275 = vmatpush1.msra.mxu0 %v5544_v38 }
0x122b   : > { %4276 = vmatprep.subr.mxu0 %v5544_v38 }
0x122c   : > { %4277 = vmatpush1.msra.mxu0 %v5544_v38 }
0x122d   : > { %5143 = vmatmul.mubr.msk.f32.vlgmr.msra.gmra.mxu0 %vm902_vm12, %v4230_v50 }
0x122e   : > { %4316 = vmatprep.mubr.f32.mxu0 %v5544_v38 }
0x1231   : > { %5144 = vmatmul.mubr.msk.f32.gmra.mxu0 %vm902_vm12, %v4231_v27 }
0x1232   : > { %4322 = vmatprep.mubr.f32.mxu0 %v5544_v38 }
0x1235   : > { %5145 = vmatmul.mubr.msk.f32.gmra.mxu0 %vm902_vm12, %v4232_v54 }
0x1236   : > { %4328 = vmatprep.mubr.f32.mxu0 %v5544_v38 }
0x1239   : > { %5146 = vmatmul.mubr.msk.f32.gmra.mxu0 %vm902_vm12, %v4233_v9 }
0x123a   : > { %4933 = vmatprep.mubr.f32.mxu0 %v5544_v38 }
0x12ed   : > { %v4312_v1 = vpop.f32.mrf.mxu0 }
0x12ee   : > { %v4360_v4 = vmul.f32 %v4343_v62, %v4312_v1 }
0x12ef   : > { %v4314_v13 = vpop.f32.mrf.mxu0 }
0x12f0   : > { %v4393_v11 = vadd.f32 %v4376_v12, %v4360_v4  ;;  %v4361_v14 = vmul.f32 %v4343_v62, %v4314_v13  ;;  %v5352_v13 = vunpack.i.h.bf16 %v5350_v15 }
0x12f1   : > { %v4318_v16 = vpop.f32.mrf.mxu0 }
0x12f2   : > { %v4409_v17 = vmul.f32 0.01, %v4393_v11  ;;  %v4394_v63 = vadd.f32 %v4376_v12, %v4361_v14  ;;  %v4362_v18 = vmul.f32 %v4348_v51, %v4318_v16  ;;  %vm4401_vm7 = vcmp.ge.f32.partialorder %v4393_v11, 0.0 }
0x12f3   : > { %v4320_v20 = vpop.f32.mrf.mxu0  ;;  %v5351_v14 = vunpack.i.l.bf16 %v5350_v15 }
0x12f4   : > { %v4410_v23 = vmul.f32 0.01, %v4394_v63  ;;  %v4395_v19 = vadd.f32 %v4381_v8, %v4362_v18  ;;  %v4363_v25 = vmul.f32 %v4348_v51, %v4320_v20  ;;  %v6747_v28 = vsel %vm4401_vm7, %v4393_v11, %v4409_v17 }
0x12f5   : > { %4481 = vrot.lane.b32.xlu1 %v6747_v28, %s5545_s15  ;;  %v4324_v29 = vpop.f32.mrf.mxu0  ;;  %vm4402_vm8 = vcmp.ge.f32.partialorder %v4394_v63, 0.0  ;;  %v5347_v20 = vunpack.i.h.bf16 %v5345_v0 }
0x12f6   : > { %v4411_v30 = vmul.f32 0.01, %v4395_v19  ;;  %v4396_v3 = vadd.f32 %v4381_v8, %v4363_v25  ;;  %v4364_v5 = vmul.f32 %v4353_v58, %v4324_v29  ;;  %v6751_v31 = vsel %vm4402_vm8, %v4394_v63, %v4410_v23 }
0x12f7   : > { %4483 = vrot.lane.b32.xlu0 %v6751_v31, %s5545_s15  ;;  %v4326_v32 = vpop.f32.mrf.mxu0  ;;  %vm4403_vm9 = vcmp.ge.f32.partialorder %v4395_v19, 0.0 }
0x12f8   : > { %v4412_v33 = vmul.f32 0.01, %v4396_v3  ;;  %v4397_v34 = vadd.f32 %v4386_v52, %v4364_v5  ;;  %v4365_v35 = vmul.f32 %v4353_v58, %v4326_v32  ;;  %v6755_v37 = vsel %vm4403_vm9, %v4395_v19, %v4411_v30  ;;  %v4781_v5 = vld [vmem:[#allocation10 + $0x1b8] sm:$0xff]  ;;  %v4780_v32 = vld [vmem:[#allocation10 + $0x1b0] sm:$0xff] }
0x12f9   : > { %v4330_v36 = vpop.f32.mrf.mxu0  ;;  %vm4404_vm10 = vcmp.ge.f32.partialorder %v4396_v3, 0.0  ;;  %v5346_v19 = vunpack.i.l.bf16 %v5345_v0 }
0x12fa   : > { %v4413_v39 = vmul.f32 0.01, %v4397_v34  ;;  %v4398_v57 = vadd.f32 %v4386_v52, %v4365_v35  ;;  %v4366_v40 = vmul.f32 %v4358_v61, %v4330_v36  ;;  %v6757_v41 = vsel %vm4404_vm10, %v4396_v3, %v4412_v33  ;;  %v4748_v3 = vld [vmem:[#allocation9 + $0x1b8] sm:$0xff]  ;;  %v4747_v33 = vld [vmem:[#allocation9 + $0x1b0] sm:$0xff]  ;;  %v4745_v35 = vld [vmem:[#allocation9 + $0x1a0] sm:$0xff] }
0x12fb   : > { %4487 = vrot.lane.b32.xlu0 %v6755_v37, %s5545_s15  ;;  %4489 = vrot.lane.b32.xlu1 %v6757_v41, %s5545_s15  ;;  %v4332_v42 = vpop.f32.mrf.mxu0  ;;  %vm4405_vm13 = vcmp.ge.f32.partialorder %v4397_v34, 0.0  ;;  %v4778_v36 = vld [vmem:[#allocation10 + $0x1a0] sm:$0xff]  ;;  %vm4963_vm10 = vcmp.lt.s32.totalorder %v377_v21, 257 }
0x12fc   : > { %v4367_v43 = vmul.f32 %v4358_v61, %v4332_v42  ;;  %v4414_v44 = vmul.f32 0.01, %v4398_v57  ;;  %v4399_v45 = vadd.f32 %v4391_v49, %v4366_v40  ;;  %v6763_v47 = vsel %vm4405_vm13, %v4397_v34, %v4413_v39  ;;  %v4779_v34 = vld [vmem:[#allocation10 + $0x1a8] sm:$0xff] }
0x12fd   : > { %vm4406_vm14 = vcmp.ge.f32.partialorder %v4398_v57, 0.0  ;;  %vm4969_vm13 = vcmp.lt.s32.totalorder %v377_v21, 2 }
0x12fe   : > { %v4400_v7 = vadd.f32 %v4391_v49, %v4367_v43  ;;  %v4415_v56 = vmul.f32 0.01, %v4399_v45  ;;  %v6769_v53 = vsel %vm4406_vm14, %v4398_v57, %v4414_v44  ;;  %vm4407_vm2 = vcmp.ge.f32.partialorder %v4399_v45, 0.0 }
0x12ff   : > { %4465 = vrot.lane.b32.xlu1 %v6763_v47, %s5543_s10  ;;  %4493 = vrot.lane.b32.xlu0 %v6763_v47, %s5545_s15 }
0x1300   : > { %v4416_v6 = vmul.f32 0.01, %v4400_v7  ;;  %vm4408_vm15 = vcmp.ge.f32.partialorder %v4400_v7, 0.0  ;;  %v6777_v59 = vsel %vm4407_vm2, %v4399_v45, %v4415_v56 }
0x1302   : > { %v6771_v55 = vsel %vm4408_vm15, %v4400_v7, %v4416_v6 }
0x1303   : > { %4495 = vrot.lane.b32.xlu1 %v6769_v53, %s5545_s15  ;;  %4501 = vrot.lane.b32.xlu0 %v6771_v55, %s5545_s15 }
0x1307   : > { %4499 = vrot.lane.b32.xlu1 %v6777_v59, %s5545_s15  ;;  %4467 = vrot.lane.b32.xlu0 %v6769_v53, %s5543_s10  ;;  %s5556_s15 = smov 1  }
0x130b   : > { %4469 = vrot.lane.b32.xlu1 %v6777_v59, %s5543_s10  ;;  %4471 = vrot.lane.b32.xlu0 %v6771_v55, %s5543_s10 }
0x130f   : > { %4461 = vrot.lane.b32.xlu1 %v6755_v37, %s5543_s10  ;;  %4463 = vrot.lane.b32.xlu0 %v6757_v41, %s5543_s10 }
0x1313   : > { %4457 = vrot.lane.b32.xlu1 %v6747_v28, %s5543_s10  ;;  %4459 = vrot.lane.b32.xlu0 %v6751_v31, %s5543_s10 }
0x1367   : > { %v4482_v26 = vpop.permute.xlu1 %4481 }
0x1368   : > { %4570 = vrot.lane.b32.xlu0 %v4482_v26, %s5556_s15 }
0x1369   : > { %v4484_v46 = vpop.permute.xlu0 %4483 }
0x136a   : > { %v4505_v2 = vsel %vm571_vm1, %v4482_v26, %v4484_v46  ;;  %v4506_v11 = vsel %vm571_vm1, %v4484_v46, %v5352_v13 }
0x136c   : > { %4572 = vrot.lane.b32.xlu0 %v4505_v2, %s5556_s15 }
0x136d   : > { %v4488_v10 = vpop.permute.xlu0 %4487  ;;  %v4490_v48 = vpop.permute.xlu1 %4489 }
0x136e   : > { %v4508_v16 = vsel %vm571_vm1, %v4490_v48, %v5351_v14  ;;  %v4507_v17 = vsel %vm571_vm1, %v4488_v10, %v4490_v48 }
0x1371   : > { %v4466_v50 = vpop.permute.xlu1 %4465  ;;  %v4494_v27 = vpop.permute.xlu0 %4493 }
0x1375   : > { %v4496_v54 = vpop.permute.xlu1 %4495  ;;  %v4502_v9 = vpop.permute.xlu0 %4501 }
0x1376   : > { %v4509_v18 = vsel %vm571_vm1, %v4494_v27, %v4496_v54  ;;  %v4510_v23 = vsel %vm571_vm1, %v4496_v54, %v5347_v20  ;;  %v4512_v25 = vsel %vm571_vm1, %v4502_v9, %v5346_v19 }
0x1379   : > { %v4500_v58 = vpop.permute.xlu1 %4499  ;;  %v4468_v61 = vpop.permute.xlu0 %4467 }
0x137a   : > { %v4475_v8 = vsel %vm473_vm0, %v4466_v50, %v4468_v61  ;;  %v4511_v29 = vsel %vm571_vm1, %v4500_v58, %v4502_v9 }
0x137d   : > { %v4470_v51 = vpop.permute.xlu1 %4469  ;;  %v4472_v49 = vpop.permute.xlu0 %4471 }
0x137e   : > { %v4476_v30 = vsel %vm473_vm0, %v4470_v51, %v4472_v49 }
0x1381   : > { %v4462_v62 = vpop.permute.xlu1 %4461  ;;  %v4464_v52 = vpop.permute.xlu0 %4463 }
0x1382   : > { %v4474_v63 = vsel %vm473_vm0, %v4462_v62, %v4464_v52 }
0x1385   : > { %v4458_v1 = vpop.permute.xlu1 %4457  ;;  %v4460_v4 = vpop.permute.xlu0 %4459 }
0x1386   : > { %v4473_v12 = vsel %vm473_vm0, %v4458_v1, %v4460_v4  ;;  %4550 = vrot.lane.b32.xlu1 %v4460_v4, %s5556_s15  ;;  %vm4594_vm0 = vcmask 7168  }
0x1387   : > { %4548 = vrot.lane.b32.xlu0 %v4473_v12, %s5556_s15 }
0x138a   : > { %4574 = vrot.lane.b32.xlu1 %v4506_v11, %s5556_s15 }
0x138b   : > { %4556 = vrot.lane.b32.xlu0 %v4464_v52, %s5556_s15 }
0x138e   : > { %4576 = vrot.lane.b32.xlu1 %v4488_v10, %s5556_s15 }
0x138f   : > { %4580 = vrot.lane.b32.xlu0 %v4508_v16, %s5556_s15 }
0x1392   : > { %4552 = vrot.lane.b32.xlu1 %v4462_v62, %s5556_s15 }
0x1393   : > { %4582 = vrot.lane.b32.xlu0 %v4494_v27, %s5556_s15 }
0x1396   : > { %4578 = vrot.lane.b32.xlu1 %v4507_v17, %s5556_s15 }
0x1397   : > { %4558 = vrot.lane.b32.xlu0 %v4466_v50, %s5556_s15 }
0x139a   : > { %4554 = vrot.lane.b32.xlu1 %v4474_v63, %s5556_s15 }
0x139b   : > { %4584 = vrot.lane.b32.xlu0 %v4509_v18, %s5556_s15 }
0x139e   : > { %4562 = vrot.lane.b32.xlu1 %v4468_v61, %s5556_s15 }
0x139f   : > { %4560 = vrot.lane.b32.xlu0 %v4475_v8, %s5556_s15 }
0x13a2   : > { %4586 = vrot.lane.b32.xlu1 %v4510_v23, %s5556_s15 }
0x13a3   : > { %4568 = vrot.lane.b32.xlu0 %v4472_v49, %s5556_s15 }
0x13a6   : > { %4588 = vrot.lane.b32.xlu1 %v4500_v58, %s5556_s15 }
0x13a7   : > { %4592 = vrot.lane.b32.xlu0 %v4512_v25, %s5556_s15 }
0x13aa   : > { %4564 = vrot.lane.b32.xlu1 %v4470_v51, %s5556_s15 }
0x13ab   : > { %4546 = vrot.lane.b32.xlu0 %v4458_v1, %s5556_s15 }
0x13ae   : > { %4590 = vrot.lane.b32.xlu1 %v4511_v29, %s5556_s15 }
0x13af   : > { %4544 = vrot.lane.b32.xlu0 %v6771_v55, %s5556_s15 }
0x13b2   : > { %4542 = vrot.lane.b32.xlu1 %v6777_v59, %s5556_s15 }
0x13b3   : > { %4536 = vrot.lane.b32.xlu0 %v6763_v47, %s5556_s15 }
0x13b6   : > { %5354 = vrot.lane.b32.xlu1 %v5544_v38, %s5556_s15 }
0x13b7   : > { %4530 = vrot.lane.b32.xlu0 %v6755_v37, %s5556_s15 }
0x13ba   : > { %4566 = vrot.lane.b32.xlu1 %v4476_v30, %s5556_s15 }
0x13bb   : > { %4528 = vrot.lane.b32.xlu0 %v5544_v38, %s5556_s15 }
0x13be   : > { %4538 = vrot.lane.b32.xlu1 %v6769_v53, %s5556_s15 }
0x13bf   : > { %4526 = vrot.lane.b32.xlu0 %v6751_v31, %s5556_s15  ;;  %v4746_v31 = vld [vmem:[#allocation9 + $0x1a8] sm:$0xff] }
0x13c2   : > { %4532 = vrot.lane.b32.xlu1 %v6757_v41, %s5556_s15 }
0x13c3   : > { %4766 = vperm.xlu0 %5256, %v4748_v3  }
0x13c6   : > { %4524 = vrot.lane.b32.xlu1 %v6747_v28, %s5556_s15 }
0x13c7   : > { %4799 = vperm.xlu0 %5256, %v4781_v5  }
0x13ca   : > { %4522 = vrot.lane.b32.xlu1 %v5544_v38, %s5556_s15 }
0x13cb   : > { %4794 = vperm.xlu0 %5256, %v4780_v32  }
0x13ce   : > { %4761 = vperm.xlu1 %5257, %v4747_v33  }
0x13cf   : > { %4789 = vperm.xlu0 %5256, %v4779_v34  }
0x13d2   : > { %4756 = vperm.xlu1 %5257, %v4746_v31  }
0x13d3   : > { %4859 = vperm.xlu0 %5256, %v6799_v60  }
0x13d6   : > { %4751 = vperm.xlu1 %5257, %v4745_v35  }
0x13d7   : > { %4966 = vrot.lane.b32.xlu0 %v6799_v60, %s5556_s15 }
0x13da   : > { %4784 = vperm.xlu1 %5257, %v4778_v36   ;;  %v4571_v28 = vpop.permute.xlu0 %4570 }
0x13de   : > { %v4573_v37 = vpop.permute.xlu0 %4572 }
0x13df   : > { %v4611_v49 = vsel %vm4594_vm0, %v4571_v28, %v4573_v37  ;;  %v4514_v28 = vld [vmem:[#allocation7 + $0x180] sm:$0xff] }
0x13f8   : > { %v4551_v39 = vpop.permute.xlu1 %4550 }
0x13f9   : > { %v4549_v57 = vpop.permute.xlu0 %4548 }
0x13fa   : > { %v4604_v8 = vsel %vm4594_vm0, %v4549_v57, %v4551_v39  ;;  %v4515_v39 = vld [vmem:[#allocation7 + $0x188] sm:$0xff] }
0x13fc   : > { %v4575_v40 = vpop.permute.xlu1 %4574 }
0x13fd   : > { %v4557_v41 = vpop.permute.xlu0 %4556  ;;  %v4612_v51 = vsel %vm4594_vm0, %v4573_v37, %v4575_v40  ;;  %v4517_v40 = vld [vmem:[#allocation7 + $0x198] sm:$0xff] }
0x1400   : > { %v4577_v42 = vpop.permute.xlu1 %4576 }
0x1401   : > { %v4581_v43 = vpop.permute.xlu0 %4580 }
0x1404   : > { %v4553_v44 = vpop.permute.xlu1 %4552 }
0x1405   : > { %v4583_v45 = vpop.permute.xlu0 %4582 }
0x1408   : > { %v4579_v7 = vpop.permute.xlu1 %4578 }
0x1409   : > { %v4559_v47 = vpop.permute.xlu0 %4558  ;;  %v4614_v58 = vsel %vm4594_vm0, %v4579_v7, %v4581_v43  ;;  %v4613_v61 = vsel %vm4594_vm0, %v4577_v42, %v4579_v7 }
0x140c   : > { %v4555_v6 = vpop.permute.xlu1 %4554 }
0x140d   : > { %v4585_v56 = vpop.permute.xlu0 %4584  ;;  %v4606_v17 = vsel %vm4594_vm0, %v4555_v6, %v4557_v41  ;;  %v4605_v63 = vsel %vm4594_vm0, %v4553_v44, %v4555_v6 }
0x140e   : > { %v4615_v54 = vsel %vm4594_vm0, %v4583_v45, %v4585_v56 }
0x1410   : > { %v4563_v53 = vpop.permute.xlu1 %4562 }
0x1411   : > { %v4561_v55 = vpop.permute.xlu0 %4560 }
0x1412   : > { %v4608_v11 = vsel %vm4594_vm0, %v4561_v55, %v4563_v53  ;;  %v4607_v14 = vsel %vm4594_vm0, %v4559_v47, %v4561_v55 }
0x1414   : > { %v4587_v59 = vpop.permute.xlu1 %4586 }
0x1415   : > { %v4569_v0 = vpop.permute.xlu0 %4568  ;;  %v4616_v27 = vsel %vm4594_vm0, %v4585_v56, %v4587_v59 }
0x1418   : > { %v4589_v60 = vpop.permute.xlu1 %4588 }
0x1419   : > { %v4593_v15 = vpop.permute.xlu0 %4592 }
0x141c   : > { %v4565_v26 = vpop.permute.xlu1 %4564 }
0x141d   : > { %v4547_v46 = vpop.permute.xlu0 %4546 }
0x141e   : > { %v4603_v20 = vsel %vm4594_vm0, %v4547_v46, %v4549_v57  ;;  %v4516_v57 = vld [vmem:[#allocation7 + $0x190] sm:$0xff] }
0x1420   : > { %v4591_v2 = vpop.permute.xlu1 %4590 }
0x1421   : > { %v4617_v10 = vsel %vm4594_vm0, %v4589_v60, %v4591_v2  ;;  %v4618_v48 = vsel %vm4594_vm0, %v4591_v2, %v4593_v15  ;;  %v4545_v50 = vpop.permute.xlu0 %4544 }
0x1422   : > { %4663 = vmatprep.subr.mxu1 %v4618_v48 }
0x1423   : > { %4664 = vmatpush1.msra.mxu1 %v4617_v10 }
0x1424   : > { %v4543_v9 = vpop.permute.xlu1 %4542  ;;  %4665 = vmatprep.subr.mxu1 %v4616_v27 }
0x1425   : > { %4666 = vmatpush1.msra.mxu1 %v4615_v54  ;;  %v4537_v62 = vpop.permute.xlu0 %4536  ;;  %v4602_v29 = vsel %vm4594_vm0, %v4543_v9, %v4545_v50 }
0x1426   : > { %4667 = vmatprep.subr.mxu1 %v4614_v58 }
0x1427   : > { %4668 = vmatpush1.msra.mxu1 %v4613_v61 }
0x1428   : > { %v5355_v52 = vpop.permute.xlu1 %5354  ;;  %4669 = vmatprep.subr.mxu1 %v4612_v51 }
0x1429   : > { %4670 = vmatpush1.msra.mxu1 %v4611_v49  ;;  %v4531_v13 = vpop.permute.xlu0 %4530  ;;  %v5356_v18 = vunpack.i.l.bf16 %v5355_v52  ;;  %v5357_v23 = vunpack.i.h.bf16 %v5355_v52 }
0x142b   : > { %v4601_v30 = vsel %vm4594_vm0, %v5356_v18, %v4543_v9  ;;  %v4599_v32 = vsel %vm4594_vm0, %v5357_v23, %v4537_v62 }
0x142c   : > { %v4567_v1 = vpop.permute.xlu1 %4566 }
0x142d   : > { %v4609_v4 = vsel %vm4594_vm0, %v4565_v26, %v4567_v1  ;;  %v4610_v12 = vsel %vm4594_vm0, %v4567_v1, %v4569_v0  ;;  %v4529_v19 = vpop.permute.xlu0 %4528 }
0x142e   : > { %4671 = vmatprep.subr.mxu1 %v4610_v12  ;;  %v4597_v34 = vsel %vm4594_vm0, %v4529_v19, %v4531_v13 }
0x142f   : > { %4672 = vmatpush1.msra.mxu1 %v4609_v4 }
0x1430   : > { %v4539_v16 = vpop.permute.xlu1 %4538  ;;  %4673 = vmatprep.subr.mxu1 %v4608_v11 }
0x1431   : > { %4674 = vmatpush1.msra.mxu1 %v4607_v14  ;;  %v4600_v3 = vsel %vm4594_vm0, %v4537_v62, %v4539_v16  ;;  %v4527_v31 = vpop.permute.xlu0 %4526 }
0x1432   : > { %4675 = vmatprep.subr.mxu1 %v4606_v17 }
0x1433   : > { %4676 = vmatpush1.msra.mxu1 %v4605_v63 }
0x1434   : > { %v4533_v25 = vpop.permute.xlu1 %4532  ;;  %4677 = vmatprep.subr.mxu1 %v4604_v8 }
0x1435   : > { %4678 = vmatpush1.msra.mxu1 %v4603_v20  ;;  %v4598_v33 = vsel %vm4594_vm0, %v4531_v13, %v4533_v25 }
0x1436   : > { %4679 = vmatprep.subr.mxu1 %v4602_v29 }
0x1437   : > { %4680 = vmatpush1.msra.mxu1 %v4601_v30  ;;  %v4850_v30 = vld [vmem:[%s6958_s5] sm:$0x1] }
0x1438   : > { %v4525_v5 = vpop.permute.xlu1 %4524  ;;  %4681 = vmatprep.subr.mxu1 %v4600_v3 }
0x1439   : > { %4682 = vmatpush1.msra.mxu1 %v4599_v32  ;;  %v4596_v35 = vsel %vm4594_vm0, %v4525_v5, %v4527_v31 }
0x143a   : > { %4683 = vmatprep.subr.mxu1 %v4598_v33 }
0x143b   : > { %4684 = vmatpush1.msra.mxu1 %v4597_v34 }
0x143c   : > { %v4523_v36 = vpop.permute.xlu1 %4522  ;;  %4685 = vmatprep.subr.mxu1 %v4596_v35 }
0x143d   : > { %v4595_v37 = vsel %vm4594_vm0, %v4523_v36, %v4525_v5  ;;  %v5557_v5 = vmov 1966171168  }
0x143e   : > { %4686 = vmatpush1.msra.mxu1 %v4595_v37  ;;  %v4767_v41 = vpop.permute.xlu0 %4766  ;;  %v4944_v32 = vunpack.c.l.s4 %v5557_v5 }
0x143f   : > { %5147 = vmatmul.mubr.msk.f32.vlgmr.msra.gmra.mxu1 %vm902_vm12, %v4514_v28 }
0x1440   : > { %4725 = vmatprep.mubr.f32.mxu1 %v5544_v38  ;;  %v4945_v34 = vunpack.c.0.s8 %v4944_v32 }
0x1442   : > { %v4800_v45 = vpop.permute.xlu0 %4799 }
0x1443   : > { %5148 = vmatmul.mubr.msk.f32.gmra.mxu1 %vm902_vm12, %v4515_v39  ;;  %v4948_v39 = vsub.s32 %v4945_v34, %v5726_v22 }
0x1444   : > { %4731 = vmatprep.mubr.f32.mxu1 %v5544_v38 }
0x1446   : > { %v4795_v53 = vpop.permute.xlu0 %4794 }
0x1447   : > { %5149 = vmatmul.mubr.msk.f32.gmra.mxu1 %vm902_vm12, %v4516_v57 }
0x1448   : > { %4737 = vmatprep.mubr.f32.mxu1 %v5544_v38 }
0x1449   : > { %v4762_v42 = vpop.permute.xlu1 %4761 }
0x144a   : > { %v4790_v54 = vpop.permute.xlu0 %4789 }
0x144b   : > { %5150 = vmatmul.mubr.msk.f32.gmra.mxu1 %vm902_vm12, %v4517_v40 }
0x144d   : > { %v4757_v47 = vpop.permute.xlu1 %4756 }
0x144e   : > { %v4860_v33 = vpop.permute.xlu0 %4859 }
0x144f   : > { %v4865_v35 = vrot.slane %v4860_v33, %v379_v24 }
0x1451   : > { %v4752_v59 = vpop.permute.xlu1 %4751 }
0x1455   : > { %v4785_v61 = vpop.permute.xlu1 %4784 }
0x14ff   : > { %v4721_v43 = vpop.f32.mrf.mxu1 }
0x1500   : > { %v4769_v9 = vmul.f32 %v4752_v59, %v4721_v43 }
0x1501   : > { %v4723_v44 = vpop.f32.mrf.mxu1 }
0x1502   : > { %v4770_v46 = vmul.f32 %v4752_v59, %v4723_v44  ;;  %v4802_v13 = vadd.f32 %v4785_v61, %v4769_v9 }
0x1503   : > { %v4727_v7 = vpop.f32.mrf.mxu1 }
0x1504   : > { %v4771_v2 = vmul.f32 %v4757_v47, %v4727_v7  ;;  %v4803_v62 = vadd.f32 %v4785_v61, %v4770_v46  ;;  %v4818_v20 = vmul.f32 0.01, %v4802_v13  ;;  %vm4810_vm9 = vcmp.ge.f32.partialorder %v4802_v13, 0.0 }
0x1505   : > { %v4729_v6 = vpop.f32.mrf.mxu1 }
0x1506   : > { %v4772_v26 = vmul.f32 %v4757_v47, %v4729_v6  ;;  %v4804_v52 = vadd.f32 %v4790_v54, %v4771_v2  ;;  %v4819_v8 = vmul.f32 0.01, %v4803_v62  ;;  %vm4811_vm8 = vcmp.ge.f32.partialorder %v4803_v62, 0.0 }
0x1507   : > { %v4733_v56 = vpop.f32.mrf.mxu1  ;;  %v4826_v3 = vsel %vm4810_vm9, %v4802_v13, %v4818_v20 }
0x1508   : > { %v4773_v60 = vmul.f32 %v4762_v42, %v4733_v56  ;;  %v4805_v51 = vadd.f32 %v4790_v54, %v4772_v26  ;;  %v4820_v17 = vmul.f32 0.01, %v4804_v52  ;;  %vm4812_vm7 = vcmp.ge.f32.partialorder %v4804_v52, 0.0 }
0x1509   : > { %v4735_v55 = vpop.f32.mrf.mxu1  ;;  %v4827_v29 = vsel %vm4811_vm8, %v4803_v62, %v4819_v8 }
0x150a   : > { %v4774_v0 = vmul.f32 %v4762_v42, %v4735_v55  ;;  %v4806_v58 = vadd.f32 %v4795_v53, %v4773_v60  ;;  %v4821_v16 = vmul.f32 0.01, %v4805_v51  ;;  %vm4813_vm6 = vcmp.ge.f32.partialorder %v4805_v51, 0.0  ;;  %v4967_v42 = vpop.permute.xlu0 %4966 }
0x150b   : > { %v4739_v15 = vpop.f32.mrf.mxu1  ;;  %v4828_v25 = vsel %vm4812_vm7, %v4804_v52, %v4820_v17 }
0x150c   : > { %v4775_v38 = vmul.f32 %v4767_v41, %v4739_v15  ;;  %v4807_v48 = vadd.f32 %v4795_v53, %v4774_v0  ;;  %v4822_v11 = vmul.f32 0.01, %v4806_v58  ;;  %vm4814_vm5 = vcmp.ge.f32.partialorder %v4806_v58, 0.0 }
0x150d   : > { %v4741_v10 = vpop.f32.mrf.mxu1  ;;  %v4829_v19 = vsel %vm4813_vm6, %v4805_v51, %v4821_v16 }
0x150e   : > { %v4808_v50 = vadd.f32 %v4800_v45, %v4775_v38  ;;  %v4776_v27 = vmul.f32 %v4767_v41, %v4741_v10  ;;  %v4823_v12 = vmul.f32 0.01, %v4807_v48  ;;  %vm4815_vm4 = vcmp.ge.f32.partialorder %v4807_v48, 0.0 }
0x150f   : > { %v4830_v23 = vsel %vm4814_vm5, %v4806_v58, %v4822_v11 }
0x1510   : > { %v4809_v49 = vadd.f32 %v4800_v45, %v4776_v27  ;;  %v4824_v1 = vmul.f32 0.01, %v4808_v50  ;;  %vm4816_vm12 = vcmp.ge.f32.partialorder %v4808_v50, 0.0  ;;  %v4831_v18 = vsel %vm4815_vm4, %v4807_v48, %v4823_v12 }
0x1512   : > { %vm4817_vm1 = vcmp.ge.f32.partialorder %v4809_v49, 0.0  ;;  %v4825_v4 = vmul.f32 0.01, %v4809_v49  ;;  %v4832_v63 = vsel %vm4816_vm12, %v4808_v50, %v4824_v1 }
0x1514   : > { %v4833_v14 = vsel %vm4817_vm1, %v4809_v49, %v4825_v4 }
0x1515   : > { %4893 = vmatprep.subr.mxu0 %v4833_v14 }
0x1516   : > { %4894 = vmatpush1.msra.mxu0 %v4832_v63 }
0x1517   : > { %4895 = vmatprep.subr.mxu0 %v4831_v18 }
0x1518   : > { %4896 = vmatpush1.msra.mxu0 %v4830_v23 }
0x1519   : > { %4897 = vmatprep.subr.mxu0 %v4829_v19 }
0x151a   : > { %4898 = vmatpush1.msra.mxu0 %v4828_v25 }
0x151b   : > { %4899 = vmatprep.subr.mxu0 %v4827_v29 }
0x151c   : > { %4900 = vmatpush1.msra.mxu0 %v4826_v3 }
0x151d   : > { %5151 = vmatmul.mubr.msk.f32.vlgmr.msra.gmra.mxu0 %vm2493_vm11, %v4850_v30  ;;  %vm4962_vm11 = vcmp.ge.s32.totalorder %v377_v21, 1 }
0x151e   : > { %vm4964_vm14 = vmand %vm4962_vm11, %vm4963_vm10 }
0x151f   : > { %vm4970_vm15 = vmand %vm4962_vm11, %vm4969_vm13 }
0x15dd   : > { %v4935_v31 = vpop.f32.mrf.mxu0 }
0x15de   : > { %v4936_v28 = vadd.f32 %v4935_v31, %v4865_v35 }
0x15df   : > { %v4937_v36 = vpop.f32.mrf.mxu0 }
0x15e0   : > { %v4938_v37 = vadd.f32 %v4937_v36, %v4865_v35 }
0x15e2   : > { %v4942_v57 = vcombine.low %v4936_v28, %v4938_v37 }
0x15e4   : > { %v4949_v40 = vrot.slane %v4942_v57, %v4948_v39 }
0x15e6   : > { %v4956_v41 = vrot.slane %v4949_v40, %v4948_v39 }
0x15e8   : > { %4957 = vrot.lane.b32.xlu1 %v4956_v41, %s5556_s15 }
0x165a   : > { %v4958_v24 = vpop.permute.xlu1 %4957 }
0x165b   : > { %v4959_v22 = vrot.slane %v4958_v24, 7 }
0x165d   : > { %v4960_v43 = vsel %vm4594_vm0, %v4959_v22, %v4958_v24 }
0x165e   : > { %4965 = vst.msk [vmem:[%s6801_s9] sm:$0x7] %vm4964_vm14, %v4960_v43 }
0x165f   : > { %4971 = vst.msk [vmem:[%s6801_s9 + $0x2] sm:$0x1] %vm4970_vm15, %v4967_v42 }
0x1660   : > { %5475 = shalt.err (!%p5472_p11)
}
0x1661   : > { %s5476_s24 = scalar_lea.hbm %s6914_s25, 48  ;;  %s5480_s15 = scalar_lea.hbm %s6960_s7, 96 }
0x1662   : > { %p5477_p0 = scmp.ne.s32.totalorder %s6914_s25, %s5476_s24  ;;  %p5481_p3 = scmp.lt.s32.totalorder %s6914_s25, %s6960_s7 }
0x1663   : > { %p5482_p9 = scmp.lt.s32.totalorder %s5480_s15, %s5476_s24 }
0x1664   : > { %p5478_p2 = pnand %p5477_p0, %p5640_p5 }
0x1665   : > { %p5483_p10 = por %p5482_p9, %p5481_p3 }
0x1666   : > { %p5479_p1 = pneg %p5478_p2 }
0x1668   : > { %p5484_p12 = pnand %p5483_p10, %p5479_p1 }
0x166a   : > { %5487 = shalt.err (!%p5484_p12)
}
0x166b   : > { %5174 = dma.vmem_to_hbm [thread:$0]  (%p5640_p5), %s4988_s20, 48, %s6914_s25, %s4973_s21  }
0x166c PF: > { %p5201_p13 = scmp.ge.s32.totalorder %s5534_s29, 2  ;;  %s4999_s18 = sand.u32 1, %s5522_s26  }
0x166d   : > { %s5000_s19 = scalar_lea.sflag [#allocation6], %s4999_s18 }
0x166e   : > { %p5190_p4 = pnand %p5201_p13, %p5644_p6 }
0x1670   : > { %p5191_p7 = pneg %p5190_p4 }
0x1672   : > { %5517 = dma.done.wait (%p5191_p7), %s5000_s19, 48  }
0x1673   : > { %5519 = vsyncadd (%p5191_p7), %s5000_s19, 4294967248  ;;  %p22_p8 = scmp.ge.s32.totalorder %s5627_s8, 4   ;;  %s6965_s26 = smov %s5526_s27 }
0x1674   : > { %s6966_s27 = smov %s5530_s28  ;;  %s6967_s28 = smov %s5638_s11 }
0x1675   : > { %s6968_s29 = smov %s5627_s8  ;;  %24 = sbr.rel (!%p22_p8) target bundleno = 9 (0x9), region = 140 }
0x167a   :  { %5005 = vsyncpa [#allocation5], 1 }
0x167b   :  { %5007 = vsyncpa [#allocation5 + $0x1], 1 }
0x167c   :  { %5008 = vsyncpa [#allocation8], 1 }
0x167d   :  { %5009 = vsyncpa [#allocation11], 1 }
0x167e   :  { %5010 = vsyncpa [#allocation6], 1 }
0x167f   :  { %5012 = vsyncpa [#allocation6 + $0x1], 1 }

</bundles_post_ra>
